<compile_context>
chip_gen: v7x
topology: tpu7x:2x2x1
jax: 0.10.0
libtpu: 0.0.40
codegen_flags: <defaults>
</compile_context>

<pallas_src>
import functools

import jax
import jax.numpy as jnp
from jax import lax
from jax.experimental import pallas as pl
from jax.experimental.pallas import tpu as pltpu


def _reattention_kernel(rw_ref, gamma_ref, beta_ref,                    # SMEM
                        x_ref, wq_ref, k_ref, v_ref, wout_ref, bout_ref,  # VMEM in
                        o_ref,                                           # VMEM out
                        q_scr, attn_scr, mixed_scr, av_scr,              # scratch
                        *, heads, eps):
    # ---- per-head Q projection for this query tile (scale folded into Wq) --
    x_tile = x_ref[0]                                                 # (tq, dim) bf16
    for h in range(heads):
        q_scr[h] = jnp.dot(x_tile, wq_ref[h],
                           preferred_element_type=jnp.float32).astype(q_scr.dtype)

    # ---- batched QK^T over heads + batched softmax --------------------------
    k = k_ref[0]                                                      # (heads, N, d) bf16
    s = jnp.einsum('hqd,hkd->hqk', q_scr[...], k,
                   preferred_element_type=jnp.float32)                # (heads, tq, N)
    s = s - jnp.max(s, axis=-1, keepdims=True)
    e = jnp.exp(s)
    p = e * pl.reciprocal(jnp.sum(e, axis=-1, keepdims=True), approx=True)
    attn_scr[...] = p.astype(attn_scr.dtype)

    # ---- re-attention head mixing + LayerNorm statistics in one pass --------
    # mixed[g] = sum_h rw[h, g] * attn[h]; mean/var over the head axis are
    # accumulated from the f32 values before they are stored (E[m^2] - mean^2),
    # so no extra streaming passes over `mixed` are needed.
    sum_m = None
    sum_sq = None
    for g in range(heads):
        acc = attn_scr[0] * rw_ref[0, g]
        for h in range(1, heads):
            acc = acc + attn_scr[h] * rw_ref[h, g]
        mixed_scr[g] = acc.astype(mixed_scr.dtype)
        sum_m = acc if sum_m is None else sum_m + acc
        sum_sq = acc * acc if sum_sq is None else sum_sq + acc * acc
    inv_h = 1.0 / heads
    mean = sum_m * inv_h
    var = sum_sq * inv_h - mean * mean
    inv = lax.rsqrt(var + eps)

    # ---- LayerNorm over heads + attention-weighted V (deep-K MXU dots) ------
    for h in range(heads):
        normed = (mixed_scr[h] - mean) * inv * gamma_ref[h] + beta_ref[h]
        av_scr[h] = jnp.dot(normed.astype(jnp.bfloat16), v_ref[0, h],
                            preferred_element_type=jnp.float32).astype(av_scr.dtype)

    # ---- batched output projection over heads + bias, lane-dense store ------
    yh = jnp.einsum('htd,hdo->hto', av_scr[...], wout_ref[...],
                    preferred_element_type=jnp.float32)               # (heads, tq, dim_p)
    y = jnp.sum(yh, axis=0) + bout_ref[...]
    o_ref[0] = y.astype(o_ref.dtype)


def _preprocess_params(params, *, heads, dim_head, dim_p):
    """Fold scale into Wq, split weights per head, pad the output projection.

    Cheap and constant-folded under jit; for deployment hoist this to
    parameter-load time so it runs once (review feedback)."""
    w_qkv = params["w_qkv"]
    dim = w_qkv.shape[0]
    inner = heads * dim_head
    scale = dim_head ** -0.5

    wq = (w_qkv[:, :inner] * scale).reshape(dim, heads, dim_head)
    wk = w_qkv[:, inner:2 * inner].reshape(dim, heads, dim_head)
    wv = w_qkv[:, 2 * inner:].reshape(dim, heads, dim_head)
    wq_r = jnp.transpose(wq, (1, 0, 2)).astype(jnp.bfloat16)          # (H, dim, d)
    wk_r = jnp.transpose(wk, (1, 0, 2)).astype(jnp.bfloat16)
    wv_r = jnp.transpose(wv, (1, 0, 2)).astype(jnp.bfloat16)

    w_out = params["w_out"]                                           # (inner, dim)
    dim_out = w_out.shape[1]
    wout_p = jnp.zeros((inner, dim_p), jnp.bfloat16)
    wout_p = wout_p.at[:, :dim_out].set(w_out.astype(jnp.bfloat16))
    wout_r = wout_p.reshape(heads, dim_head, dim_p)                   # (H, d, dim_p)

    bout = jnp.zeros((1, dim_p), jnp.float32)
    bout = bout.at[0, :dim_out].set(params["b_out"].reshape(-1).astype(jnp.float32))

    rw = params["reattn_w"].astype(jnp.float32)
    gamma = params["ln_gamma"].astype(jnp.float32)
    beta = params["ln_beta"].astype(jnp.float32)
    return wq_r, wk_r, wv_r, wout_r, bout, rw, gamma, beta


def attention_forward(x, params, *, heads, dim_head, q_tile=128,
                      scratch_dtype=jnp.float32):
    # q_tile=256 is recommended on v6e (and on v7x with scratch_dtype=bf16).
    B, N, DIM = x.shape
    out_dtype = x.dtype
    tq = min(q_tile, N)
    assert N % tq == 0, "N must be a multiple of the query tile"
    assert tq % 8 == 0 or tq == N, "query tile must be sublane-aligned"
    num_q = N // tq
    dim_p = pl.cdiv(DIM, 128) * 128                                    # lane-dense out

    wq_r, wk_r, wv_r, wout_r, bout, rw, gamma, beta = _preprocess_params(
        params, heads=heads, dim_head=dim_head, dim_p=dim_p)

    # bf16 activations into the kernel (halves x DMA + VMEM blocks).
    xb = x.astype(jnp.bfloat16)

    # K/V projection hoisted out of the kernel: one large batched GEMM, which
    # makes every (batch, q-tile) grid point independent -> both axes parallel.
    k = jnp.einsum('bnc,hcd->bhnd', xb, wk_r,
                   preferred_element_type=jnp.float32).astype(jnp.bfloat16)
    v = jnp.einsum('bnc,hcd->bhnd', xb, wv_r,
                   preferred_element_type=jnp.float32).astype(jnp.bfloat16)

    kernel = functools.partial(_reattention_kernel, heads=heads, eps=1e-5)

    out = pl.pallas_call(
        kernel,
        out_shape=jax.ShapeDtypeStruct((B, N, dim_p), out_dtype),
        grid=(B, num_q),
        in_specs=[
            pl.BlockSpec(memory_space=pltpu.MemorySpace.SMEM),         # reattn_w (H,H)
            pl.BlockSpec(memory_space=pltpu.MemorySpace.SMEM),         # ln gamma (H,)
            pl.BlockSpec(memory_space=pltpu.MemorySpace.SMEM),         # ln beta  (H,)
            pl.BlockSpec((1, tq, DIM), lambda b, q: (b, q, 0)),        # x query tile
            pl.BlockSpec((heads, DIM, dim_head), lambda b, q: (0, 0, 0)),       # Wq
            pl.BlockSpec((1, heads, N, dim_head), lambda b, q: (b, 0, 0, 0)),   # K
            pl.BlockSpec((1, heads, N, dim_head), lambda b, q: (b, 0, 0, 0)),   # V
            pl.BlockSpec((heads, dim_head, dim_p), lambda b, q: (0, 0, 0)),     # Wout
            pl.BlockSpec((1, dim_p), lambda b, q: (0, 0)),             # bias (padded)
        ],
        out_specs=pl.BlockSpec((1, tq, dim_p), lambda b, q: (b, q, 0)),
        scratch_shapes=[
            pltpu.VMEM((heads, tq, dim_head), jnp.bfloat16),           # Q, head-major
            pltpu.VMEM((heads, tq, N), scratch_dtype),                 # attn
            pltpu.VMEM((heads, tq, N), scratch_dtype),                 # re-attn mix
            pltpu.VMEM((heads, tq, dim_head), jnp.bfloat16),           # A @ V
        ],
        compiler_params=pltpu.CompilerParams(
            dimension_semantics=("parallel", "parallel"),
            vmem_limit_bytes=48 * 1024 * 1024),
    )(rw, gamma, beta, xb, wq_r, k, v, wout_r, bout)

    return out[..., :DIM]


def attention_ref(x, params, *, heads, dim_head):
    """Pure-JAX f32 reference mirroring the PyTorch forward (dropout = identity)."""
    B, N, DIM = x.shape
    inner = heads * dim_head
    scale = dim_head ** -0.5
    qkv = x @ params["w_qkv"]
    q, k, v = jnp.split(qkv, 3, axis=-1)
    to_heads = lambda t: t.reshape(B, N, heads, dim_head).transpose(0, 2, 1, 3)
    q, k, v = map(to_heads, (q, k, v))
    dots = jnp.einsum('bhid,bhjd->bhij', q, k) * scale
    attn = jax.nn.softmax(dots, axis=-1)
    attn = jnp.einsum('bhij,hg->bgij', attn, params["reattn_w"])
    re = attn.transpose(0, 2, 3, 1)                       # (B, i, j, h)
    mean = re.mean(-1, keepdims=True)
    var = ((re - mean) ** 2).mean(-1, keepdims=True)
    re = (re - mean) / jnp.sqrt(var + 1e-5) * params["ln_gamma"] + params["ln_beta"]
    re = re.transpose(0, 3, 1, 2)
    out = jnp.einsum('bhij,bhjd->bhid', re, v)
    out = out.transpose(0, 2, 1, 3).reshape(B, N, inner)
    return out @ params["w_out"] + params["b_out"]


if __name__ == "__main__":
    B, N, DIM, HEADS, DIM_HEAD = 2, 16, 64, 8, 8
    INNER = HEADS * DIM_HEAD

    key = jax.random.PRNGKey(0)
    ks = jax.random.split(key, 5)
    x = jax.random.normal(ks[0], (B, N, DIM), jnp.float32)
    params = {
        "w_qkv": jax.random.normal(ks[1], (DIM, 3 * INNER), jnp.float32) * 0.1,
        "reattn_w": jax.random.normal(ks[2], (HEADS, HEADS), jnp.float32),
        "ln_gamma": jnp.ones((HEADS,), jnp.float32),      # LayerNorm default init
        "ln_beta": jnp.zeros((HEADS,), jnp.float32),
        "w_out": jax.random.normal(ks[3], (INNER, DIM), jnp.float32) * 0.1,
        "b_out": jax.random.normal(ks[4], (DIM,), jnp.float32) * 0.1,
    }

    # q_tile=8 -> 2 query tiles per batch element: exercises the 2-D parallel grid.
    out = attention_forward(x, params, heads=HEADS, dim_head=DIM_HEAD, q_tile=8)
    jax.block_until_ready(out)

    ref = attention_ref(x, params, heads=HEADS, dim_head=DIM_HEAD)
    assert out.shape == (B, N, DIM)
    # bf16 MXU inputs + approx reciprocal => bf16-level tolerance, scaled by
    # the output magnitude.
    err = float(jnp.max(jnp.abs(out - ref)))
    ref_scale = float(jnp.max(jnp.abs(ref)))
    assert err <= 0.03 * ref_scale + 1e-2, \
        f"kernel/reference mismatch: max_err={err}, ref_scale={ref_scale}"
    print("KERNEL_OK")
</pallas_src>

<mosaic_0001>
module attributes {stable_mosaic.version = 11 : i64} {
  func.func @_reattention_kernel(%arg0: i32, %arg1: i32, %arg2: memref<8x8xf32, #tpu.memory_space<smem>>, %arg3: memref<8xf32, #tpu.memory_space<smem>>, %arg4: memref<8xf32, #tpu.memory_space<smem>>, %arg5: memref<1x8x64xbf16, #tpu.memory_space<vmem>>, %arg6: memref<8x64x8xbf16, #tpu.memory_space<vmem>>, %arg7: memref<1x8x16x8xbf16, #tpu.memory_space<vmem>>, %arg8: memref<1x8x16x8xbf16, #tpu.memory_space<vmem>>, %arg9: memref<8x8x128xbf16, #tpu.memory_space<vmem>>, %arg10: memref<1x128xf32, #tpu.memory_space<vmem>>, %arg11: memref<1x8x128xf32, #tpu.memory_space<vmem>>, %arg12: memref<8x8x8xbf16, #tpu.memory_space<vmem>>, %arg13: memref<8x8x16xf32, #tpu.memory_space<vmem>>, %arg14: memref<8x8x16xf32, #tpu.memory_space<vmem>>, %arg15: memref<8x8x8xbf16, #tpu.memory_space<vmem>>) attributes {dimension_semantics = [#tpu.dimension_semantics<parallel>, #tpu.dimension_semantics<parallel>], iteration_bounds = array<i64: 2, 2>, scalar_prefetch = 0 : i64, scratch_operands = 4 : i64, tpu.core_type = #tpu.core_type<tc>, window_params = [{transform_indices = @transform_0, window_bounds = array<i64: 8, 8>}, {transform_indices = @transform_1, window_bounds = array<i64: 8>}, {transform_indices = @transform_2, window_bounds = array<i64: 8>}, {transform_indices = @transform_3, window_bounds = array<i64: 1, 8, 64>}, {pipeline_mode = #tpu.pipeline_mode<synchronous>, transform_indices = @transform_4, window_bounds = array<i64: 8, 64, 8>}, {transform_indices = @transform_5, window_bounds = array<i64: 1, 8, 16, 8>}, {transform_indices = @transform_6, window_bounds = array<i64: 1, 8, 16, 8>}, {pipeline_mode = #tpu.pipeline_mode<synchronous>, transform_indices = @transform_7, window_bounds = array<i64: 8, 8, 128>}, {pipeline_mode = #tpu.pipeline_mode<synchronous>, transform_indices = @transform_8, window_bounds = array<i64: 1, 128>}, {transform_indices = @transform_9, window_bounds = array<i64: 1, 8, 128>}]} {
    %c0 = arith.constant 0 : index
    %c0_0 = arith.constant 0 : index
    %c0_1 = arith.constant 0 : index
    %0 = vector.load %arg5[%c0, %c0_0, %c0_1] : memref<1x8x64xbf16, #tpu.memory_space<vmem>>, vector<1x8x64xbf16>
    %1 = vector.shape_cast %0 : vector<1x8x64xbf16> to vector<8x64xbf16>
    %c0_2 = arith.constant 0 : index
    %c0_3 = arith.constant 0 : index
    %c0_4 = arith.constant 0 : index
    %2 = vector.load %arg6[%c0_2, %c0_3, %c0_4] : memref<8x64x8xbf16, #tpu.memory_space<vmem>>, vector<1x64x8xbf16>
    %3 = vector.shape_cast %2 : vector<1x64x8xbf16> to vector<64x8xbf16>
    %cst = arith.constant dense<0.000000e+00> : vector<8x8xf32>
    %4 = tpu.matmul %1, %3, %cst {dimension_numbers = #tpu.dot_dimension_numbers<[1], [0], [0], [1], [0, 0, 1, 1], [], []>} : vector<8x64xbf16>, vector<64x8xbf16>, vector<8x8xf32> -> vector<8x8xf32>
    %5 = arith.truncf %4 : vector<8x8xf32> to vector<8x8xbf16>
    %c0_5 = arith.constant 0 : index
    %c0_6 = arith.constant 0 : index
    %c0_7 = arith.constant 0 : index
    %6 = vector.load %arg12[%c0_5, %c0_6, %c0_7] : memref<8x8x8xbf16, #tpu.memory_space<vmem>>, vector<1x8x8xbf16>
    %7 = vector.shape_cast %6 : vector<1x8x8xbf16> to vector<8x8xbf16>
    %8 = vector.shape_cast %5 : vector<8x8xbf16> to vector<1x8x8xbf16>
    tpu.vector_store %arg12[%c0_5, %c0_6, %c0_7], %8 {strides = array<i32>} : memref<8x8x8xbf16, #tpu.memory_space<vmem>>, vector<1x8x8xbf16>,
    %c1 = arith.constant 1 : index
    %c0_8 = arith.constant 0 : index
    %c0_9 = arith.constant 0 : index
    %9 = vector.load %arg6[%c1, %c0_8, %c0_9] : memref<8x64x8xbf16, #tpu.memory_space<vmem>>, vector<1x64x8xbf16>
    %10 = vector.shape_cast %9 : vector<1x64x8xbf16> to vector<64x8xbf16>
    %cst_10 = arith.constant dense<0.000000e+00> : vector<8x8xf32>
    %11 = tpu.matmul %1, %10, %cst_10 {dimension_numbers = #tpu.dot_dimension_numbers<[1], [0], [0], [1], [0, 0, 1, 1], [], []>} : vector<8x64xbf16>, vector<64x8xbf16>, vector<8x8xf32> -> vector<8x8xf32>
    %12 = arith.truncf %11 : vector<8x8xf32> to vector<8x8xbf16>
    %c1_11 = arith.constant 1 : index
    %c0_12 = arith.constant 0 : index
    %c0_13 = arith.constant 0 : index
    %13 = vector.load %arg12[%c1_11, %c0_12, %c0_13] : memref<8x8x8xbf16, #tpu.memory_space<vmem>>, vector<1x8x8xbf16>
    %14 = vector.shape_cast %13 : vector<1x8x8xbf16> to vector<8x8xbf16>
    %15 = vector.shape_cast %12 : vector<8x8xbf16> to vector<1x8x8xbf16>
    tpu.vector_store %arg12[%c1_11, %c0_12, %c0_13], %15 {strides = array<i32>} : memref<8x8x8xbf16, #tpu.memory_space<vmem>>, vector<1x8x8xbf16>,
    %c2 = arith.constant 2 : index
    %c0_14 = arith.constant 0 : index
    %c0_15 = arith.constant 0 : index
    %16 = vector.load %arg6[%c2, %c0_14, %c0_15] : memref<8x64x8xbf16, #tpu.memory_space<vmem>>, vector<1x64x8xbf16>
    %17 = vector.shape_cast %16 : vector<1x64x8xbf16> to vector<64x8xbf16>
    %cst_16 = arith.constant dense<0.000000e+00> : vector<8x8xf32>
    %18 = tpu.matmul %1, %17, %cst_16 {dimension_numbers = #tpu.dot_dimension_numbers<[1], [0], [0], [1], [0, 0, 1, 1], [], []>} : vector<8x64xbf16>, vector<64x8xbf16>, vector<8x8xf32> -> vector<8x8xf32>
    %19 = arith.truncf %18 : vector<8x8xf32> to vector<8x8xbf16>
    %c2_17 = arith.constant 2 : index
    %c0_18 = arith.constant 0 : index
    %c0_19 = arith.constant 0 : index
    %20 = vector.load %arg12[%c2_17, %c0_18, %c0_19] : memref<8x8x8xbf16, #tpu.memory_space<vmem>>, vector<1x8x8xbf16>
    %21 = vector.shape_cast %20 : vector<1x8x8xbf16> to vector<8x8xbf16>
    %22 = vector.shape_cast %19 : vector<8x8xbf16> to vector<1x8x8xbf16>
    tpu.vector_store %arg12[%c2_17, %c0_18, %c0_19], %22 {strides = array<i32>} : memref<8x8x8xbf16, #tpu.memory_space<vmem>>, vector<1x8x8xbf16>,
    %c3 = arith.constant 3 : index
    %c0_20 = arith.constant 0 : index
    %c0_21 = arith.constant 0 : index
    %23 = vector.load %arg6[%c3, %c0_20, %c0_21] : memref<8x64x8xbf16, #tpu.memory_space<vmem>>, vector<1x64x8xbf16>
    %24 = vector.shape_cast %23 : vector<1x64x8xbf16> to vector<64x8xbf16>
    %cst_22 = arith.constant dense<0.000000e+00> : vector<8x8xf32>
    %25 = tpu.matmul %1, %24, %cst_22 {dimension_numbers = #tpu.dot_dimension_numbers<[1], [0], [0], [1], [0, 0, 1, 1], [], []>} : vector<8x64xbf16>, vector<64x8xbf16>, vector<8x8xf32> -> vector<8x8xf32>
    %26 = arith.truncf %25 : vector<8x8xf32> to vector<8x8xbf16>
    %c3_23 = arith.constant 3 : index
    %c0_24 = arith.constant 0 : index
    %c0_25 = arith.constant 0 : index
    %27 = vector.load %arg12[%c3_23, %c0_24, %c0_25] : memref<8x8x8xbf16, #tpu.memory_space<vmem>>, vector<1x8x8xbf16>
    %28 = vector.shape_cast %27 : vector<1x8x8xbf16> to vector<8x8xbf16>
    %29 = vector.shape_cast %26 : vector<8x8xbf16> to vector<1x8x8xbf16>
    tpu.vector_store %arg12[%c3_23, %c0_24, %c0_25], %29 {strides = array<i32>} : memref<8x8x8xbf16, #tpu.memory_space<vmem>>, vector<1x8x8xbf16>,
    %c4 = arith.constant 4 : index
    %c0_26 = arith.constant 0 : index
    %c0_27 = arith.constant 0 : index
    %30 = vector.load %arg6[%c4, %c0_26, %c0_27] : memref<8x64x8xbf16, #tpu.memory_space<vmem>>, vector<1x64x8xbf16>
    %31 = vector.shape_cast %30 : vector<1x64x8xbf16> to vector<64x8xbf16>
    %cst_28 = arith.constant dense<0.000000e+00> : vector<8x8xf32>
    %32 = tpu.matmul %1, %31, %cst_28 {dimension_numbers = #tpu.dot_dimension_numbers<[1], [0], [0], [1], [0, 0, 1, 1], [], []>} : vector<8x64xbf16>, vector<64x8xbf16>, vector<8x8xf32> -> vector<8x8xf32>
    %33 = arith.truncf %32 : vector<8x8xf32> to vector<8x8xbf16>
    %c4_29 = arith.constant 4 : index
    %c0_30 = arith.constant 0 : index
    %c0_31 = arith.constant 0 : index
    %34 = vector.load %arg12[%c4_29, %c0_30, %c0_31] : memref<8x8x8xbf16, #tpu.memory_space<vmem>>, vector<1x8x8xbf16>
    %35 = vector.shape_cast %34 : vector<1x8x8xbf16> to vector<8x8xbf16>
    %36 = vector.shape_cast %33 : vector<8x8xbf16> to vector<1x8x8xbf16>
    tpu.vector_store %arg12[%c4_29, %c0_30, %c0_31], %36 {strides = array<i32>} : memref<8x8x8xbf16, #tpu.memory_space<vmem>>, vector<1x8x8xbf16>,
    %c5 = arith.constant 5 : index
    %c0_32 = arith.constant 0 : index
    %c0_33 = arith.constant 0 : index
    %37 = vector.load %arg6[%c5, %c0_32, %c0_33] : memref<8x64x8xbf16, #tpu.memory_space<vmem>>, vector<1x64x8xbf16>
    %38 = vector.shape_cast %37 : vector<1x64x8xbf16> to vector<64x8xbf16>
    %cst_34 = arith.constant dense<0.000000e+00> : vector<8x8xf32>
    %39 = tpu.matmul %1, %38, %cst_34 {dimension_numbers = #tpu.dot_dimension_numbers<[1], [0], [0], [1], [0, 0, 1, 1], [], []>} : vector<8x64xbf16>, vector<64x8xbf16>, vector<8x8xf32> -> vector<8x8xf32>
    %40 = arith.truncf %39 : vector<8x8xf32> to vector<8x8xbf16>
    %c5_35 = arith.constant 5 : index
    %c0_36 = arith.constant 0 : index
    %c0_37 = arith.constant 0 : index
    %41 = vector.load %arg12[%c5_35, %c0_36, %c0_37] : memref<8x8x8xbf16, #tpu.memory_space<vmem>>, vector<1x8x8xbf16>
    %42 = vector.shape_cast %41 : vector<1x8x8xbf16> to vector<8x8xbf16>
    %43 = vector.shape_cast %40 : vector<8x8xbf16> to vector<1x8x8xbf16>
    tpu.vector_store %arg12[%c5_35, %c0_36, %c0_37], %43 {strides = array<i32>} : memref<8x8x8xbf16, #tpu.memory_space<vmem>>, vector<1x8x8xbf16>,
    %c6 = arith.constant 6 : index
    %c0_38 = arith.constant 0 : index
    %c0_39 = arith.constant 0 : index
    %44 = vector.load %arg6[%c6, %c0_38, %c0_39] : memref<8x64x8xbf16, #tpu.memory_space<vmem>>, vector<1x64x8xbf16>
    %45 = vector.shape_cast %44 : vector<1x64x8xbf16> to vector<64x8xbf16>
    %cst_40 = arith.constant dense<0.000000e+00> : vector<8x8xf32>
    %46 = tpu.matmul %1, %45, %cst_40 {dimension_numbers = #tpu.dot_dimension_numbers<[1], [0], [0], [1], [0, 0, 1, 1], [], []>} : vector<8x64xbf16>, vector<64x8xbf16>, vector<8x8xf32> -> vector<8x8xf32>
    %47 = arith.truncf %46 : vector<8x8xf32> to vector<8x8xbf16>
    %c6_41 = arith.constant 6 : index
    %c0_42 = arith.constant 0 : index
    %c0_43 = arith.constant 0 : index
    %48 = vector.load %arg12[%c6_41, %c0_42, %c0_43] : memref<8x8x8xbf16, #tpu.memory_space<vmem>>, vector<1x8x8xbf16>
    %49 = vector.shape_cast %48 : vector<1x8x8xbf16> to vector<8x8xbf16>
    %50 = vector.shape_cast %47 : vector<8x8xbf16> to vector<1x8x8xbf16>
    tpu.vector_store %arg12[%c6_41, %c0_42, %c0_43], %50 {strides = array<i32>} : memref<8x8x8xbf16, #tpu.memory_space<vmem>>, vector<1x8x8xbf16>,
    %c7 = arith.constant 7 : index
    %c0_44 = arith.constant 0 : index
    %c0_45 = arith.constant 0 : index
    %51 = vector.load %arg6[%c7, %c0_44, %c0_45] : memref<8x64x8xbf16, #tpu.memory_space<vmem>>, vector<1x64x8xbf16>
    %52 = vector.shape_cast %51 : vector<1x64x8xbf16> to vector<64x8xbf16>
    %cst_46 = arith.constant dense<0.000000e+00> : vector<8x8xf32>
    %53 = tpu.matmul %1, %52, %cst_46 {dimension_numbers = #tpu.dot_dimension_numbers<[1], [0], [0], [1], [0, 0, 1, 1], [], []>} : vector<8x64xbf16>, vector<64x8xbf16>, vector<8x8xf32> -> vector<8x8xf32>
    %54 = arith.truncf %53 : vector<8x8xf32> to vector<8x8xbf16>
    %c7_47 = arith.constant 7 : index
    %c0_48 = arith.constant 0 : index
    %c0_49 = arith.constant 0 : index
    %55 = vector.load %arg12[%c7_47, %c0_48, %c0_49] : memref<8x8x8xbf16, #tpu.memory_space<vmem>>, vector<1x8x8xbf16>
    %56 = vector.shape_cast %55 : vector<1x8x8xbf16> to vector<8x8xbf16>
    %57 = vector.shape_cast %54 : vector<8x8xbf16> to vector<1x8x8xbf16>
    tpu.vector_store %arg12[%c7_47, %c0_48, %c0_49], %57 {strides = array<i32>} : memref<8x8x8xbf16, #tpu.memory_space<vmem>>, vector<1x8x8xbf16>,
    %c0_50 = arith.constant 0 : index
    %c0_51 = arith.constant 0 : index
    %c0_52 = arith.constant 0 : index
    %c0_53 = arith.constant 0 : index
    %58 = vector.load %arg7[%c0_50, %c0_51, %c0_52, %c0_53] : memref<1x8x16x8xbf16, #tpu.memory_space<vmem>>, vector<1x8x16x8xbf16>
    %59 = vector.shape_cast %58 : vector<1x8x16x8xbf16> to vector<8x16x8xbf16>
    %c0_54 = arith.constant 0 : index
    %c0_55 = arith.constant 0 : index
    %c0_56 = arith.constant 0 : index
    %60 = vector.load %arg12[%c0_54, %c0_55, %c0_56] : memref<8x8x8xbf16, #tpu.memory_space<vmem>>, vector<8x8x8xbf16>
    "tpu.trace_start"() <{level = 10 : i32, message = "hqd,hkd->hqk"}> : () -> ()
    %cst_57 = arith.constant dense<0.000000e+00> : vector<8x8x16xf32>
    %61 = tpu.matmul %60, %59, %cst_57 {dimension_numbers = #tpu.dot_dimension_numbers<[2], [2], [1], [1], [0, 0, 0, 1, 1, 1], [0], [0]>} : vector<8x8x8xbf16>, vector<8x16x8xbf16>, vector<8x8x16xf32> -> vector<8x8x16xf32>
    "tpu.trace_stop"() : () -> ()
    %cst_58 = arith.constant dense<0xFF800000> : vector<8x8xf32>
    %62 = vector.multi_reduction <maximumf>, %61, %cst_58 [2] : vector<8x8x16xf32> to vector<8x8xf32>
    %63 = vector.shape_cast %62 : vector<8x8xf32> to vector<8x8x1xf32>
    %64 = vector.broadcast %63 : vector<8x8x1xf32> to vector<8x8x16xf32>
    %65 = arith.subf %61, %64 : vector<8x8x16xf32>
    %66 = math.exp %65 : vector<8x8x16xf32>
    %cst_59 = arith.constant dense<0.000000e+00> : vector<8x8xf32>
    %67 = vector.multi_reduction <add>, %66, %cst_59 [2] : vector<8x8x16xf32> to vector<8x8xf32>
    %68 = vector.shape_cast %67 : vector<8x8xf32> to vector<8x8x1xf32>
    %69 = tpu.reciprocal %68 {approx = true} : vector<8x8x1xf32> -> vector<8x8x1xf32>
    %70 = vector.broadcast %69 : vector<8x8x1xf32> to vector<8x8x16xf32>
    %71 = arith.mulf %66, %70 : vector<8x8x16xf32>
    %c0_60 = arith.constant 0 : index
    %c0_61 = arith.constant 0 : index
    %c0_62 = arith.constant 0 : index
    %72 = vector.load %arg13[%c0_60, %c0_61, %c0_62] : memref<8x8x16xf32, #tpu.memory_space<vmem>>, vector<8x8x16xf32>
    tpu.vector_store %arg13[%c0_60, %c0_61, %c0_62], %71 {strides = array<i32>} : memref<8x8x16xf32, #tpu.memory_space<vmem>>, vector<8x8x16xf32>,
    %c0_63 = arith.constant 0 : index
    %c0_64 = arith.constant 0 : index
    %c0_65 = arith.constant 0 : index
    %73 = vector.load %arg13[%c0_63, %c0_64, %c0_65] : memref<8x8x16xf32, #tpu.memory_space<vmem>>, vector<1x8x16xf32>
    %74 = vector.shape_cast %73 : vector<1x8x16xf32> to vector<8x16xf32>
    %c0_66 = arith.constant 0 : index
    %c0_67 = arith.constant 0 : index
    %75 = memref.load %arg2[%c0_66, %c0_67] : memref<8x8xf32, #tpu.memory_space<smem>>
    %76 = vector.broadcast %75 : f32 to vector<8x16xf32>
    %77 = arith.mulf %74, %76 : vector<8x16xf32>
    %c1_68 = arith.constant 1 : index
    %c0_69 = arith.constant 0 : index
    %c0_70 = arith.constant 0 : index
    %78 = vector.load %arg13[%c1_68, %c0_69, %c0_70] : memref<8x8x16xf32, #tpu.memory_space<vmem>>, vector<1x8x16xf32>
    %79 = vector.shape_cast %78 : vector<1x8x16xf32> to vector<8x16xf32>
    %c1_71 = arith.constant 1 : index
    %c0_72 = arith.constant 0 : index
    %80 = memref.load %arg2[%c1_71, %c0_72] : memref<8x8xf32, #tpu.memory_space<smem>>
    %81 = vector.broadcast %80 : f32 to vector<8x16xf32>
    %82 = arith.mulf %79, %81 : vector<8x16xf32>
    %83 = arith.addf %77, %82 : vector<8x16xf32>
    %c2_73 = arith.constant 2 : index
    %c0_74 = arith.constant 0 : index
    %c0_75 = arith.constant 0 : index
    %84 = vector.load %arg13[%c2_73, %c0_74, %c0_75] : memref<8x8x16xf32, #tpu.memory_space<vmem>>, vector<1x8x16xf32>
    %85 = vector.shape_cast %84 : vector<1x8x16xf32> to vector<8x16xf32>
    %c2_76 = arith.constant 2 : index
    %c0_77 = arith.constant 0 : index
    %86 = memref.load %arg2[%c2_76, %c0_77] : memref<8x8xf32, #tpu.memory_space<smem>>
    %87 = vector.broadcast %86 : f32 to vector<8x16xf32>
    %88 = arith.mulf %85, %87 : vector<8x16xf32>
    %89 = arith.addf %83, %88 : vector<8x16xf32>
    %c3_78 = arith.constant 3 : index
    %c0_79 = arith.constant 0 : index
    %c0_80 = arith.constant 0 : index
    %90 = vector.load %arg13[%c3_78, %c0_79, %c0_80] : memref<8x8x16xf32, #tpu.memory_space<vmem>>, vector<1x8x16xf32>
    %91 = vector.shape_cast %90 : vector<1x8x16xf32> to vector<8x16xf32>
    %c3_81 = arith.constant 3 : index
    %c0_82 = arith.constant 0 : index
    %92 = memref.load %arg2[%c3_81, %c0_82] : memref<8x8xf32, #tpu.memory_space<smem>>
    %93 = vector.broadcast %92 : f32 to vector<8x16xf32>
    %94 = arith.mulf %91, %93 : vector<8x16xf32>
    %95 = arith.addf %89, %94 : vector<8x16xf32>
    %c4_83 = arith.constant 4 : index
    %c0_84 = arith.constant 0 : index
    %c0_85 = arith.constant 0 : index
    %96 = vector.load %arg13[%c4_83, %c0_84, %c0_85] : memref<8x8x16xf32, #tpu.memory_space<vmem>>, vector<1x8x16xf32>
    %97 = vector.shape_cast %96 : vector<1x8x16xf32> to vector<8x16xf32>
    %c4_86 = arith.constant 4 : index
    %c0_87 = arith.constant 0 : index
    %98 = memref.load %arg2[%c4_86, %c0_87] : memref<8x8xf32, #tpu.memory_space<smem>>
    %99 = vector.broadcast %98 : f32 to vector<8x16xf32>
    %100 = arith.mulf %97, %99 : vector<8x16xf32>
    %101 = arith.addf %95, %100 : vector<8x16xf32>
    %c5_88 = arith.constant 5 : index
    %c0_89 = arith.constant 0 : index
    %c0_90 = arith.constant 0 : index
    %102 = vector.load %arg13[%c5_88, %c0_89, %c0_90] : memref<8x8x16xf32, #tpu.memory_space<vmem>>, vector<1x8x16xf32>
    %103 = vector.shape_cast %102 : vector<1x8x16xf32> to vector<8x16xf32>
    %c5_91 = arith.constant 5 : index
    %c0_92 = arith.constant 0 : index
    %104 = memref.load %arg2[%c5_91, %c0_92] : memref<8x8xf32, #tpu.memory_space<smem>>
    %105 = vector.broadcast %104 : f32 to vector<8x16xf32>
    %106 = arith.mulf %103, %105 : vector<8x16xf32>
    %107 = arith.addf %101, %106 : vector<8x16xf32>
    %c6_93 = arith.constant 6 : index
    %c0_94 = arith.constant 0 : index
    %c0_95 = arith.constant 0 : index
    %108 = vector.load %arg13[%c6_93, %c0_94, %c0_95] : memref<8x8x16xf32, #tpu.memory_space<vmem>>, vector<1x8x16xf32>
    %109 = vector.shape_cast %108 : vector<1x8x16xf32> to vector<8x16xf32>
    %c6_96 = arith.constant 6 : index
    %c0_97 = arith.constant 0 : index
    %110 = memref.load %arg2[%c6_96, %c0_97] : memref<8x8xf32, #tpu.memory_space<smem>>
    %111 = vector.broadcast %110 : f32 to vector<8x16xf32>
    %112 = arith.mulf %109, %111 : vector<8x16xf32>
    %113 = arith.addf %107, %112 : vector<8x16xf32>
    %c7_98 = arith.constant 7 : index
    %c0_99 = arith.constant 0 : index
    %c0_100 = arith.constant 0 : index
    %114 = vector.load %arg13[%c7_98, %c0_99, %c0_100] : memref<8x8x16xf32, #tpu.memory_space<vmem>>, vector<1x8x16xf32>
    %115 = vector.shape_cast %114 : vector<1x8x16xf32> to vector<8x16xf32>
    %c7_101 = arith.constant 7 : index
    %c0_102 = arith.constant 0 : index
    %116 = memref.load %arg2[%c7_101, %c0_102] : memref<8x8xf32, #tpu.memory_space<smem>>
    %117 = vector.broadcast %116 : f32 to vector<8x16xf32>
    %118 = arith.mulf %115, %117 : vector<8x16xf32>
    %119 = arith.addf %113, %118 : vector<8x16xf32>
    %c0_103 = arith.constant 0 : index
    %c0_104 = arith.constant 0 : index
    %c0_105 = arith.constant 0 : index
    %120 = vector.load %arg14[%c0_103, %c0_104, %c0_105] : memref<8x8x16xf32, #tpu.memory_space<vmem>>, vector<1x8x16xf32>
    %121 = vector.shape_cast %120 : vector<1x8x16xf32> to vector<8x16xf32>
    %122 = vector.shape_cast %119 : vector<8x16xf32> to vector<1x8x16xf32>
    tpu.vector_store %arg14[%c0_103, %c0_104, %c0_105], %122 {strides = array<i32>} : memref<8x8x16xf32, #tpu.memory_space<vmem>>, vector<1x8x16xf32>,
    %123 = arith.mulf %119, %119 : vector<8x16xf32>
    %c0_106 = arith.constant 0 : index
    %c0_107 = arith.constant 0 : index
    %c0_108 = arith.constant 0 : index
    %124 = vector.load %arg13[%c0_106, %c0_107, %c0_108] : memref<8x8x16xf32, #tpu.memory_space<vmem>>, vector<1x8x16xf32>
    %125 = vector.shape_cast %124 : vector<1x8x16xf32> to vector<8x16xf32>
    %c0_109 = arith.constant 0 : index
    %c1_110 = arith.constant 1 : index
    %126 = memref.load %arg2[%c0_109, %c1_110] : memref<8x8xf32, #tpu.memory_space<smem>>
    %127 = vector.broadcast %126 : f32 to vector<8x16xf32>
    %128 = arith.mulf %125, %127 : vector<8x16xf32>
    %c1_111 = arith.constant 1 : index
    %c0_112 = arith.constant 0 : index
    %c0_113 = arith.constant 0 : index
    %129 = vector.load %arg13[%c1_111, %c0_112, %c0_113] : memref<8x8x16xf32, #tpu.memory_space<vmem>>, vector<1x8x16xf32>
    %130 = vector.shape_cast %129 : vector<1x8x16xf32> to vector<8x16xf32>
    %c1_114 = arith.constant 1 : index
    %c1_115 = arith.constant 1 : index
    %131 = memref.load %arg2[%c1_114, %c1_115] : memref<8x8xf32, #tpu.memory_space<smem>>
    %132 = vector.broadcast %131 : f32 to vector<8x16xf32>
    %133 = arith.mulf %130, %132 : vector<8x16xf32>
    %134 = arith.addf %128, %133 : vector<8x16xf32>
    %c2_116 = arith.constant 2 : index
    %c0_117 = arith.constant 0 : index
    %c0_118 = arith.constant 0 : index
    %135 = vector.load %arg13[%c2_116, %c0_117, %c0_118] : memref<8x8x16xf32, #tpu.memory_space<vmem>>, vector<1x8x16xf32>
    %136 = vector.shape_cast %135 : vector<1x8x16xf32> to vector<8x16xf32>
    %c2_119 = arith.constant 2 : index
    %c1_120 = arith.constant 1 : index
    %137 = memref.load %arg2[%c2_119, %c1_120] : memref<8x8xf32, #tpu.memory_space<smem>>
    %138 = vector.broadcast %137 : f32 to vector<8x16xf32>
    %139 = arith.mulf %136, %138 : vector<8x16xf32>
    %140 = arith.addf %134, %139 : vector<8x16xf32>
    %c3_121 = arith.constant 3 : index
    %c0_122 = arith.constant 0 : index
    %c0_123 = arith.constant 0 : index
    %141 = vector.load %arg13[%c3_121, %c0_122, %c0_123] : memref<8x8x16xf32, #tpu.memory_space<vmem>>, vector<1x8x16xf32>
    %142 = vector.shape_cast %141 : vector<1x8x16xf32> to vector<8x16xf32>
    %c3_124 = arith.constant 3 : index
    %c1_125 = arith.constant 1 : index
    %143 = memref.load %arg2[%c3_124, %c1_125] : memref<8x8xf32, #tpu.memory_space<smem>>
    %144 = vector.broadcast %143 : f32 to vector<8x16xf32>
    %145 = arith.mulf %142, %144 : vector<8x16xf32>
    %146 = arith.addf %140, %145 : vector<8x16xf32>
    %c4_126 = arith.constant 4 : index
    %c0_127 = arith.constant 0 : index
    %c0_128 = arith.constant 0 : index
    %147 = vector.load %arg13[%c4_126, %c0_127, %c0_128] : memref<8x8x16xf32, #tpu.memory_space<vmem>>, vector<1x8x16xf32>
    %148 = vector.shape_cast %147 : vector<1x8x16xf32> to vector<8x16xf32>
    %c4_129 = arith.constant 4 : index
    %c1_130 = arith.constant 1 : index
    %149 = memref.load %arg2[%c4_129, %c1_130] : memref<8x8xf32, #tpu.memory_space<smem>>
    %150 = vector.broadcast %149 : f32 to vector<8x16xf32>
    %151 = arith.mulf %148, %150 : vector<8x16xf32>
    %152 = arith.addf %146, %151 : vector<8x16xf32>
    %c5_131 = arith.constant 5 : index
    %c0_132 = arith.constant 0 : index
    %c0_133 = arith.constant 0 : index
    %153 = vector.load %arg13[%c5_131, %c0_132, %c0_133] : memref<8x8x16xf32, #tpu.memory_space<vmem>>, vector<1x8x16xf32>
    %154 = vector.shape_cast %153 : vector<1x8x16xf32> to vector<8x16xf32>
    %c5_134 = arith.constant 5 : index
    %c1_135 = arith.constant 1 : index
    %155 = memref.load %arg2[%c5_134, %c1_135] : memref<8x8xf32, #tpu.memory_space<smem>>
    %156 = vector.broadcast %155 : f32 to vector<8x16xf32>
    %157 = arith.mulf %154, %156 : vector<8x16xf32>
    %158 = arith.addf %152, %157 : vector<8x16xf32>
    %c6_136 = arith.constant 6 : index
    %c0_137 = arith.constant 0 : index
    %c0_138 = arith.constant 0 : index
    %159 = vector.load %arg13[%c6_136, %c0_137, %c0_138] : memref<8x8x16xf32, #tpu.memory_space<vmem>>, vector<1x8x16xf32>
    %160 = vector.shape_cast %159 : vector<1x8x16xf32> to vector<8x16xf32>
    %c6_139 = arith.constant 6 : index
    %c1_140 = arith.constant 1 : index
    %161 = memref.load %arg2[%c6_139, %c1_140] : memref<8x8xf32, #tpu.memory_space<smem>>
    %162 = vector.broadcast %161 : f32 to vector<8x16xf32>
    %163 = arith.mulf %160, %162 : vector<8x16xf32>
    %164 = arith.addf %158, %163 : vector<8x16xf32>
    %c7_141 = arith.constant 7 : index
    %c0_142 = arith.constant 0 : index
    %c0_143 = arith.constant 0 : index
    %165 = vector.load %arg13[%c7_141, %c0_142, %c0_143] : memref<8x8x16xf32, #tpu.memory_space<vmem>>, vector<1x8x16xf32>
    %166 = vector.shape_cast %165 : vector<1x8x16xf32> to vector<8x16xf32>
    %c7_144 = arith.constant 7 : index
    %c1_145 = arith.constant 1 : index
    %167 = memref.load %arg2[%c7_144, %c1_145] : memref<8x8xf32, #tpu.memory_space<smem>>
    %168 = vector.broadcast %167 : f32 to vector<8x16xf32>
    %169 = arith.mulf %166, %168 : vector<8x16xf32>
    %170 = arith.addf %164, %169 : vector<8x16xf32>
    %c1_146 = arith.constant 1 : index
    %c0_147 = arith.constant 0 : index
    %c0_148 = arith.constant 0 : index
    %171 = vector.load %arg14[%c1_146, %c0_147, %c0_148] : memref<8x8x16xf32, #tpu.memory_space<vmem>>, vector<1x8x16xf32>
    %172 = vector.shape_cast %171 : vector<1x8x16xf32> to vector<8x16xf32>
    %173 = vector.shape_cast %170 : vector<8x16xf32> to vector<1x8x16xf32>
    tpu.vector_store %arg14[%c1_146, %c0_147, %c0_148], %173 {strides = array<i32>} : memref<8x8x16xf32, #tpu.memory_space<vmem>>, vector<1x8x16xf32>,
    %174 = arith.addf %119, %170 : vector<8x16xf32>
    %175 = arith.mulf %170, %170 : vector<8x16xf32>
    %176 = arith.addf %123, %175 : vector<8x16xf32>
    %c0_149 = arith.constant 0 : index
    %c0_150 = arith.constant 0 : index
    %c0_151 = arith.constant 0 : index
    %177 = vector.load %arg13[%c0_149, %c0_150, %c0_151] : memref<8x8x16xf32, #tpu.memory_space<vmem>>, vector<1x8x16xf32>
    %178 = vector.shape_cast %177 : vector<1x8x16xf32> to vector<8x16xf32>
    %c0_152 = arith.constant 0 : index
    %c2_153 = arith.constant 2 : index
    %179 = memref.load %arg2[%c0_152, %c2_153] : memref<8x8xf32, #tpu.memory_space<smem>>
    %180 = vector.broadcast %179 : f32 to vector<8x16xf32>
    %181 = arith.mulf %178, %180 : vector<8x16xf32>
    %c1_154 = arith.constant 1 : index
    %c0_155 = arith.constant 0 : index
    %c0_156 = arith.constant 0 : index
    %182 = vector.load %arg13[%c1_154, %c0_155, %c0_156] : memref<8x8x16xf32, #tpu.memory_space<vmem>>, vector<1x8x16xf32>
    %183 = vector.shape_cast %182 : vector<1x8x16xf32> to vector<8x16xf32>
    %c1_157 = arith.constant 1 : index
    %c2_158 = arith.constant 2 : index
    %184 = memref.load %arg2[%c1_157, %c2_158] : memref<8x8xf32, #tpu.memory_space<smem>>
    %185 = vector.broadcast %184 : f32 to vector<8x16xf32>
    %186 = arith.mulf %183, %185 : vector<8x16xf32>
    %187 = arith.addf %181, %186 : vector<8x16xf32>
    %c2_159 = arith.constant 2 : index
    %c0_160 = arith.constant 0 : index
    %c0_161 = arith.constant 0 : index
    %188 = vector.load %arg13[%c2_159, %c0_160, %c0_161] : memref<8x8x16xf32, #tpu.memory_space<vmem>>, vector<1x8x16xf32>
    %189 = vector.shape_cast %188 : vector<1x8x16xf32> to vector<8x16xf32>
    %c2_162 = arith.constant 2 : index
    %c2_163 = arith.constant 2 : index
    %190 = memref.load %arg2[%c2_162, %c2_163] : memref<8x8xf32, #tpu.memory_space<smem>>
    %191 = vector.broadcast %190 : f32 to vector<8x16xf32>
    %192 = arith.mulf %189, %191 : vector<8x16xf32>
    %193 = arith.addf %187, %192 : vector<8x16xf32>
    %c3_164 = arith.constant 3 : index
    %c0_165 = arith.constant 0 : index
    %c0_166 = arith.constant 0 : index
    %194 = vector.load %arg13[%c3_164, %c0_165, %c0_166] : memref<8x8x16xf32, #tpu.memory_space<vmem>>, vector<1x8x16xf32>
    %195 = vector.shape_cast %194 : vector<1x8x16xf32> to vector<8x16xf32>
    %c3_167 = arith.constant 3 : index
    %c2_168 = arith.constant 2 : index
    %196 = memref.load %arg2[%c3_167, %c2_168] : memref<8x8xf32, #tpu.memory_space<smem>>
    %197 = vector.broadcast %196 : f32 to vector<8x16xf32>
    %198 = arith.mulf %195, %197 : vector<8x16xf32>
    %199 = arith.addf %193, %198 : vector<8x16xf32>
    %c4_169 = arith.constant 4 : index
    %c0_170 = arith.constant 0 : index
    %c0_171 = arith.constant 0 : index
    %200 = vector.load %arg13[%c4_169, %c0_170, %c0_171] : memref<8x8x16xf32, #tpu.memory_space<vmem>>, vector<1x8x16xf32>
    %201 = vector.shape_cast %200 : vector<1x8x16xf32> to vector<8x16xf32>
    %c4_172 = arith.constant 4 : index
    %c2_173 = arith.constant 2 : index
    %202 = memref.load %arg2[%c4_172, %c2_173] : memref<8x8xf32, #tpu.memory_space<smem>>
    %203 = vector.broadcast %202 : f32 to vector<8x16xf32>
    %204 = arith.mulf %201, %203 : vector<8x16xf32>
    %205 = arith.addf %199, %204 : vector<8x16xf32>
    %c5_174 = arith.constant 5 : index
    %c0_175 = arith.constant 0 : index
    %c0_176 = arith.constant 0 : index
    %206 = vector.load %arg13[%c5_174, %c0_175, %c0_176] : memref<8x8x16xf32, #tpu.memory_space<vmem>>, vector<1x8x16xf32>
    %207 = vector.shape_cast %206 : vector<1x8x16xf32> to vector<8x16xf32>
    %c5_177 = arith.constant 5 : index
    %c2_178 = arith.constant 2 : index
    %208 = memref.load %arg2[%c5_177, %c2_178] : memref<8x8xf32, #tpu.memory_space<smem>>
    %209 = vector.broadcast %208 : f32 to vector<8x16xf32>
    %210 = arith.mulf %207, %209 : vector<8x16xf32>
    %211 = arith.addf %205, %210 : vector<8x16xf32>
    %c6_179 = arith.constant 6 : index
    %c0_180 = arith.constant 0 : index
    %c0_181 = arith.constant 0 : index
    %212 = vector.load %arg13[%c6_179, %c0_180, %c0_181] : memref<8x8x16xf32, #tpu.memory_space<vmem>>, vector<1x8x16xf32>
    %213 = vector.shape_cast %212 : vector<1x8x16xf32> to vector<8x16xf32>
    %c6_182 = arith.constant 6 : index
    %c2_183 = arith.constant 2 : index
    %214 = memref.load %arg2[%c6_182, %c2_183] : memref<8x8xf32, #tpu.memory_space<smem>>
    %215 = vector.broadcast %214 : f32 to vector<8x16xf32>
    %216 = arith.mulf %213, %215 : vector<8x16xf32>
    %217 = arith.addf %211, %216 : vector<8x16xf32>
    %c7_184 = arith.constant 7 : index
    %c0_185 = arith.constant 0 : index
    %c0_186 = arith.constant 0 : index
    %218 = vector.load %arg13[%c7_184, %c0_185, %c0_186] : memref<8x8x16xf32, #tpu.memory_space<vmem>>, vector<1x8x16xf32>
    %219 = vector.shape_cast %218 : vector<1x8x16xf32> to vector<8x16xf32>
    %c7_187 = arith.constant 7 : index
    %c2_188 = arith.constant 2 : index
    %220 = memref.load %arg2[%c7_187, %c2_188] : memref<8x8xf32, #tpu.memory_space<smem>>
    %221 = vector.broadcast %220 : f32 to vector<8x16xf32>
    %222 = arith.mulf %219, %221 : vector<8x16xf32>
    %223 = arith.addf %217, %222 : vector<8x16xf32>
    %c2_189 = arith.constant 2 : index
    %c0_190 = arith.constant 0 : index
    %c0_191 = arith.constant 0 : index
    %224 = vector.load %arg14[%c2_189, %c0_190, %c0_191] : memref<8x8x16xf32, #tpu.memory_space<vmem>>, vector<1x8x16xf32>
    %225 = vector.shape_cast %224 : vector<1x8x16xf32> to vector<8x16xf32>
    %226 = vector.shape_cast %223 : vector<8x16xf32> to vector<1x8x16xf32>
    tpu.vector_store %arg14[%c2_189, %c0_190, %c0_191], %226 {strides = array<i32>} : memref<8x8x16xf32, #tpu.memory_space<vmem>>, vector<1x8x16xf32>,
    %227 = arith.addf %174, %223 : vector<8x16xf32>
    %228 = arith.mulf %223, %223 : vector<8x16xf32>
    %229 = arith.addf %176, %228 : vector<8x16xf32>
    %c0_192 = arith.constant 0 : index
    %c0_193 = arith.constant 0 : index
    %c0_194 = arith.constant 0 : index
    %230 = vector.load %arg13[%c0_192, %c0_193, %c0_194] : memref<8x8x16xf32, #tpu.memory_space<vmem>>, vector<1x8x16xf32>
    %231 = vector.shape_cast %230 : vector<1x8x16xf32> to vector<8x16xf32>
    %c0_195 = arith.constant 0 : index
    %c3_196 = arith.constant 3 : index
    %232 = memref.load %arg2[%c0_195, %c3_196] : memref<8x8xf32, #tpu.memory_space<smem>>
    %233 = vector.broadcast %232 : f32 to vector<8x16xf32>
    %234 = arith.mulf %231, %233 : vector<8x16xf32>
    %c1_197 = arith.constant 1 : index
    %c0_198 = arith.constant 0 : index
    %c0_199 = arith.constant 0 : index
    %235 = vector.load %arg13[%c1_197, %c0_198, %c0_199] : memref<8x8x16xf32, #tpu.memory_space<vmem>>, vector<1x8x16xf32>
    %236 = vector.shape_cast %235 : vector<1x8x16xf32> to vector<8x16xf32>
    %c1_200 = arith.constant 1 : index
    %c3_201 = arith.constant 3 : index
    %237 = memref.load %arg2[%c1_200, %c3_201] : memref<8x8xf32, #tpu.memory_space<smem>>
    %238 = vector.broadcast %237 : f32 to vector<8x16xf32>
    %239 = arith.mulf %236, %238 : vector<8x16xf32>
    %240 = arith.addf %234, %239 : vector<8x16xf32>
    %c2_202 = arith.constant 2 : index
    %c0_203 = arith.constant 0 : index
    %c0_204 = arith.constant 0 : index
    %241 = vector.load %arg13[%c2_202, %c0_203, %c0_204] : memref<8x8x16xf32, #tpu.memory_space<vmem>>, vector<1x8x16xf32>
    %242 = vector.shape_cast %241 : vector<1x8x16xf32> to vector<8x16xf32>
    %c2_205 = arith.constant 2 : index
    %c3_206 = arith.constant 3 : index
    %243 = memref.load %arg2[%c2_205, %c3_206] : memref<8x8xf32, #tpu.memory_space<smem>>
    %244 = vector.broadcast %243 : f32 to vector<8x16xf32>
    %245 = arith.mulf %242, %244 : vector<8x16xf32>
    %246 = arith.addf %240, %245 : vector<8x16xf32>
    %c3_207 = arith.constant 3 : index
    %c0_208 = arith.constant 0 : index
    %c0_209 = arith.constant 0 : index
    %247 = vector.load %arg13[%c3_207, %c0_208, %c0_209] : memref<8x8x16xf32, #tpu.memory_space<vmem>>, vector<1x8x16xf32>
    %248 = vector.shape_cast %247 : vector<1x8x16xf32> to vector<8x16xf32>
    %c3_210 = arith.constant 3 : index
    %c3_211 = arith.constant 3 : index
    %249 = memref.load %arg2[%c3_210, %c3_211] : memref<8x8xf32, #tpu.memory_space<smem>>
    %250 = vector.broadcast %249 : f32 to vector<8x16xf32>
    %251 = arith.mulf %248, %250 : vector<8x16xf32>
    %252 = arith.addf %246, %251 : vector<8x16xf32>
    %c4_212 = arith.constant 4 : index
    %c0_213 = arith.constant 0 : index
    %c0_214 = arith.constant 0 : index
    %253 = vector.load %arg13[%c4_212, %c0_213, %c0_214] : memref<8x8x16xf32, #tpu.memory_space<vmem>>, vector<1x8x16xf32>
    %254 = vector.shape_cast %253 : vector<1x8x16xf32> to vector<8x16xf32>
    %c4_215 = arith.constant 4 : index
    %c3_216 = arith.constant 3 : index
    %255 = memref.load %arg2[%c4_215, %c3_216] : memref<8x8xf32, #tpu.memory_space<smem>>
    %256 = vector.broadcast %255 : f32 to vector<8x16xf32>
    %257 = arith.mulf %254, %256 : vector<8x16xf32>
    %258 = arith.addf %252, %257 : vector<8x16xf32>
    %c5_217 = arith.constant 5 : index
    %c0_218 = arith.constant 0 : index
    %c0_219 = arith.constant 0 : index
    %259 = vector.load %arg13[%c5_217, %c0_218, %c0_219] : memref<8x8x16xf32, #tpu.memory_space<vmem>>, vector<1x8x16xf32>
    %260 = vector.shape_cast %259 : vector<1x8x16xf32> to vector<8x16xf32>
    %c5_220 = arith.constant 5 : index
    %c3_221 = arith.constant 3 : index
    %261 = memref.load %arg2[%c5_220, %c3_221] : memref<8x8xf32, #tpu.memory_space<smem>>
    %262 = vector.broadcast %261 : f32 to vector<8x16xf32>
    %263 = arith.mulf %260, %262 : vector<8x16xf32>
    %264 = arith.addf %258, %263 : vector<8x16xf32>
    %c6_222 = arith.constant 6 : index
    %c0_223 = arith.constant 0 : index
    %c0_224 = arith.constant 0 : index
    %265 = vector.load %arg13[%c6_222, %c0_223, %c0_224] : memref<8x8x16xf32, #tpu.memory_space<vmem>>, vector<1x8x16xf32>
    %266 = vector.shape_cast %265 : vector<1x8x16xf32> to vector<8x16xf32>
    %c6_225 = arith.constant 6 : index
    %c3_226 = arith.constant 3 : index
    %267 = memref.load %arg2[%c6_225, %c3_226] : memref<8x8xf32, #tpu.memory_space<smem>>
    %268 = vector.broadcast %267 : f32 to vector<8x16xf32>
    %269 = arith.mulf %266, %268 : vector<8x16xf32>
    %270 = arith.addf %264, %269 : vector<8x16xf32>
    %c7_227 = arith.constant 7 : index
    %c0_228 = arith.constant 0 : index
    %c0_229 = arith.constant 0 : index
    %271 = vector.load %arg13[%c7_227, %c0_228, %c0_229] : memref<8x8x16xf32, #tpu.memory_space<vmem>>, vector<1x8x16xf32>
    %272 = vector.shape_cast %271 : vector<1x8x16xf32> to vector<8x16xf32>
    %c7_230 = arith.constant 7 : index
    %c3_231 = arith.constant 3 : index
    %273 = memref.load %arg2[%c7_230, %c3_231] : memref<8x8xf32, #tpu.memory_space<smem>>
    %274 = vector.broadcast %273 : f32 to vector<8x16xf32>
    %275 = arith.mulf %272, %274 : vector<8x16xf32>
    %276 = arith.addf %270, %275 : vector<8x16xf32>
    %c3_232 = arith.constant 3 : index
    %c0_233 = arith.constant 0 : index
    %c0_234 = arith.constant 0 : index
    %277 = vector.load %arg14[%c3_232, %c0_233, %c0_234] : memref<8x8x16xf32, #tpu.memory_space<vmem>>, vector<1x8x16xf32>
    %278 = vector.shape_cast %277 : vector<1x8x16xf32> to vector<8x16xf32>
    %279 = vector.shape_cast %276 : vector<8x16xf32> to vector<1x8x16xf32>
    tpu.vector_store %arg14[%c3_232, %c0_233, %c0_234], %279 {strides = array<i32>} : memref<8x8x16xf32, #tpu.memory_space<vmem>>, vector<1x8x16xf32>,
    %280 = arith.addf %227, %276 : vector<8x16xf32>
    %281 = arith.mulf %276, %276 : vector<8x16xf32>
    %282 = arith.addf %229, %281 : vector<8x16xf32>
    %c0_235 = arith.constant 0 : index
    %c0_236 = arith.constant 0 : index
    %c0_237 = arith.constant 0 : index
    %283 = vector.load %arg13[%c0_235, %c0_236, %c0_237] : memref<8x8x16xf32, #tpu.memory_space<vmem>>, vector<1x8x16xf32>
    %284 = vector.shape_cast %283 : vector<1x8x16xf32> to vector<8x16xf32>
    %c0_238 = arith.constant 0 : index
    %c4_239 = arith.constant 4 : index
    %285 = memref.load %arg2[%c0_238, %c4_239] : memref<8x8xf32, #tpu.memory_space<smem>>
    %286 = vector.broadcast %285 : f32 to vector<8x16xf32>
    %287 = arith.mulf %284, %286 : vector<8x16xf32>
    %c1_240 = arith.constant 1 : index
    %c0_241 = arith.constant 0 : index
    %c0_242 = arith.constant 0 : index
    %288 = vector.load %arg13[%c1_240, %c0_241, %c0_242] : memref<8x8x16xf32, #tpu.memory_space<vmem>>, vector<1x8x16xf32>
    %289 = vector.shape_cast %288 : vector<1x8x16xf32> to vector<8x16xf32>
    %c1_243 = arith.constant 1 : index
    %c4_244 = arith.constant 4 : index
    %290 = memref.load %arg2[%c1_243, %c4_244] : memref<8x8xf32, #tpu.memory_space<smem>>
    %291 = vector.broadcast %290 : f32 to vector<8x16xf32>
    %292 = arith.mulf %289, %291 : vector<8x16xf32>
    %293 = arith.addf %287, %292 : vector<8x16xf32>
    %c2_245 = arith.constant 2 : index
    %c0_246 = arith.constant 0 : index
    %c0_247 = arith.constant 0 : index
    %294 = vector.load %arg13[%c2_245, %c0_246, %c0_247] : memref<8x8x16xf32, #tpu.memory_space<vmem>>, vector<1x8x16xf32>
    %295 = vector.shape_cast %294 : vector<1x8x16xf32> to vector<8x16xf32>
    %c2_248 = arith.constant 2 : index
    %c4_249 = arith.constant 4 : index
    %296 = memref.load %arg2[%c2_248, %c4_249] : memref<8x8xf32, #tpu.memory_space<smem>>
    %297 = vector.broadcast %296 : f32 to vector<8x16xf32>
    %298 = arith.mulf %295, %297 : vector<8x16xf32>
    %299 = arith.addf %293, %298 : vector<8x16xf32>
    %c3_250 = arith.constant 3 : index
    %c0_251 = arith.constant 0 : index
    %c0_252 = arith.constant 0 : index
    %300 = vector.load %arg13[%c3_250, %c0_251, %c0_252] : memref<8x8x16xf32, #tpu.memory_space<vmem>>, vector<1x8x16xf32>
    %301 = vector.shape_cast %300 : vector<1x8x16xf32> to vector<8x16xf32>
    %c3_253 = arith.constant 3 : index
    %c4_254 = arith.constant 4 : index
    %302 = memref.load %arg2[%c3_253, %c4_254] : memref<8x8xf32, #tpu.memory_space<smem>>
    %303 = vector.broadcast %302 : f32 to vector<8x16xf32>
    %304 = arith.mulf %301, %303 : vector<8x16xf32>
    %305 = arith.addf %299, %304 : vector<8x16xf32>
    %c4_255 = arith.constant 4 : index
    %c0_256 = arith.constant 0 : index
    %c0_257 = arith.constant 0 : index
    %306 = vector.load %arg13[%c4_255, %c0_256, %c0_257] : memref<8x8x16xf32, #tpu.memory_space<vmem>>, vector<1x8x16xf32>
    %307 = vector.shape_cast %306 : vector<1x8x16xf32> to vector<8x16xf32>
    %c4_258 = arith.constant 4 : index
    %c4_259 = arith.constant 4 : index
    %308 = memref.load %arg2[%c4_258, %c4_259] : memref<8x8xf32, #tpu.memory_space<smem>>
    %309 = vector.broadcast %308 : f32 to vector<8x16xf32>
    %310 = arith.mulf %307, %309 : vector<8x16xf32>
    %311 = arith.addf %305, %310 : vector<8x16xf32>
    %c5_260 = arith.constant 5 : index
    %c0_261 = arith.constant 0 : index
    %c0_262 = arith.constant 0 : index
    %312 = vector.load %arg13[%c5_260, %c0_261, %c0_262] : memref<8x8x16xf32, #tpu.memory_space<vmem>>, vector<1x8x16xf32>
    %313 = vector.shape_cast %312 : vector<1x8x16xf32> to vector<8x16xf32>
    %c5_263 = arith.constant 5 : index
    %c4_264 = arith.constant 4 : index
    %314 = memref.load %arg2[%c5_263, %c4_264] : memref<8x8xf32, #tpu.memory_space<smem>>
    %315 = vector.broadcast %314 : f32 to vector<8x16xf32>
    %316 = arith.mulf %313, %315 : vector<8x16xf32>
    %317 = arith.addf %311, %316 : vector<8x16xf32>
    %c6_265 = arith.constant 6 : index
    %c0_266 = arith.constant 0 : index
    %c0_267 = arith.constant 0 : index
    %318 = vector.load %arg13[%c6_265, %c0_266, %c0_267] : memref<8x8x16xf32, #tpu.memory_space<vmem>>, vector<1x8x16xf32>
    %319 = vector.shape_cast %318 : vector<1x8x16xf32> to vector<8x16xf32>
    %c6_268 = arith.constant 6 : index
    %c4_269 = arith.constant 4 : index
    %320 = memref.load %arg2[%c6_268, %c4_269] : memref<8x8xf32, #tpu.memory_space<smem>>
    %321 = vector.broadcast %320 : f32 to vector<8x16xf32>
    %322 = arith.mulf %319, %321 : vector<8x16xf32>
    %323 = arith.addf %317, %322 : vector<8x16xf32>
    %c7_270 = arith.constant 7 : index
    %c0_271 = arith.constant 0 : index
    %c0_272 = arith.constant 0 : index
    %324 = vector.load %arg13[%c7_270, %c0_271, %c0_272] : memref<8x8x16xf32, #tpu.memory_space<vmem>>, vector<1x8x16xf32>
    %325 = vector.shape_cast %324 : vector<1x8x16xf32> to vector<8x16xf32>
    %c7_273 = arith.constant 7 : index
    %c4_274 = arith.constant 4 : index
    %326 = memref.load %arg2[%c7_273, %c4_274] : memref<8x8xf32, #tpu.memory_space<smem>>
    %327 = vector.broadcast %326 : f32 to vector<8x16xf32>
    %328 = arith.mulf %325, %327 : vector<8x16xf32>
    %329 = arith.addf %323, %328 : vector<8x16xf32>
    %c4_275 = arith.constant 4 : index
    %c0_276 = arith.constant 0 : index
    %c0_277 = arith.constant 0 : index
    %330 = vector.load %arg14[%c4_275, %c0_276, %c0_277] : memref<8x8x16xf32, #tpu.memory_space<vmem>>, vector<1x8x16xf32>
    %331 = vector.shape_cast %330 : vector<1x8x16xf32> to vector<8x16xf32>
    %332 = vector.shape_cast %329 : vector<8x16xf32> to vector<1x8x16xf32>
    tpu.vector_store %arg14[%c4_275, %c0_276, %c0_277], %332 {strides = array<i32>} : memref<8x8x16xf32, #tpu.memory_space<vmem>>, vector<1x8x16xf32>,
    %333 = arith.addf %280, %329 : vector<8x16xf32>
    %334 = arith.mulf %329, %329 : vector<8x16xf32>
    %335 = arith.addf %282, %334 : vector<8x16xf32>
    %c0_278 = arith.constant 0 : index
    %c0_279 = arith.constant 0 : index
    %c0_280 = arith.constant 0 : index
    %336 = vector.load %arg13[%c0_278, %c0_279, %c0_280] : memref<8x8x16xf32, #tpu.memory_space<vmem>>, vector<1x8x16xf32>
    %337 = vector.shape_cast %336 : vector<1x8x16xf32> to vector<8x16xf32>
    %c0_281 = arith.constant 0 : index
    %c5_282 = arith.constant 5 : index
    %338 = memref.load %arg2[%c0_281, %c5_282] : memref<8x8xf32, #tpu.memory_space<smem>>
    %339 = vector.broadcast %338 : f32 to vector<8x16xf32>
    %340 = arith.mulf %337, %339 : vector<8x16xf32>
    %c1_283 = arith.constant 1 : index
    %c0_284 = arith.constant 0 : index
    %c0_285 = arith.constant 0 : index
    %341 = vector.load %arg13[%c1_283, %c0_284, %c0_285] : memref<8x8x16xf32, #tpu.memory_space<vmem>>, vector<1x8x16xf32>
    %342 = vector.shape_cast %341 : vector<1x8x16xf32> to vector<8x16xf32>
    %c1_286 = arith.constant 1 : index
    %c5_287 = arith.constant 5 : index
    %343 = memref.load %arg2[%c1_286, %c5_287] : memref<8x8xf32, #tpu.memory_space<smem>>
    %344 = vector.broadcast %343 : f32 to vector<8x16xf32>
    %345 = arith.mulf %342, %344 : vector<8x16xf32>
    %346 = arith.addf %340, %345 : vector<8x16xf32>
    %c2_288 = arith.constant 2 : index
    %c0_289 = arith.constant 0 : index
    %c0_290 = arith.constant 0 : index
    %347 = vector.load %arg13[%c2_288, %c0_289, %c0_290] : memref<8x8x16xf32, #tpu.memory_space<vmem>>, vector<1x8x16xf32>
    %348 = vector.shape_cast %347 : vector<1x8x16xf32> to vector<8x16xf32>
    %c2_291 = arith.constant 2 : index
    %c5_292 = arith.constant 5 : index
    %349 = memref.load %arg2[%c2_291, %c5_292] : memref<8x8xf32, #tpu.memory_space<smem>>
    %350 = vector.broadcast %349 : f32 to vector<8x16xf32>
    %351 = arith.mulf %348, %350 : vector<8x16xf32>
    %352 = arith.addf %346, %351 : vector<8x16xf32>
    %c3_293 = arith.constant 3 : index
    %c0_294 = arith.constant 0 : index
    %c0_295 = arith.constant 0 : index
    %353 = vector.load %arg13[%c3_293, %c0_294, %c0_295] : memref<8x8x16xf32, #tpu.memory_space<vmem>>, vector<1x8x16xf32>
    %354 = vector.shape_cast %353 : vector<1x8x16xf32> to vector<8x16xf32>
    %c3_296 = arith.constant 3 : index
    %c5_297 = arith.constant 5 : index
    %355 = memref.load %arg2[%c3_296, %c5_297] : memref<8x8xf32, #tpu.memory_space<smem>>
    %356 = vector.broadcast %355 : f32 to vector<8x16xf32>
    %357 = arith.mulf %354, %356 : vector<8x16xf32>
    %358 = arith.addf %352, %357 : vector<8x16xf32>
    %c4_298 = arith.constant 4 : index
    %c0_299 = arith.constant 0 : index
    %c0_300 = arith.constant 0 : index
    %359 = vector.load %arg13[%c4_298, %c0_299, %c0_300] : memref<8x8x16xf32, #tpu.memory_space<vmem>>, vector<1x8x16xf32>
    %360 = vector.shape_cast %359 : vector<1x8x16xf32> to vector<8x16xf32>
    %c4_301 = arith.constant 4 : index
    %c5_302 = arith.constant 5 : index
    %361 = memref.load %arg2[%c4_301, %c5_302] : memref<8x8xf32, #tpu.memory_space<smem>>
    %362 = vector.broadcast %361 : f32 to vector<8x16xf32>
    %363 = arith.mulf %360, %362 : vector<8x16xf32>
    %364 = arith.addf %358, %363 : vector<8x16xf32>
    %c5_303 = arith.constant 5 : index
    %c0_304 = arith.constant 0 : index
    %c0_305 = arith.constant 0 : index
    %365 = vector.load %arg13[%c5_303, %c0_304, %c0_305] : memref<8x8x16xf32, #tpu.memory_space<vmem>>, vector<1x8x16xf32>
    %366 = vector.shape_cast %365 : vector<1x8x16xf32> to vector<8x16xf32>
    %c5_306 = arith.constant 5 : index
    %c5_307 = arith.constant 5 : index
    %367 = memref.load %arg2[%c5_306, %c5_307] : memref<8x8xf32, #tpu.memory_space<smem>>
    %368 = vector.broadcast %367 : f32 to vector<8x16xf32>
    %369 = arith.mulf %366, %368 : vector<8x16xf32>
    %370 = arith.addf %364, %369 : vector<8x16xf32>
    %c6_308 = arith.constant 6 : index
    %c0_309 = arith.constant 0 : index
    %c0_310 = arith.constant 0 : index
    %371 = vector.load %arg13[%c6_308, %c0_309, %c0_310] : memref<8x8x16xf32, #tpu.memory_space<vmem>>, vector<1x8x16xf32>
    %372 = vector.shape_cast %371 : vector<1x8x16xf32> to vector<8x16xf32>
    %c6_311 = arith.constant 6 : index
    %c5_312 = arith.constant 5 : index
    %373 = memref.load %arg2[%c6_311, %c5_312] : memref<8x8xf32, #tpu.memory_space<smem>>
    %374 = vector.broadcast %373 : f32 to vector<8x16xf32>
    %375 = arith.mulf %372, %374 : vector<8x16xf32>
    %376 = arith.addf %370, %375 : vector<8x16xf32>
    %c7_313 = arith.constant 7 : index
    %c0_314 = arith.constant 0 : index
    %c0_315 = arith.constant 0 : index
    %377 = vector.load %arg13[%c7_313, %c0_314, %c0_315] : memref<8x8x16xf32, #tpu.memory_space<vmem>>, vector<1x8x16xf32>
    %378 = vector.shape_cast %377 : vector<1x8x16xf32> to vector<8x16xf32>
    %c7_316 = arith.constant 7 : index
    %c5_317 = arith.constant 5 : index
    %379 = memref.load %arg2[%c7_316, %c5_317] : memref<8x8xf32, #tpu.memory_space<smem>>
    %380 = vector.broadcast %379 : f32 to vector<8x16xf32>
    %381 = arith.mulf %378, %380 : vector<8x16xf32>
    %382 = arith.addf %376, %381 : vector<8x16xf32>
    %c5_318 = arith.constant 5 : index
    %c0_319 = arith.constant 0 : index
    %c0_320 = arith.constant 0 : index
    %383 = vector.load %arg14[%c5_318, %c0_319, %c0_320] : memref<8x8x16xf32, #tpu.memory_space<vmem>>, vector<1x8x16xf32>
    %384 = vector.shape_cast %383 : vector<1x8x16xf32> to vector<8x16xf32>
    %385 = vector.shape_cast %382 : vector<8x16xf32> to vector<1x8x16xf32>
    tpu.vector_store %arg14[%c5_318, %c0_319, %c0_320], %385 {strides = array<i32>} : memref<8x8x16xf32, #tpu.memory_space<vmem>>, vector<1x8x16xf32>,
    %386 = arith.addf %333, %382 : vector<8x16xf32>
    %387 = arith.mulf %382, %382 : vector<8x16xf32>
    %388 = arith.addf %335, %387 : vector<8x16xf32>
    %c0_321 = arith.constant 0 : index
    %c0_322 = arith.constant 0 : index
    %c0_323 = arith.constant 0 : index
    %389 = vector.load %arg13[%c0_321, %c0_322, %c0_323] : memref<8x8x16xf32, #tpu.memory_space<vmem>>, vector<1x8x16xf32>
    %390 = vector.shape_cast %389 : vector<1x8x16xf32> to vector<8x16xf32>
    %c0_324 = arith.constant 0 : index
    %c6_325 = arith.constant 6 : index
    %391 = memref.load %arg2[%c0_324, %c6_325] : memref<8x8xf32, #tpu.memory_space<smem>>
    %392 = vector.broadcast %391 : f32 to vector<8x16xf32>
    %393 = arith.mulf %390, %392 : vector<8x16xf32>
    %c1_326 = arith.constant 1 : index
    %c0_327 = arith.constant 0 : index
    %c0_328 = arith.constant 0 : index
    %394 = vector.load %arg13[%c1_326, %c0_327, %c0_328] : memref<8x8x16xf32, #tpu.memory_space<vmem>>, vector<1x8x16xf32>
    %395 = vector.shape_cast %394 : vector<1x8x16xf32> to vector<8x16xf32>
    %c1_329 = arith.constant 1 : index
    %c6_330 = arith.constant 6 : index
    %396 = memref.load %arg2[%c1_329, %c6_330] : memref<8x8xf32, #tpu.memory_space<smem>>
    %397 = vector.broadcast %396 : f32 to vector<8x16xf32>
    %398 = arith.mulf %395, %397 : vector<8x16xf32>
    %399 = arith.addf %393, %398 : vector<8x16xf32>
    %c2_331 = arith.constant 2 : index
    %c0_332 = arith.constant 0 : index
    %c0_333 = arith.constant 0 : index
    %400 = vector.load %arg13[%c2_331, %c0_332, %c0_333] : memref<8x8x16xf32, #tpu.memory_space<vmem>>, vector<1x8x16xf32>
    %401 = vector.shape_cast %400 : vector<1x8x16xf32> to vector<8x16xf32>
    %c2_334 = arith.constant 2 : index
    %c6_335 = arith.constant 6 : index
    %402 = memref.load %arg2[%c2_334, %c6_335] : memref<8x8xf32, #tpu.memory_space<smem>>
    %403 = vector.broadcast %402 : f32 to vector<8x16xf32>
    %404 = arith.mulf %401, %403 : vector<8x16xf32>
    %405 = arith.addf %399, %404 : vector<8x16xf32>
    %c3_336 = arith.constant 3 : index
    %c0_337 = arith.constant 0 : index
    %c0_338 = arith.constant 0 : index
    %406 = vector.load %arg13[%c3_336, %c0_337, %c0_338] : memref<8x8x16xf32, #tpu.memory_space<vmem>>, vector<1x8x16xf32>
    %407 = vector.shape_cast %406 : vector<1x8x16xf32> to vector<8x16xf32>
    %c3_339 = arith.constant 3 : index
    %c6_340 = arith.constant 6 : index
    %408 = memref.load %arg2[%c3_339, %c6_340] : memref<8x8xf32, #tpu.memory_space<smem>>
    %409 = vector.broadcast %408 : f32 to vector<8x16xf32>
    %410 = arith.mulf %407, %409 : vector<8x16xf32>
    %411 = arith.addf %405, %410 : vector<8x16xf32>
    %c4_341 = arith.constant 4 : index
    %c0_342 = arith.constant 0 : index
    %c0_343 = arith.constant 0 : index
    %412 = vector.load %arg13[%c4_341, %c0_342, %c0_343] : memref<8x8x16xf32, #tpu.memory_space<vmem>>, vector<1x8x16xf32>
    %413 = vector.shape_cast %412 : vector<1x8x16xf32> to vector<8x16xf32>
    %c4_344 = arith.constant 4 : index
    %c6_345 = arith.constant 6 : index
    %414 = memref.load %arg2[%c4_344, %c6_345] : memref<8x8xf32, #tpu.memory_space<smem>>
    %415 = vector.broadcast %414 : f32 to vector<8x16xf32>
    %416 = arith.mulf %413, %415 : vector<8x16xf32>
    %417 = arith.addf %411, %416 : vector<8x16xf32>
    %c5_346 = arith.constant 5 : index
    %c0_347 = arith.constant 0 : index
    %c0_348 = arith.constant 0 : index
    %418 = vector.load %arg13[%c5_346, %c0_347, %c0_348] : memref<8x8x16xf32, #tpu.memory_space<vmem>>, vector<1x8x16xf32>
    %419 = vector.shape_cast %418 : vector<1x8x16xf32> to vector<8x16xf32>
    %c5_349 = arith.constant 5 : index
    %c6_350 = arith.constant 6 : index
    %420 = memref.load %arg2[%c5_349, %c6_350] : memref<8x8xf32, #tpu.memory_space<smem>>
    %421 = vector.broadcast %420 : f32 to vector<8x16xf32>
    %422 = arith.mulf %419, %421 : vector<8x16xf32>
    %423 = arith.addf %417, %422 : vector<8x16xf32>
    %c6_351 = arith.constant 6 : index
    %c0_352 = arith.constant 0 : index
    %c0_353 = arith.constant 0 : index
    %424 = vector.load %arg13[%c6_351, %c0_352, %c0_353] : memref<8x8x16xf32, #tpu.memory_space<vmem>>, vector<1x8x16xf32>
    %425 = vector.shape_cast %424 : vector<1x8x16xf32> to vector<8x16xf32>
    %c6_354 = arith.constant 6 : index
    %c6_355 = arith.constant 6 : index
    %426 = memref.load %arg2[%c6_354, %c6_355] : memref<8x8xf32, #tpu.memory_space<smem>>
    %427 = vector.broadcast %426 : f32 to vector<8x16xf32>
    %428 = arith.mulf %425, %427 : vector<8x16xf32>
    %429 = arith.addf %423, %428 : vector<8x16xf32>
    %c7_356 = arith.constant 7 : index
    %c0_357 = arith.constant 0 : index
    %c0_358 = arith.constant 0 : index
    %430 = vector.load %arg13[%c7_356, %c0_357, %c0_358] : memref<8x8x16xf32, #tpu.memory_space<vmem>>, vector<1x8x16xf32>
    %431 = vector.shape_cast %430 : vector<1x8x16xf32> to vector<8x16xf32>
    %c7_359 = arith.constant 7 : index
    %c6_360 = arith.constant 6 : index
    %432 = memref.load %arg2[%c7_359, %c6_360] : memref<8x8xf32, #tpu.memory_space<smem>>
    %433 = vector.broadcast %432 : f32 to vector<8x16xf32>
    %434 = arith.mulf %431, %433 : vector<8x16xf32>
    %435 = arith.addf %429, %434 : vector<8x16xf32>
    %c6_361 = arith.constant 6 : index
    %c0_362 = arith.constant 0 : index
    %c0_363 = arith.constant 0 : index
    %436 = vector.load %arg14[%c6_361, %c0_362, %c0_363] : memref<8x8x16xf32, #tpu.memory_space<vmem>>, vector<1x8x16xf32>
    %437 = vector.shape_cast %436 : vector<1x8x16xf32> to vector<8x16xf32>
    %438 = vector.shape_cast %435 : vector<8x16xf32> to vector<1x8x16xf32>
    tpu.vector_store %arg14[%c6_361, %c0_362, %c0_363], %438 {strides = array<i32>} : memref<8x8x16xf32, #tpu.memory_space<vmem>>, vector<1x8x16xf32>,
    %439 = arith.addf %386, %435 : vector<8x16xf32>
    %440 = arith.mulf %435, %435 : vector<8x16xf32>
    %441 = arith.addf %388, %440 : vector<8x16xf32>
    %c0_364 = arith.constant 0 : index
    %c0_365 = arith.constant 0 : index
    %c0_366 = arith.constant 0 : index
    %442 = vector.load %arg13[%c0_364, %c0_365, %c0_366] : memref<8x8x16xf32, #tpu.memory_space<vmem>>, vector<1x8x16xf32>
    %443 = vector.shape_cast %442 : vector<1x8x16xf32> to vector<8x16xf32>
    %c0_367 = arith.constant 0 : index
    %c7_368 = arith.constant 7 : index
    %444 = memref.load %arg2[%c0_367, %c7_368] : memref<8x8xf32, #tpu.memory_space<smem>>
    %445 = vector.broadcast %444 : f32 to vector<8x16xf32>
    %446 = arith.mulf %443, %445 : vector<8x16xf32>
    %c1_369 = arith.constant 1 : index
    %c0_370 = arith.constant 0 : index
    %c0_371 = arith.constant 0 : index
    %447 = vector.load %arg13[%c1_369, %c0_370, %c0_371] : memref<8x8x16xf32, #tpu.memory_space<vmem>>, vector<1x8x16xf32>
    %448 = vector.shape_cast %447 : vector<1x8x16xf32> to vector<8x16xf32>
    %c1_372 = arith.constant 1 : index
    %c7_373 = arith.constant 7 : index
    %449 = memref.load %arg2[%c1_372, %c7_373] : memref<8x8xf32, #tpu.memory_space<smem>>
    %450 = vector.broadcast %449 : f32 to vector<8x16xf32>
    %451 = arith.mulf %448, %450 : vector<8x16xf32>
    %452 = arith.addf %446, %451 : vector<8x16xf32>
    %c2_374 = arith.constant 2 : index
    %c0_375 = arith.constant 0 : index
    %c0_376 = arith.constant 0 : index
    %453 = vector.load %arg13[%c2_374, %c0_375, %c0_376] : memref<8x8x16xf32, #tpu.memory_space<vmem>>, vector<1x8x16xf32>
    %454 = vector.shape_cast %453 : vector<1x8x16xf32> to vector<8x16xf32>
    %c2_377 = arith.constant 2 : index
    %c7_378 = arith.constant 7 : index
    %455 = memref.load %arg2[%c2_377, %c7_378] : memref<8x8xf32, #tpu.memory_space<smem>>
    %456 = vector.broadcast %455 : f32 to vector<8x16xf32>
    %457 = arith.mulf %454, %456 : vector<8x16xf32>
    %458 = arith.addf %452, %457 : vector<8x16xf32>
    %c3_379 = arith.constant 3 : index
    %c0_380 = arith.constant 0 : index
    %c0_381 = arith.constant 0 : index
    %459 = vector.load %arg13[%c3_379, %c0_380, %c0_381] : memref<8x8x16xf32, #tpu.memory_space<vmem>>, vector<1x8x16xf32>
    %460 = vector.shape_cast %459 : vector<1x8x16xf32> to vector<8x16xf32>
    %c3_382 = arith.constant 3 : index
    %c7_383 = arith.constant 7 : index
    %461 = memref.load %arg2[%c3_382, %c7_383] : memref<8x8xf32, #tpu.memory_space<smem>>
    %462 = vector.broadcast %461 : f32 to vector<8x16xf32>
    %463 = arith.mulf %460, %462 : vector<8x16xf32>
    %464 = arith.addf %458, %463 : vector<8x16xf32>
    %c4_384 = arith.constant 4 : index
    %c0_385 = arith.constant 0 : index
    %c0_386 = arith.constant 0 : index
    %465 = vector.load %arg13[%c4_384, %c0_385, %c0_386] : memref<8x8x16xf32, #tpu.memory_space<vmem>>, vector<1x8x16xf32>
    %466 = vector.shape_cast %465 : vector<1x8x16xf32> to vector<8x16xf32>
    %c4_387 = arith.constant 4 : index
    %c7_388 = arith.constant 7 : index
    %467 = memref.load %arg2[%c4_387, %c7_388] : memref<8x8xf32, #tpu.memory_space<smem>>
    %468 = vector.broadcast %467 : f32 to vector<8x16xf32>
    %469 = arith.mulf %466, %468 : vector<8x16xf32>
    %470 = arith.addf %464, %469 : vector<8x16xf32>
    %c5_389 = arith.constant 5 : index
    %c0_390 = arith.constant 0 : index
    %c0_391 = arith.constant 0 : index
    %471 = vector.load %arg13[%c5_389, %c0_390, %c0_391] : memref<8x8x16xf32, #tpu.memory_space<vmem>>, vector<1x8x16xf32>
    %472 = vector.shape_cast %471 : vector<1x8x16xf32> to vector<8x16xf32>
    %c5_392 = arith.constant 5 : index
    %c7_393 = arith.constant 7 : index
    %473 = memref.load %arg2[%c5_392, %c7_393] : memref<8x8xf32, #tpu.memory_space<smem>>
    %474 = vector.broadcast %473 : f32 to vector<8x16xf32>
    %475 = arith.mulf %472, %474 : vector<8x16xf32>
    %476 = arith.addf %470, %475 : vector<8x16xf32>
    %c6_394 = arith.constant 6 : index
    %c0_395 = arith.constant 0 : index
    %c0_396 = arith.constant 0 : index
    %477 = vector.load %arg13[%c6_394, %c0_395, %c0_396] : memref<8x8x16xf32, #tpu.memory_space<vmem>>, vector<1x8x16xf32>
    %478 = vector.shape_cast %477 : vector<1x8x16xf32> to vector<8x16xf32>
    %c6_397 = arith.constant 6 : index
    %c7_398 = arith.constant 7 : index
    %479 = memref.load %arg2[%c6_397, %c7_398] : memref<8x8xf32, #tpu.memory_space<smem>>
    %480 = vector.broadcast %479 : f32 to vector<8x16xf32>
    %481 = arith.mulf %478, %480 : vector<8x16xf32>
    %482 = arith.addf %476, %481 : vector<8x16xf32>
    %c7_399 = arith.constant 7 : index
    %c0_400 = arith.constant 0 : index
    %c0_401 = arith.constant 0 : index
    %483 = vector.load %arg13[%c7_399, %c0_400, %c0_401] : memref<8x8x16xf32, #tpu.memory_space<vmem>>, vector<1x8x16xf32>
    %484 = vector.shape_cast %483 : vector<1x8x16xf32> to vector<8x16xf32>
    %c7_402 = arith.constant 7 : index
    %c7_403 = arith.constant 7 : index
    %485 = memref.load %arg2[%c7_402, %c7_403] : memref<8x8xf32, #tpu.memory_space<smem>>
    %486 = vector.broadcast %485 : f32 to vector<8x16xf32>
    %487 = arith.mulf %484, %486 : vector<8x16xf32>
    %488 = arith.addf %482, %487 : vector<8x16xf32>
    %c7_404 = arith.constant 7 : index
    %c0_405 = arith.constant 0 : index
    %c0_406 = arith.constant 0 : index
    %489 = vector.load %arg14[%c7_404, %c0_405, %c0_406] : memref<8x8x16xf32, #tpu.memory_space<vmem>>, vector<1x8x16xf32>
    %490 = vector.shape_cast %489 : vector<1x8x16xf32> to vector<8x16xf32>
    %491 = vector.shape_cast %488 : vector<8x16xf32> to vector<1x8x16xf32>
    tpu.vector_store %arg14[%c7_404, %c0_405, %c0_406], %491 {strides = array<i32>} : memref<8x8x16xf32, #tpu.memory_space<vmem>>, vector<1x8x16xf32>,
    %492 = arith.addf %439, %488 : vector<8x16xf32>
    %493 = arith.mulf %488, %488 : vector<8x16xf32>
    %494 = arith.addf %441, %493 : vector<8x16xf32>
    %cst_407 = arith.constant 1.250000e-01 : f32
    %495 = vector.broadcast %cst_407 : f32 to vector<8x16xf32>
    %496 = arith.mulf %492, %495 : vector<8x16xf32>
    %cst_408 = arith.constant 1.250000e-01 : f32
    %497 = vector.broadcast %cst_408 : f32 to vector<8x16xf32>
    %498 = arith.mulf %494, %497 : vector<8x16xf32>
    %499 = arith.mulf %496, %496 : vector<8x16xf32>
    %500 = arith.subf %498, %499 : vector<8x16xf32>
    %cst_409 = arith.constant 9.99999974E-6 : f32
    %501 = vector.broadcast %cst_409 : f32 to vector<8x16xf32>
    %502 = arith.addf %500, %501 : vector<8x16xf32>
    %503 = math.rsqrt %502 : vector<8x16xf32>
    %c0_410 = arith.constant 0 : index
    %c0_411 = arith.constant 0 : index
    %c0_412 = arith.constant 0 : index
    %504 = vector.load %arg14[%c0_410, %c0_411, %c0_412] : memref<8x8x16xf32, #tpu.memory_space<vmem>>, vector<1x8x16xf32>
    %505 = vector.shape_cast %504 : vector<1x8x16xf32> to vector<8x16xf32>
    %506 = arith.subf %505, %496 : vector<8x16xf32>
    %507 = arith.mulf %506, %503 : vector<8x16xf32>
    %c0_413 = arith.constant 0 : index
    %508 = memref.load %arg3[%c0_413] : memref<8xf32, #tpu.memory_space<smem>>
    %509 = vector.broadcast %508 : f32 to vector<8x16xf32>
    %510 = arith.mulf %507, %509 : vector<8x16xf32>
    %c0_414 = arith.constant 0 : index
    %511 = memref.load %arg4[%c0_414] : memref<8xf32, #tpu.memory_space<smem>>
    %512 = vector.broadcast %511 : f32 to vector<8x16xf32>
    %513 = arith.addf %510, %512 : vector<8x16xf32>
    %514 = arith.truncf %513 : vector<8x16xf32> to vector<8x16xbf16>
    %c0_415 = arith.constant 0 : index
    %c0_416 = arith.constant 0 : index
    %c0_417 = arith.constant 0 : index
    %c0_418 = arith.constant 0 : index
    %515 = vector.load %arg8[%c0_415, %c0_416, %c0_417, %c0_418] : memref<1x8x16x8xbf16, #tpu.memory_space<vmem>>, vector<1x1x16x8xbf16>
    %516 = vector.shape_cast %515 : vector<1x1x16x8xbf16> to vector<16x8xbf16>
    %cst_419 = arith.constant dense<0.000000e+00> : vector<8x8xf32>
    %517 = tpu.matmul %514, %516, %cst_419 {dimension_numbers = #tpu.dot_dimension_numbers<[1], [0], [0], [1], [0, 0, 1, 1], [], []>} : vector<8x16xbf16>, vector<16x8xbf16>, vector<8x8xf32> -> vector<8x8xf32>
    %518 = arith.truncf %517 : vector<8x8xf32> to vector<8x8xbf16>
    %c0_420 = arith.constant 0 : index
    %c0_421 = arith.constant 0 : index
    %c0_422 = arith.constant 0 : index
    %519 = vector.load %arg15[%c0_420, %c0_421, %c0_422] : memref<8x8x8xbf16, #tpu.memory_space<vmem>>, vector<1x8x8xbf16>
    %520 = vector.shape_cast %519 : vector<1x8x8xbf16> to vector<8x8xbf16>
    %521 = vector.shape_cast %518 : vector<8x8xbf16> to vector<1x8x8xbf16>
    tpu.vector_store %arg15[%c0_420, %c0_421, %c0_422], %521 {strides = array<i32>} : memref<8x8x8xbf16, #tpu.memory_space<vmem>>, vector<1x8x8xbf16>,
    %c1_423 = arith.constant 1 : index
    %c0_424 = arith.constant 0 : index
    %c0_425 = arith.constant 0 : index
    %522 = vector.load %arg14[%c1_423, %c0_424, %c0_425] : memref<8x8x16xf32, #tpu.memory_space<vmem>>, vector<1x8x16xf32>
    %523 = vector.shape_cast %522 : vector<1x8x16xf32> to vector<8x16xf32>
    %524 = arith.subf %523, %496 : vector<8x16xf32>
    %525 = arith.mulf %524, %503 : vector<8x16xf32>
    %c1_426 = arith.constant 1 : index
    %526 = memref.load %arg3[%c1_426] : memref<8xf32, #tpu.memory_space<smem>>
    %527 = vector.broadcast %526 : f32 to vector<8x16xf32>
    %528 = arith.mulf %525, %527 : vector<8x16xf32>
    %c1_427 = arith.constant 1 : index
    %529 = memref.load %arg4[%c1_427] : memref<8xf32, #tpu.memory_space<smem>>
    %530 = vector.broadcast %529 : f32 to vector<8x16xf32>
    %531 = arith.addf %528, %530 : vector<8x16xf32>
    %532 = arith.truncf %531 : vector<8x16xf32> to vector<8x16xbf16>
    %c0_428 = arith.constant 0 : index
    %c1_429 = arith.constant 1 : index
    %c0_430 = arith.constant 0 : index
    %c0_431 = arith.constant 0 : index
    %533 = vector.load %arg8[%c0_428, %c1_429, %c0_430, %c0_431] : memref<1x8x16x8xbf16, #tpu.memory_space<vmem>>, vector<1x1x16x8xbf16>
    %534 = vector.shape_cast %533 : vector<1x1x16x8xbf16> to vector<16x8xbf16>
    %cst_432 = arith.constant dense<0.000000e+00> : vector<8x8xf32>
    %535 = tpu.matmul %532, %534, %cst_432 {dimension_numbers = #tpu.dot_dimension_numbers<[1], [0], [0], [1], [0, 0, 1, 1], [], []>} : vector<8x16xbf16>, vector<16x8xbf16>, vector<8x8xf32> -> vector<8x8xf32>
    %536 = arith.truncf %535 : vector<8x8xf32> to vector<8x8xbf16>
    %c1_433 = arith.constant 1 : index
    %c0_434 = arith.constant 0 : index
    %c0_435 = arith.constant 0 : index
    %537 = vector.load %arg15[%c1_433, %c0_434, %c0_435] : memref<8x8x8xbf16, #tpu.memory_space<vmem>>, vector<1x8x8xbf16>
    %538 = vector.shape_cast %537 : vector<1x8x8xbf16> to vector<8x8xbf16>
    %539 = vector.shape_cast %536 : vector<8x8xbf16> to vector<1x8x8xbf16>
    tpu.vector_store %arg15[%c1_433, %c0_434, %c0_435], %539 {strides = array<i32>} : memref<8x8x8xbf16, #tpu.memory_space<vmem>>, vector<1x8x8xbf16>,
    %c2_436 = arith.constant 2 : index
    %c0_437 = arith.constant 0 : index
    %c0_438 = arith.constant 0 : index
    %540 = vector.load %arg14[%c2_436, %c0_437, %c0_438] : memref<8x8x16xf32, #tpu.memory_space<vmem>>, vector<1x8x16xf32>
    %541 = vector.shape_cast %540 : vector<1x8x16xf32> to vector<8x16xf32>
    %542 = arith.subf %541, %496 : vector<8x16xf32>
    %543 = arith.mulf %542, %503 : vector<8x16xf32>
    %c2_439 = arith.constant 2 : index
    %544 = memref.load %arg3[%c2_439] : memref<8xf32, #tpu.memory_space<smem>>
    %545 = vector.broadcast %544 : f32 to vector<8x16xf32>
    %546 = arith.mulf %543, %545 : vector<8x16xf32>
    %c2_440 = arith.constant 2 : index
    %547 = memref.load %arg4[%c2_440] : memref<8xf32, #tpu.memory_space<smem>>
    %548 = vector.broadcast %547 : f32 to vector<8x16xf32>
    %549 = arith.addf %546, %548 : vector<8x16xf32>
    %550 = arith.truncf %549 : vector<8x16xf32> to vector<8x16xbf16>
    %c0_441 = arith.constant 0 : index
    %c2_442 = arith.constant 2 : index
    %c0_443 = arith.constant 0 : index
    %c0_444 = arith.constant 0 : index
    %551 = vector.load %arg8[%c0_441, %c2_442, %c0_443, %c0_444] : memref<1x8x16x8xbf16, #tpu.memory_space<vmem>>, vector<1x1x16x8xbf16>
    %552 = vector.shape_cast %551 : vector<1x1x16x8xbf16> to vector<16x8xbf16>
    %cst_445 = arith.constant dense<0.000000e+00> : vector<8x8xf32>
    %553 = tpu.matmul %550, %552, %cst_445 {dimension_numbers = #tpu.dot_dimension_numbers<[1], [0], [0], [1], [0, 0, 1, 1], [], []>} : vector<8x16xbf16>, vector<16x8xbf16>, vector<8x8xf32> -> vector<8x8xf32>
    %554 = arith.truncf %553 : vector<8x8xf32> to vector<8x8xbf16>
    %c2_446 = arith.constant 2 : index
    %c0_447 = arith.constant 0 : index
    %c0_448 = arith.constant 0 : index
    %555 = vector.load %arg15[%c2_446, %c0_447, %c0_448] : memref<8x8x8xbf16, #tpu.memory_space<vmem>>, vector<1x8x8xbf16>
    %556 = vector.shape_cast %555 : vector<1x8x8xbf16> to vector<8x8xbf16>
    %557 = vector.shape_cast %554 : vector<8x8xbf16> to vector<1x8x8xbf16>
    tpu.vector_store %arg15[%c2_446, %c0_447, %c0_448], %557 {strides = array<i32>} : memref<8x8x8xbf16, #tpu.memory_space<vmem>>, vector<1x8x8xbf16>,
    %c3_449 = arith.constant 3 : index
    %c0_450 = arith.constant 0 : index
    %c0_451 = arith.constant 0 : index
    %558 = vector.load %arg14[%c3_449, %c0_450, %c0_451] : memref<8x8x16xf32, #tpu.memory_space<vmem>>, vector<1x8x16xf32>
    %559 = vector.shape_cast %558 : vector<1x8x16xf32> to vector<8x16xf32>
    %560 = arith.subf %559, %496 : vector<8x16xf32>
    %561 = arith.mulf %560, %503 : vector<8x16xf32>
    %c3_452 = arith.constant 3 : index
    %562 = memref.load %arg3[%c3_452] : memref<8xf32, #tpu.memory_space<smem>>
    %563 = vector.broadcast %562 : f32 to vector<8x16xf32>
    %564 = arith.mulf %561, %563 : vector<8x16xf32>
    %c3_453 = arith.constant 3 : index
    %565 = memref.load %arg4[%c3_453] : memref<8xf32, #tpu.memory_space<smem>>
    %566 = vector.broadcast %565 : f32 to vector<8x16xf32>
    %567 = arith.addf %564, %566 : vector<8x16xf32>
    %568 = arith.truncf %567 : vector<8x16xf32> to vector<8x16xbf16>
    %c0_454 = arith.constant 0 : index
    %c3_455 = arith.constant 3 : index
    %c0_456 = arith.constant 0 : index
    %c0_457 = arith.constant 0 : index
    %569 = vector.load %arg8[%c0_454, %c3_455, %c0_456, %c0_457] : memref<1x8x16x8xbf16, #tpu.memory_space<vmem>>, vector<1x1x16x8xbf16>
    %570 = vector.shape_cast %569 : vector<1x1x16x8xbf16> to vector<16x8xbf16>
    %cst_458 = arith.constant dense<0.000000e+00> : vector<8x8xf32>
    %571 = tpu.matmul %568, %570, %cst_458 {dimension_numbers = #tpu.dot_dimension_numbers<[1], [0], [0], [1], [0, 0, 1, 1], [], []>} : vector<8x16xbf16>, vector<16x8xbf16>, vector<8x8xf32> -> vector<8x8xf32>
    %572 = arith.truncf %571 : vector<8x8xf32> to vector<8x8xbf16>
    %c3_459 = arith.constant 3 : index
    %c0_460 = arith.constant 0 : index
    %c0_461 = arith.constant 0 : index
    %573 = vector.load %arg15[%c3_459, %c0_460, %c0_461] : memref<8x8x8xbf16, #tpu.memory_space<vmem>>, vector<1x8x8xbf16>
    %574 = vector.shape_cast %573 : vector<1x8x8xbf16> to vector<8x8xbf16>
    %575 = vector.shape_cast %572 : vector<8x8xbf16> to vector<1x8x8xbf16>
    tpu.vector_store %arg15[%c3_459, %c0_460, %c0_461], %575 {strides = array<i32>} : memref<8x8x8xbf16, #tpu.memory_space<vmem>>, vector<1x8x8xbf16>,
    %c4_462 = arith.constant 4 : index
    %c0_463 = arith.constant 0 : index
    %c0_464 = arith.constant 0 : index
    %576 = vector.load %arg14[%c4_462, %c0_463, %c0_464] : memref<8x8x16xf32, #tpu.memory_space<vmem>>, vector<1x8x16xf32>
    %577 = vector.shape_cast %576 : vector<1x8x16xf32> to vector<8x16xf32>
    %578 = arith.subf %577, %496 : vector<8x16xf32>
    %579 = arith.mulf %578, %503 : vector<8x16xf32>
    %c4_465 = arith.constant 4 : index
    %580 = memref.load %arg3[%c4_465] : memref<8xf32, #tpu.memory_space<smem>>
    %581 = vector.broadcast %580 : f32 to vector<8x16xf32>
    %582 = arith.mulf %579, %581 : vector<8x16xf32>
    %c4_466 = arith.constant 4 : index
    %583 = memref.load %arg4[%c4_466] : memref<8xf32, #tpu.memory_space<smem>>
    %584 = vector.broadcast %583 : f32 to vector<8x16xf32>
    %585 = arith.addf %582, %584 : vector<8x16xf32>
    %586 = arith.truncf %585 : vector<8x16xf32> to vector<8x16xbf16>
    %c0_467 = arith.constant 0 : index
    %c4_468 = arith.constant 4 : index
    %c0_469 = arith.constant 0 : index
    %c0_470 = arith.constant 0 : index
    %587 = vector.load %arg8[%c0_467, %c4_468, %c0_469, %c0_470] : memref<1x8x16x8xbf16, #tpu.memory_space<vmem>>, vector<1x1x16x8xbf16>
    %588 = vector.shape_cast %587 : vector<1x1x16x8xbf16> to vector<16x8xbf16>
    %cst_471 = arith.constant dense<0.000000e+00> : vector<8x8xf32>
    %589 = tpu.matmul %586, %588, %cst_471 {dimension_numbers = #tpu.dot_dimension_numbers<[1], [0], [0], [1], [0, 0, 1, 1], [], []>} : vector<8x16xbf16>, vector<16x8xbf16>, vector<8x8xf32> -> vector<8x8xf32>
    %590 = arith.truncf %589 : vector<8x8xf32> to vector<8x8xbf16>
    %c4_472 = arith.constant 4 : index
    %c0_473 = arith.constant 0 : index
    %c0_474 = arith.constant 0 : index
    %591 = vector.load %arg15[%c4_472, %c0_473, %c0_474] : memref<8x8x8xbf16, #tpu.memory_space<vmem>>, vector<1x8x8xbf16>
    %592 = vector.shape_cast %591 : vector<1x8x8xbf16> to vector<8x8xbf16>
    %593 = vector.shape_cast %590 : vector<8x8xbf16> to vector<1x8x8xbf16>
    tpu.vector_store %arg15[%c4_472, %c0_473, %c0_474], %593 {strides = array<i32>} : memref<8x8x8xbf16, #tpu.memory_space<vmem>>, vector<1x8x8xbf16>,
    %c5_475 = arith.constant 5 : index
    %c0_476 = arith.constant 0 : index
    %c0_477 = arith.constant 0 : index
    %594 = vector.load %arg14[%c5_475, %c0_476, %c0_477] : memref<8x8x16xf32, #tpu.memory_space<vmem>>, vector<1x8x16xf32>
    %595 = vector.shape_cast %594 : vector<1x8x16xf32> to vector<8x16xf32>
    %596 = arith.subf %595, %496 : vector<8x16xf32>
    %597 = arith.mulf %596, %503 : vector<8x16xf32>
    %c5_478 = arith.constant 5 : index
    %598 = memref.load %arg3[%c5_478] : memref<8xf32, #tpu.memory_space<smem>>
    %599 = vector.broadcast %598 : f32 to vector<8x16xf32>
    %600 = arith.mulf %597, %599 : vector<8x16xf32>
    %c5_479 = arith.constant 5 : index
    %601 = memref.load %arg4[%c5_479] : memref<8xf32, #tpu.memory_space<smem>>
    %602 = vector.broadcast %601 : f32 to vector<8x16xf32>
    %603 = arith.addf %600, %602 : vector<8x16xf32>
    %604 = arith.truncf %603 : vector<8x16xf32> to vector<8x16xbf16>
    %c0_480 = arith.constant 0 : index
    %c5_481 = arith.constant 5 : index
    %c0_482 = arith.constant 0 : index
    %c0_483 = arith.constant 0 : index
    %605 = vector.load %arg8[%c0_480, %c5_481, %c0_482, %c0_483] : memref<1x8x16x8xbf16, #tpu.memory_space<vmem>>, vector<1x1x16x8xbf16>
    %606 = vector.shape_cast %605 : vector<1x1x16x8xbf16> to vector<16x8xbf16>
    %cst_484 = arith.constant dense<0.000000e+00> : vector<8x8xf32>
    %607 = tpu.matmul %604, %606, %cst_484 {dimension_numbers = #tpu.dot_dimension_numbers<[1], [0], [0], [1], [0, 0, 1, 1], [], []>} : vector<8x16xbf16>, vector<16x8xbf16>, vector<8x8xf32> -> vector<8x8xf32>
    %608 = arith.truncf %607 : vector<8x8xf32> to vector<8x8xbf16>
    %c5_485 = arith.constant 5 : index
    %c0_486 = arith.constant 0 : index
    %c0_487 = arith.constant 0 : index
    %609 = vector.load %arg15[%c5_485, %c0_486, %c0_487] : memref<8x8x8xbf16, #tpu.memory_space<vmem>>, vector<1x8x8xbf16>
    %610 = vector.shape_cast %609 : vector<1x8x8xbf16> to vector<8x8xbf16>
    %611 = vector.shape_cast %608 : vector<8x8xbf16> to vector<1x8x8xbf16>
    tpu.vector_store %arg15[%c5_485, %c0_486, %c0_487], %611 {strides = array<i32>} : memref<8x8x8xbf16, #tpu.memory_space<vmem>>, vector<1x8x8xbf16>,
    %c6_488 = arith.constant 6 : index
    %c0_489 = arith.constant 0 : index
    %c0_490 = arith.constant 0 : index
    %612 = vector.load %arg14[%c6_488, %c0_489, %c0_490] : memref<8x8x16xf32, #tpu.memory_space<vmem>>, vector<1x8x16xf32>
    %613 = vector.shape_cast %612 : vector<1x8x16xf32> to vector<8x16xf32>
    %614 = arith.subf %613, %496 : vector<8x16xf32>
    %615 = arith.mulf %614, %503 : vector<8x16xf32>
    %c6_491 = arith.constant 6 : index
    %616 = memref.load %arg3[%c6_491] : memref<8xf32, #tpu.memory_space<smem>>
    %617 = vector.broadcast %616 : f32 to vector<8x16xf32>
    %618 = arith.mulf %615, %617 : vector<8x16xf32>
    %c6_492 = arith.constant 6 : index
    %619 = memref.load %arg4[%c6_492] : memref<8xf32, #tpu.memory_space<smem>>
    %620 = vector.broadcast %619 : f32 to vector<8x16xf32>
    %621 = arith.addf %618, %620 : vector<8x16xf32>
    %622 = arith.truncf %621 : vector<8x16xf32> to vector<8x16xbf16>
    %c0_493 = arith.constant 0 : index
    %c6_494 = arith.constant 6 : index
    %c0_495 = arith.constant 0 : index
    %c0_496 = arith.constant 0 : index
    %623 = vector.load %arg8[%c0_493, %c6_494, %c0_495, %c0_496] : memref<1x8x16x8xbf16, #tpu.memory_space<vmem>>, vector<1x1x16x8xbf16>
    %624 = vector.shape_cast %623 : vector<1x1x16x8xbf16> to vector<16x8xbf16>
    %cst_497 = arith.constant dense<0.000000e+00> : vector<8x8xf32>
    %625 = tpu.matmul %622, %624, %cst_497 {dimension_numbers = #tpu.dot_dimension_numbers<[1], [0], [0], [1], [0, 0, 1, 1], [], []>} : vector<8x16xbf16>, vector<16x8xbf16>, vector<8x8xf32> -> vector<8x8xf32>
    %626 = arith.truncf %625 : vector<8x8xf32> to vector<8x8xbf16>
    %c6_498 = arith.constant 6 : index
    %c0_499 = arith.constant 0 : index
    %c0_500 = arith.constant 0 : index
    %627 = vector.load %arg15[%c6_498, %c0_499, %c0_500] : memref<8x8x8xbf16, #tpu.memory_space<vmem>>, vector<1x8x8xbf16>
    %628 = vector.shape_cast %627 : vector<1x8x8xbf16> to vector<8x8xbf16>
    %629 = vector.shape_cast %626 : vector<8x8xbf16> to vector<1x8x8xbf16>
    tpu.vector_store %arg15[%c6_498, %c0_499, %c0_500], %629 {strides = array<i32>} : memref<8x8x8xbf16, #tpu.memory_space<vmem>>, vector<1x8x8xbf16>,
    %c7_501 = arith.constant 7 : index
    %c0_502 = arith.constant 0 : index
    %c0_503 = arith.constant 0 : index
    %630 = vector.load %arg14[%c7_501, %c0_502, %c0_503] : memref<8x8x16xf32, #tpu.memory_space<vmem>>, vector<1x8x16xf32>
    %631 = vector.shape_cast %630 : vector<1x8x16xf32> to vector<8x16xf32>
    %632 = arith.subf %631, %496 : vector<8x16xf32>
    %633 = arith.mulf %632, %503 : vector<8x16xf32>
    %c7_504 = arith.constant 7 : index
    %634 = memref.load %arg3[%c7_504] : memref<8xf32, #tpu.memory_space<smem>>
    %635 = vector.broadcast %634 : f32 to vector<8x16xf32>
    %636 = arith.mulf %633, %635 : vector<8x16xf32>
    %c7_505 = arith.constant 7 : index
    %637 = memref.load %arg4[%c7_505] : memref<8xf32, #tpu.memory_space<smem>>
    %638 = vector.broadcast %637 : f32 to vector<8x16xf32>
    %639 = arith.addf %636, %638 : vector<8x16xf32>
    %640 = arith.truncf %639 : vector<8x16xf32> to vector<8x16xbf16>
    %c0_506 = arith.constant 0 : index
    %c7_507 = arith.constant 7 : index
    %c0_508 = arith.constant 0 : index
    %c0_509 = arith.constant 0 : index
    %641 = vector.load %arg8[%c0_506, %c7_507, %c0_508, %c0_509] : memref<1x8x16x8xbf16, #tpu.memory_space<vmem>>, vector<1x1x16x8xbf16>
    %642 = vector.shape_cast %641 : vector<1x1x16x8xbf16> to vector<16x8xbf16>
    %cst_510 = arith.constant dense<0.000000e+00> : vector<8x8xf32>
    %643 = tpu.matmul %640, %642, %cst_510 {dimension_numbers = #tpu.dot_dimension_numbers<[1], [0], [0], [1], [0, 0, 1, 1], [], []>} : vector<8x16xbf16>, vector<16x8xbf16>, vector<8x8xf32> -> vector<8x8xf32>
    %644 = arith.truncf %643 : vector<8x8xf32> to vector<8x8xbf16>
    %c7_511 = arith.constant 7 : index
    %c0_512 = arith.constant 0 : index
    %c0_513 = arith.constant 0 : index
    %645 = vector.load %arg15[%c7_511, %c0_512, %c0_513] : memref<8x8x8xbf16, #tpu.memory_space<vmem>>, vector<1x8x8xbf16>
    %646 = vector.shape_cast %645 : vector<1x8x8xbf16> to vector<8x8xbf16>
    %647 = vector.shape_cast %644 : vector<8x8xbf16> to vector<1x8x8xbf16>
    tpu.vector_store %arg15[%c7_511, %c0_512, %c0_513], %647 {strides = array<i32>} : memref<8x8x8xbf16, #tpu.memory_space<vmem>>, vector<1x8x8xbf16>,
    %c0_514 = arith.constant 0 : index
    %c0_515 = arith.constant 0 : index
    %c0_516 = arith.constant 0 : index
    %648 = vector.load %arg15[%c0_514, %c0_515, %c0_516] : memref<8x8x8xbf16, #tpu.memory_space<vmem>>, vector<8x8x8xbf16>
    %c0_517 = arith.constant 0 : index
    %c0_518 = arith.constant 0 : index
    %c0_519 = arith.constant 0 : index
    %649 = vector.load %arg9[%c0_517, %c0_518, %c0_519] : memref<8x8x128xbf16, #tpu.memory_space<vmem>>, vector<8x8x128xbf16>
    "tpu.trace_start"() <{level = 10 : i32, message = "htd,hdo->hto"}> : () -> ()
    %cst_520 = arith.constant dense<0.000000e+00> : vector<8x8x128xf32>
    %650 = tpu.matmul %648, %649, %cst_520 {dimension_numbers = #tpu.dot_dimension_numbers<[2], [1], [1], [2], [0, 0, 0, 1, 1, 2], [0], [0]>} : vector<8x8x8xbf16>, vector<8x8x128xbf16>, vector<8x8x128xf32> -> vector<8x8x128xf32>
    "tpu.trace_stop"() : () -> ()
    %cst_521 = arith.constant dense<0.000000e+00> : vector<8x128xf32>
    %651 = vector.multi_reduction <add>, %650, %cst_521 [0] : vector<8x8x128xf32> to vector<8x128xf32>
    %c0_522 = arith.constant 0 : index
    %c0_523 = arith.constant 0 : index
    %652 = vector.load %arg10[%c0_522, %c0_523] : memref<1x128xf32, #tpu.memory_space<vmem>>, vector<1x128xf32>
    %653 = vector.broadcast %652 : vector<1x128xf32> to vector<8x128xf32>
    %654 = arith.addf %651, %653 : vector<8x128xf32>
    %c0_524 = arith.constant 0 : index
    %c0_525 = arith.constant 0 : index
    %c0_526 = arith.constant 0 : index
    %655 = vector.load %arg11[%c0_524, %c0_525, %c0_526] : memref<1x8x128xf32, #tpu.memory_space<vmem>>, vector<1x8x128xf32>
    %656 = vector.shape_cast %655 : vector<1x8x128xf32> to vector<8x128xf32>
    %657 = vector.shape_cast %654 : vector<8x128xf32> to vector<1x8x128xf32>
    tpu.vector_store %arg11[%c0_524, %c0_525, %c0_526], %657 {strides = array<i32>} : memref<1x8x128xf32, #tpu.memory_space<vmem>>, vector<1x8x128xf32>,
    return
  }
  func.func @transform_0(%arg0: i32, %arg1: i32) -> (i32, i32) {
    %c0_i32 = arith.constant 0 : i32
    %c0_i32_0 = arith.constant 0 : i32
    %c0_i32_1 = arith.constant 0 : i32
    return %c0_i32, %c0_i32_0 : i32, i32
  }
  func.func @transform_1(%arg0: i32, %arg1: i32) -> i32 {
    %c0_i32 = arith.constant 0 : i32
    %c0_i32_0 = arith.constant 0 : i32
    return %c0_i32 : i32
  }
  func.func @transform_2(%arg0: i32, %arg1: i32) -> i32 {
    %c0_i32 = arith.constant 0 : i32
    %c0_i32_0 = arith.constant 0 : i32
    return %c0_i32 : i32
  }
  func.func @transform_3(%arg0: i32, %arg1: i32) -> (i32, i32, i32) {
    %c0_i32 = arith.constant 0 : i32
    %c0_i32_0 = arith.constant 0 : i32
    return %arg0, %arg1, %c0_i32 : i32, i32, i32
  }
  func.func @transform_4(%arg0: i32, %arg1: i32) -> (i32, i32, i32) {
    %c0_i32 = arith.constant 0 : i32
    %c0_i32_0 = arith.constant 0 : i32
    %c0_i32_1 = arith.constant 0 : i32
    %c0_i32_2 = arith.constant 0 : i32
    return %c0_i32, %c0_i32_0, %c0_i32_1 : i32, i32, i32
  }
  func.func @transform_5(%arg0: i32, %arg1: i32) -> (i32, i32, i32, i32) {
    %c0_i32 = arith.constant 0 : i32
    %c0_i32_0 = arith.constant 0 : i32
    %c0_i32_1 = arith.constant 0 : i32
    %c0_i32_2 = arith.constant 0 : i32
    return %arg0, %c0_i32, %c0_i32_0, %c0_i32_1 : i32, i32, i32, i32
  }
  func.func @transform_6(%arg0: i32, %arg1: i32) -> (i32, i32, i32, i32) {
    %c0_i32 = arith.constant 0 : i32
    %c0_i32_0 = arith.constant 0 : i32
    %c0_i32_1 = arith.constant 0 : i32
    %c0_i32_2 = arith.constant 0 : i32
    return %arg0, %c0_i32, %c0_i32_0, %c0_i32_1 : i32, i32, i32, i32
  }
  func.func @transform_7(%arg0: i32, %arg1: i32) -> (i32, i32, i32) {
    %c0_i32 = arith.constant 0 : i32
    %c0_i32_0 = arith.constant 0 : i32
    %c0_i32_1 = arith.constant 0 : i32
    %c0_i32_2 = arith.constant 0 : i32
    return %c0_i32, %c0_i32_0, %c0_i32_1 : i32, i32, i32
  }
  func.func @transform_8(%arg0: i32, %arg1: i32) -> (i32, i32) {
    %c0_i32 = arith.constant 0 : i32
    %c0_i32_0 = arith.constant 0 : i32
    %c0_i32_1 = arith.constant 0 : i32
    return %c0_i32, %c0_i32_0 : i32, i32
  }
  func.func @transform_9(%arg0: i32, %arg1: i32) -> (i32, i32, i32) {
    %c0_i32 = arith.constant 0 : i32
    %c0_i32_0 = arith.constant 0 : i32
    return %arg0, %arg1, %c0_i32 : i32, i32, i32
  }
}

</mosaic_0001>

<bundles_post_ra>
// kernel: tpu_custom_call.1
= control target key start
LH: loop header
LB: loop body
LE: loop exit
PB: predicated region body
PF: predicated region fallthrough
CT: control target
= control target key end

     0   :  { %s4958_s0 = inlined_call_operand.vmem [shape: f32[8,8], index: 0, kind: input, shape index: {}]   ;;  %s4959_s1 = inlined_call_operand.vmem [shape: f32[8], index: 1, kind: input, shape index: {}]   ;;  %s4960_s2 = inlined_call_operand.vmem [shape: f32[8], index: 2, kind: input, shape index: {}]   ;;  %s4961_s3 = inlined_call_operand.vmem [shape: bf16[2,16,64], index: 3, kind: input, shape index: {}]   ;;  %s4962_s4 = inlined_call_operand.vmem [shape: bf16[8,64,8], index: 4, kind: input, shape index: {}]   ;;  %s4963_s5 = inlined_call_operand.vmem [shape: bf16[2,8,16,8], index: 5, kind: input, shape index: {}]   ;;  %s4964_s6 = inlined_call_operand.vmem [shape: bf16[2,8,16,8], index: 6, kind: input, shape index: {}]   ;;  %s4965_s7 = inlined_call_operand.vmem [shape: bf16[8,8,128], index: 7, kind: input, shape index: {}]   ;;  %s4966_s8 = inlined_call_operand.vmem [shape: f32[1,128], index: 8, kind: input, shape index: {}]   ;;  %s4967_s9 = inlined_call_operand.hbm [shape: f32[2,16,128], index: 9, kind: output, shape index: {}]  }
   0x1   :  { %5050 = sst [smem:[#allocation82_spill]] %s4958_s0 }
   0x2   :  { %5051 = sst [smem:[#allocation83_spill]] %s4959_s1 }
   0x3   :  { %5052 = sst [smem:[#allocation84_spill]] %s4960_s2 }
   0x4   :  { %5053 = sst [smem:[#allocation85_spill]] %s4961_s3 }
   0x5   :  { %5054 = sst [smem:[#allocation86_spill]] %s4962_s4 }
   0x6   :  { %5055 = sst [smem:[#allocation87_spill]] %s4963_s5 }
   0x7   :  { %5056 = sst [smem:[#allocation88_spill]] %s4964_s6 }
   0x8   :  { %5057 = sst [smem:[#allocation89_spill]] %s4965_s7 }
   0x9   :  { %5058 = sst [smem:[#allocation90_spill]] %s4966_s8 }
   0xa   :  { %5059 = sst [smem:[#allocation91_spill]] %s4967_s9 }
   0xb   :  { %14 = vsyncpa [#allocation8], 0 }
   0xc   :  { %15 = vsyncpa [#allocation10], 0 }
   0xd   :  { %16 = vsyncpa [#allocation7], 0 }
   0xe   :  { %18 = vsyncpa [#allocation7 + $0x1], 0  ;;  %s3980_s30 = smov 0   ;;  %s3982_s10 = smov 0  }
   0xf   :  { %s3984_s11 = smov 0   ;;  %s3986_s12 = smov 0  }
  0x10   :  { %s3988_s13 = smov 0   ;;  %s3990_s14 = smov 0  }
  0x11   :  { %s3992_s15 = smov 0   ;;  %s3994_s16 = smov 0  }
  0x12 LB: > { %5060 = sst [smem:[#allocation16_spill]] %s3894_s30  ;;  %s3008_s17 = sadd.s32 4294967295, %s3922_s16   ;;  %s3922_s16 = sphi %s3994_s16, %s24_s16   ;;  %s3918_s15 = sphi %s3992_s15, %s5256_s15   ;;  %s3914_s14 = sphi %s3990_s14, %s5255_s14   ;;  %s3910_s13 = sphi %s3988_s13, %s5254_s13   ;;  %s3906_s12 = sphi %s3986_s12, %s5253_s12   ;;  %s3902_s11 = sphi %s3984_s11, %s5252_s11   ;;  %s3898_s10 = sphi %s3982_s10, %s5251_s10   ;;  %s3894_s30 = sphi %s3980_s30, %s5250_s30  }
  0x13   : > { %5061 = sst [smem:[#allocation17_spill]] %s3898_s10  ;;  %s3009_s18 = sadd.s32 4294967294, %s3922_s16  }
  0x14   : > { %5062 = sst [smem:[#allocation18_spill]] %s3902_s11  ;;  %s33_s19 = sadd.s32 1, %s3914_s14 }
  0x15   : > { %5063 = sst [smem:[#allocation19_spill]] %s3906_s12  ;;  %s36_s20 = sadd.s32 1, %s3918_s15 }
  0x16   : > { %5064 = sst [smem:[#allocation20_spill]] %s3910_s13  ;;  %p34_p0 = scmp.ge.s32.totalorder %s33_s19, 2 }
  0x17   : > { %5065 = sst [smem:[#allocation21_spill]] %s3914_s14  ;;  %s251_s21 = sadd.s32 1, %s3902_s11 }
  0x18   : > { %5066 = sst [smem:[#allocation22_spill]] %s3918_s15  ;;  %p261_p1 = scmp.ne.s32.totalorder %s3902_s11, %s3898_s10 }
  0x19   : > { %5067 = sst [smem:[#allocation23_spill]] %s3922_s16  ;;  %p262_p2 = scmp.eq.s32.totalorder %s3008_s17, 3 }
  0x1a   : > { %s5258_s19 = smov (%p34_p0, %s33_s19), 0  ;;  %s5260_s20 = smov (!%p34_p0, %s36_s20), %s3918_s15 }
  0x1b   : > { %5068 = sst [smem:[#allocation24_spill]] %s5258_s19  ;;  %s247_s22 = ssub.s32 %s3914_s14, %s5258_s19 }
  0x1c   : > { %p4032_p3 = por %p262_p2, %p261_p1  ;;  %p38_p4 = scmp.ge.s32.totalorder %s5260_s20, 2 }
  0x1d   : > { %p267_p5 = scmp.ne.s32.totalorder %s3898_s10, %s3894_s30  ;;  %p268_p6 = scmp.eq.s32.totalorder %s3009_s18, 3 }
  0x1e   : > { %s5069_s23 = scalar_select %p4032_p3, 1, 0 }
  0x1f   : > { %p3010_p7 = scmp.ge.s32.totalorder %s3922_s16, 1  ;;  %s5262_s20 = smov (%p38_p4, %s5260_s20), 0 }
  0x20   : > { %5070 = sst [smem:[#allocation25_spill]] %s5069_s23  ;;  %p4041_p8 = por %p268_p6, %p267_p5 }
  0x21   : > { %5071 = sst [smem:[#allocation26_spill]] %s5262_s20  ;;  %p275_p9 = scmp.lt.s32.totalorder %s3922_s16, 5 }
  0x22   : > { %s5072_s24 = scalar_select %p4041_p8, 1, 0 }
  0x23   : > { %s246_s25 = ssub.s32 %s3918_s15, %s5262_s20  ;;  %p4048_p10 = pnand %p3010_p7, %p275_p9 }
  0x24   : > { %5073 = sst [smem:[#allocation27_spill]] %s5072_s24  ;;  %s248_s26 = sor.u32 %s247_s22, %s246_s25 }
  0x25   : > { %s5074_s27 = scalar_select %p4048_p10, 1, 0 }
  0x26   : > { %p249_p11 = scmp.eq.s32.totalorder %s248_s26, 0  ;;  %p4052_p12 = scmp.eq.s32.totalorder %s3008_s17, 0 }
  0x27   : > { %p3603_p13 = pneg %p4048_p10  ;;  %s5076_s1 = sld [smem:[#allocation83_spill]] }
  0x28   : > { %s5075_s28 = scalar_select %p4052_p12, 1, 0 }
  0x29   : > { %s4062_s14 = scalar_select %p249_p11, %s3902_s11, %s251_s21  }
  0x2a   : > { %p4066_p0 = pnand %p4052_p12, %p3603_p13 }
  0x2b   : > { %5077 = sst [smem:[#allocation28_spill]] %s4062_s14 }
  0x2c   : > { %p3777_p2 = pneg %p4066_p0 }
  0x2d   : > { %s299_s19 = sshll.u32 %s5076_s1, 4  ;;  %s300_s19 = int_to_ptr.vmem [resolvable:$true] %s299_s19 }
  0x2e   : > { %s3775_s17 = scalar_lea.vmem %s300_s19, 16  ;;  %p3783_p6 = scmp.lt.s32.totalorder %s300_s19, %s300_s19 }
  0x2f   : > { %p3776_p1 = scmp.ne.s32.totalorder %s300_s19, %s3775_s17  ;;  %p3784_p7 = scmp.lt.s32.totalorder %s3775_s17, %s3775_s17 }
  0x31   : > { %p3778_p4 = pnand %p3777_p2, %p3776_p1  ;;  %p3785_p9 = por %p3784_p7, %p3783_p6 }
  0x33   : > { %p3779_p5 = pneg %p3778_p4 }
  0x35   : > { %p3786_p11 = pnand %p3785_p9, %p3779_p5 }
  0x37   : > { %3789 = shalt.err (!%p3786_p11)
}
  0x38   : > { %s3924_s21 = smov [#allocation9]   ;;  %s5079_s0 = sld [smem:[#allocation82_spill]] }
  0x39   : > { %3609 = dma.vmem_to_smem (!%p4066_p0), %s300_s19, 16, %s3924_s21, [#allocation10]  }
  0x3a   : > { %s5080_s2 = sld [smem:[#allocation84_spill]] }
  0x3e   : > { %s288_s29 = sshll.u32 %s5079_s0, 4  ;;  %s289_s29 = int_to_ptr.vmem [resolvable:$true] %s288_s29 }
  0x3f   : > { %s3790_s15 = scalar_lea.vmem %s289_s29, 128  ;;  %p3798_p5 = scmp.lt.s32.totalorder %s289_s29, %s289_s29 }
  0x40   : > { %s310_s20 = sshll.u32 %s5080_s2, 4  ;;  %p3791_p13 = scmp.ne.s32.totalorder %s289_s29, %s3790_s15  ;;  %s311_s20 = int_to_ptr.vmem [resolvable:$true] %s310_s20 }
  0x41   : > { %p3799_p6 = scmp.lt.s32.totalorder %s3790_s15, %s3790_s15 }
  0x42   : > { %p3793_p1 = pnand %p3791_p13, %p3777_p2 }
  0x43   : > { %p3800_p7 = por %p3799_p6, %p3798_p5 }
  0x44   : > { %p3794_p4 = pneg %p3793_p1 }
  0x46   : > { %p3801_p9 = pnand %p3800_p7, %p3794_p4 }
  0x48   : > { %3804 = shalt.err (!%p3801_p9)
}
  0x49   : > { %s3925_s19 = smov [#allocation6]   ;;  %s3805_s17 = scalar_lea.vmem %s311_s20, 16 }
  0x4a   : > { %3606 = dma.vmem_to_smem (!%p4066_p0), %s289_s29, 128, %s3925_s19, [#allocation8]  }
  0x4b   : > { %p3806_p11 = scmp.ne.s32.totalorder %s311_s20, %s3805_s17  ;;  %p3813_p12 = scmp.lt.s32.totalorder %s311_s20, %s311_s20 }
  0x4c   : > { %p3814_p13 = scmp.lt.s32.totalorder %s3805_s17, %s3805_s17 }
  0x4d   : > { %p3808_p8 = pnand %p3806_p11, %p3777_p2 }
  0x4e   : > { %p3815_p1 = por %p3814_p13, %p3813_p12 }
  0x4f   : > { %p3809_p3 = pneg %p3808_p8 }
  0x51   : > { %p3816_p10 = pnand %p3815_p1, %p3809_p3 }
  0x53   : > { %3819 = shalt.err (!%p3816_p10)
}
  0x54   : > { %s3926_s1 = smov [#allocation11]   ;;  %p5081_p4 = scmp.ne.s32.totalorder %s5074_s27, 0 }
  0x55   : > { %3612 = dma.vmem_to_smem (!%p4066_p0), %s311_s20, 16, %s3926_s1, [#allocation10]  }
  0x56   : > { %359 = sbr.rel (%p5081_p4) target bundleno = 1454 (0x5ae), region = 56 }
  0x5d   : > { %p5082_p5 = scmp.ne.s32.totalorder %s5075_s28, 0 }
  0x5f   : > { %3881 = dma.done.wait (%p5082_p5), [#allocation8], 128  }
  0x60   : > { %3883 = vsyncadd (%p5082_p5), [#allocation8], 4294967168 }
  0x61   : > { %3885 = dma.done.wait (%p5082_p5), [#allocation10], 32  }
  0x62   : > { %3887 = vsyncadd (%p5082_p5), [#allocation10], 4294967264 }
  0x63   : > { %373 = sfence }
  0x64   : > { %s5083_s4 = sld [smem:[#allocation86_spill]]  ;;  %v5037_v1 = vmov 0.0   ;;  %vm3928_vm0 = vmmov 0   ;;  %p417_p3 = scmp.lt.s32.totalorder %s3910_s13, 1  ;;  %vm469_vm1 = vcmask 523264   ;;  %vm1077_vm2 = vcmask 64512  }
  0x65   : > { %3349 = vmatprep.subr.bf16.mxu0 %v5037_v1  ;;  %3361 = vmatprep.subr.bf16.mxu1 %v5037_v1  ;;  %p419_p8 = scmp.lt.s32.totalorder %s3906_s12, 1  ;;  %s5084_s3 = sld [smem:[#allocation85_spill]]  ;;  %vm514_vm3 = vcmask 60416   ;;  %vm1481_vm4 = vcmask 130048   ;;  %vm2477_vm5 = vcmask 1043456  }
  0x66   : > { %3357 = vmatprep.mubr.msk.bf16.mxu0 %vm3928_vm0, %v5037_v1  ;;  %3369 = vmatprep.mubr.msk.bf16.mxu1 %vm3928_vm0, %v5037_v1  ;;  %s4126_s29 = scalar_select %p417_p3, %s3910_s13, 1 }
  0x67   : > { %s420_s18 = scalar_select %p419_p8, %s3906_s12, 1 }
  0x68   : > { %s3020_s1 = sshll.u32 %s4126_s29, 1  ;;  %s5085_s5 = sld [smem:[#allocation87_spill]] }
  0x69   : > { %s422_s20 = sadd.s32 %s3020_s1, %s420_s18  ;;  %s5086_s6 = sld [smem:[#allocation88_spill]] }
  0x6a   : > { %v3693_v0 = vld [vmem:[%s5083_s4] sm:$0xff]   ;;  %v3695_v3 = vld [vmem:[%s5083_s4 + $0x8] sm:$0xff]   ;;  %v3697_v5 = vld [vmem:[%s5083_s4 + $0x10] sm:$0xff]   ;;  %s3021_s27 = sshll.u32 %s422_s20, 2  ;;  %s4394_s17 = sld [smem:[#allocation6 + $0x1]] }
  0x6b   : > { %v3694_v2 = vld [vmem:[%s5083_s4 + $0x20] sm:$0xff]   ;;  %3350 = vmatpush3.bf16.msra.mxu0 %v3693_v0  ;;  %v3696_v4 = vld [vmem:[%s5083_s4 + $0x28] sm:$0xff]   ;;  %v3698_v6 = vld [vmem:[%s5083_s4 + $0x30] sm:$0xff]   ;;  %s424_s15 = scalar_lea.vmem %s5084_s3, %s3021_s27  ;;  %s3259_s27 = sshll.u32 %s4126_s29, 6 }
  0x6c   : > { %3362 = vmatpush3.bf16.msra.mxu1 %v3694_v2  ;;  %3351 = vmatprep.subr.bf16.mxu0 %v5037_v1  ;;  %v3699_v7 = vld [vmem:[%s5083_s4 + $0x18] sm:$0xff]   ;;  %v3701_v9 = vld [vmem:[%s5083_s4 + $0x40] sm:$0xff]   ;;  %v3703_v12 = vld [vmem:[%s5083_s4 + $0x48] sm:$0xff]   ;;  %s4398_s29 = sld [smem:[#allocation6 + $0x3]]  ;;  %s4401_s18 = sld [smem:[#allocation6 + $0x4]] }
  0x6d   : > { %3363 = vmatprep.subr.bf16.mxu1 %v5037_v1  ;;  %v3700_v8 = vld [vmem:[%s5083_s4 + $0x38] sm:$0xff]   ;;  %v4152_v10 = vld [vmem:[%s424_s15] sm:$0xf]  ;;  %v3704_v13 = vld [vmem:[%s5083_s4 + $0x68] sm:$0xff]   ;;  %s4396_s15 = sld [smem:[#allocation6 + $0x2]]  ;;  %s4405_s1 = sld [smem:[#allocation6 + $0x6]] }
  0x6e   : > { %v3702_v11 = vld [vmem:[%s5083_s4 + $0x60] sm:$0xff]   ;;  %v3705_v14 = vld [vmem:[%s5083_s4 + $0x50] sm:$0xff]   ;;  %v3707_v16 = vld [vmem:[%s5083_s4 + $0x58] sm:$0xff]   ;;  %s4198_s19 = scalar_lea.vmem %s5085_s5, %s3259_s27  ;;  %s4407_s21 = sld [smem:[#allocation6 + $0x7]] }
  0x6f   : > { %3352 = vmatpush3.bf16.msra.mxu0 %v3695_v3  ;;  %v3706_v15 = vld [vmem:[%s5083_s4 + $0x70] sm:$0xff]   ;;  %v3708_v17 = vld [vmem:[%s5083_s4 + $0x78] sm:$0xff]   ;;  %v3709_v18 = vld [vmem:[%s5083_s4 + $0x80] sm:$0xff]   ;;  %s4225_s26 = scalar_lea.vmem %s5086_s6, %s3259_s27  ;;  %s4403_s27 = sld [smem:[#allocation6 + $0x5]] }
  0x70   : > { %3364 = vmatpush3.bf16.msra.mxu1 %v3696_v4  ;;  %3353 = vmatprep.subr.bf16.mxu0 %v5037_v1  ;;  %v3710_v19 = vld [vmem:[%s5083_s4 + $0xa0] sm:$0xff]   ;;  %v3711_v20 = vld [vmem:[%s5083_s4 + $0x88] sm:$0xff]   ;;  %v3713_v22 = vld [vmem:[%s5083_s4 + $0x90] sm:$0xff]   ;;  %5087 = sst [smem:[#allocation29_spill]] %s4225_s26  ;;  %s4410_s20 = sld [smem:[#allocation6 + $0x80]] }
  0x71   : > { %3365 = vmatprep.subr.bf16.mxu1 %v5037_v1  ;;  %v3712_v21 = vld [vmem:[%s5083_s4 + $0xa8] sm:$0xff]   ;;  %v3714_v23 = vld [vmem:[%s5083_s4 + $0xb0] sm:$0xff]   ;;  %v3715_v24 = vld [vmem:[%s5083_s4 + $0x98] sm:$0xff]   ;;  %5089 = sst [smem:[#allocation31_spill]] %s4394_s17  ;;  %s4412_s28 = sld [smem:[#allocation6 + $0x81]] }
  0x72   : > { %v3716_v25 = vld [vmem:[%s5083_s4 + $0xb8] sm:$0xff]   ;;  %v3717_v26 = vld [vmem:[%s5083_s4 + $0xc0] sm:$0xff]   ;;  %v3719_v28 = vld [vmem:[%s5083_s4 + $0xc8] sm:$0xff]   ;;  %5091 = sst [smem:[#allocation33_spill]] %s4398_s29  ;;  %s4414_s22 = sld [smem:[#allocation6 + $0x82]] }
  0x73   : > { %3354 = vmatpush3.bf16.msra.mxu0 %v3697_v5  ;;  %v3718_v27 = vld [vmem:[%s5083_s4 + $0xe0] sm:$0xff]   ;;  %v3720_v29 = vld [vmem:[%s5083_s4 + $0xe8] sm:$0xff]   ;;  %v3721_v30 = vld [vmem:[%s5083_s4 + $0xd0] sm:$0xff]   ;;  %5090 = sst [smem:[#allocation32_spill]] %s4396_s15  ;;  %s4416_s25 = sld [smem:[#allocation6 + $0x83]] }
  0x74   : > { %3366 = vmatpush3.bf16.msra.mxu1 %v3698_v6  ;;  %3355 = vmatprep.subr.bf16.mxu0 %v5037_v1  ;;  %v3722_v31 = vld [vmem:[%s5083_s4 + $0xf0] sm:$0xff]   ;;  %v3723_v32 = vld [vmem:[%s5083_s4 + $0xd8] sm:$0xff]   ;;  %v3725_v34 = vld [vmem:[%s4198_s19] sm:$0xff]   ;;  %5092 = sst [smem:[#allocation34_spill]] %s4401_s18  ;;  %s4419_s0 = sld [smem:[#allocation6 + $0x84]] }
  0x75   : > { %3367 = vmatprep.subr.bf16.mxu1 %v5037_v1  ;;  %v3724_v33 = vld [vmem:[%s5083_s4 + $0xf8] sm:$0xff]   ;;  %v3726_v35 = vld [vmem:[%s4198_s19 + $0x8] sm:$0xff]   ;;  %v1082_v36 = vsel %vm1077_vm2, %v3725_v34, 0  ;;  %v3727_v48 = vld [vmem:[%s4198_s19 + $0x10] sm:$0xff]   ;;  %5093 = sst [smem:[#allocation35_spill]] %s4403_s27  ;;  %s4421_s2 = sld [smem:[#allocation6 + $0x85]] }
  0x76   : > { %v1133_v37 = vsel %vm1077_vm2, %v3726_v35, 0  ;;  %v3728_v49 = vld [vmem:[%s4198_s19 + $0x18] sm:$0xff]   ;;  %v1184_v50 = vsel %vm1077_vm2, %v3727_v48, 0  ;;  %v3729_v0 = vld [vmem:[%s4198_s19 + $0x20] sm:$0xff]   ;;  %v3730_v2 = vld [vmem:[%s4198_s19 + $0x28] sm:$0xff]   ;;  %5094 = sst [smem:[#allocation36_spill]] %s4405_s1 }
  0x77   : > { %3356 = vmatpush3.bf16.msra.mxu0 %v3699_v7  ;;  %v1235_v52 = vsel %vm1077_vm2, %v3728_v49, 0  ;;  %v1286_v3 = vsel %vm1077_vm2, %v3729_v0, 0  ;;  %v1337_v5 = vsel %vm1077_vm2, %v3730_v2, 0  ;;  %5095 = sst [smem:[#allocation37_spill]] %s4407_s21  ;;  %s4423_s3 = sld [smem:[#allocation6 + $0x86]] }
  0x78   : > { %3368 = vmatpush3.bf16.msra.mxu1 %v3700_v8  ;;  %3373 = vmatprep.subr.bf16.mxu0 %v5037_v1  ;;  %5096 = sst [smem:[#allocation38_spill]] %s4410_s20  ;;  %s4425_s4 = sld [smem:[#allocation6 + $0x87]] }
  0x79   : > { %3385 = vmatprep.subr.bf16.mxu1 %v5037_v1  ;;  %5097 = sst [smem:[#allocation39_spill]] %s4412_s28  ;;  %s4428_s5 = sld [smem:[#allocation6 + $0x100]] }
  0x7a   : > { %3358 = vmatmul.mubr.msk.bf16.vlgmr.msra.gmra.mrb[0].mxu0 %vm469_vm1, %v4152_v10  ;;  %5098 = sst [smem:[#allocation40_spill]] %s4414_s22  ;;  %s4430_s6 = sld [smem:[#allocation6 + $0x101]] }
  0x7b   : > { %3370 = vmatmul.mubr.msk.bf16.vlgmr.msra.gmra.mrb[0].mxu1 %vm469_vm1, %v4152_v10  ;;  %3374 = vmatpush3.bf16.msra.mxu0 %v3701_v9  ;;  %5099 = sst [smem:[#allocation41_spill]] %s4416_s25  ;;  %s4432_s14 = sld [smem:[#allocation6 + $0x102]] }
  0x7c   : > { %3386 = vmatpush3.bf16.msra.mxu1 %v3702_v11  ;;  %3375 = vmatprep.subr.bf16.mxu0 %v5037_v1  ;;  %5100 = sst [smem:[#allocation42_spill]] %s4419_s0  ;;  %s4434_s11 = sld [smem:[#allocation6 + $0x103]] }
  0x7d   : > { %3387 = vmatprep.subr.bf16.mxu1 %v5037_v1  ;;  %3381 = vmatprep.mubr.msk.bf16.mxu0 %vm3928_vm0, %v5037_v1  ;;  %5101 = sst [smem:[#allocation43_spill]] %s4421_s2  ;;  %s4436_s24 = sld [smem:[#allocation6 + $0x104]] }
  0x7e   : > { %3393 = vmatprep.mubr.msk.bf16.mxu1 %vm3928_vm0, %v5037_v1  ;;  %5102 = sst [smem:[#allocation44_spill]] %s4423_s3  ;;  %s4438_s30 = sld [smem:[#allocation6 + $0x105]] }
  0x7f   : > { %3376 = vmatpush3.bf16.msra.mxu0 %v3703_v12  ;;  %5103 = sst [smem:[#allocation45_spill]] %s4425_s4  ;;  %s4440_s16 = sld [smem:[#allocation6 + $0x106]] }
  0x80   : > { %3388 = vmatpush3.bf16.msra.mxu1 %v3704_v13  ;;  %3377 = vmatprep.subr.bf16.mxu0 %v5037_v1  ;;  %5104 = sst [smem:[#allocation46_spill]] %s4428_s5  ;;  %s4442_s9 = sld [smem:[#allocation6 + $0x107]] }
  0x81   : > { %3389 = vmatprep.subr.bf16.mxu1 %v5037_v1  ;;  %5105 = sst [smem:[#allocation47_spill]] %s4430_s6  ;;  %s4444_s23 = sld [smem:[#allocation6 + $0x180]] }
  0x82   : > { %5106 = sst [smem:[#allocation48_spill]] %s4432_s14  ;;  %s4446_s8 = sld [smem:[#allocation6 + $0x181]] }
  0x83   : > { %3378 = vmatpush3.bf16.msra.mxu0 %v3705_v14  ;;  %5107 = sst [smem:[#allocation49_spill]] %s4434_s11  ;;  %s4448_s12 = sld [smem:[#allocation6 + $0x182]] }
  0x84   : > { %3390 = vmatpush3.bf16.msra.mxu1 %v3706_v15  ;;  %3379 = vmatprep.subr.bf16.mxu0 %v5037_v1  ;;  %5108 = sst [smem:[#allocation50_spill]] %s4436_s24  ;;  %s4450_s13 = sld [smem:[#allocation6 + $0x183]] }
  0x85   : > { %3391 = vmatprep.subr.bf16.mxu1 %v5037_v1  ;;  %5109 = sst [smem:[#allocation51_spill]] %s4438_s30  ;;  %s4452_s10 = sld [smem:[#allocation6 + $0x184]] }
  0x86   : > { %5110 = sst [smem:[#allocation52_spill]] %s4440_s16  ;;  %s4454_s7 = sld [smem:[#allocation6 + $0x185]] }
  0x87   : > { %3380 = vmatpush3.bf16.msra.mxu0 %v3707_v16  ;;  %5111 = sst [smem:[#allocation53_spill]] %s4442_s9  ;;  %s4458_s30 = sld [smem:[#allocation6 + $0x187]] }
  0x88   : > { %3392 = vmatpush3.bf16.msra.mxu1 %v3708_v17  ;;  %3397 = vmatprep.subr.bf16.mxu0 %v5037_v1  ;;  %v3731_v17 = vld [vmem:[%s4198_s19 + $0x30] sm:$0xff]   ;;  %5112 = sst [smem:[#allocation54_spill]] %s4444_s23  ;;  %s4460_s16 = sld [smem:[#allocation6 + $0x280]] }
  0x89   : > { %3409 = vmatprep.subr.bf16.mxu1 %v5037_v1  ;;  %5113 = sst [smem:[#allocation55_spill]] %s4446_s8  ;;  %s4462_s9 = sld [smem:[#allocation6 + $0x281]] }
  0x8a   : > { %3382 = vmatmul.mubr.msk.bf16.vlgmr.msra.gmra.mrb[4].mxu0 %vm469_vm1, %v4152_v10  ;;  %5114 = sst [smem:[#allocation56_spill]] %s4448_s12  ;;  %s4464_s23 = sld [smem:[#allocation6 + $0x282]] }
  0x8b   : > { %3394 = vmatmul.mubr.msk.bf16.vlgmr.msra.gmra.mrb[4].mxu1 %vm469_vm1, %v4152_v10  ;;  %3398 = vmatpush3.bf16.msra.mxu0 %v3709_v18  ;;  %v3732_v18 = vld [vmem:[%s4198_s19 + $0x38] sm:$0xff]   ;;  %s4392_s19 = sld [smem:[#allocation6]]  ;;  %5115 = sst [smem:[#allocation57_spill]] %s4450_s13 }
  0x8c   : > { %3410 = vmatpush3.bf16.msra.mxu1 %v3710_v19  ;;  %3399 = vmatprep.subr.bf16.mxu0 %v5037_v1  ;;  %v1388_v19 = vsel %vm1077_vm2, %v3731_v17, 0  ;;  %5116 = sst [smem:[#allocation58_spill]] %s4452_s10  ;;  %s4466_s8 = sld [smem:[#allocation6 + $0x283]] }
  0x8d   : > { %3411 = vmatprep.subr.bf16.mxu1 %v5037_v1  ;;  %3405 = vmatprep.mubr.msk.bf16.mxu0 %vm3928_vm0, %v5037_v1  ;;  %5117 = sst [smem:[#allocation59_spill]] %s4454_s7  ;;  %s4468_s12 = sld [smem:[#allocation6 + $0x284]] }
  0x8e   : > { %3417 = vmatprep.mubr.msk.bf16.mxu1 %vm3928_vm0, %v5037_v1  ;;  %5119 = sst [smem:[#allocation61_spill]] %s4458_s30  ;;  %s4475_s30 = sld [smem:[#allocation6 + $0x287]] }
  0x8f   : > { %3400 = vmatpush3.bf16.msra.mxu0 %v3711_v20  ;;  %5120 = sst [smem:[#allocation62_spill]] %s4460_s16  ;;  %s4470_s13 = sld [smem:[#allocation6 + $0x285]] }
  0x90   : > { %3412 = vmatpush3.bf16.msra.mxu1 %v3712_v21  ;;  %3401 = vmatprep.subr.bf16.mxu0 %v5037_v1  ;;  %v1439_v21 = vsel %vm1077_vm2, %v3732_v18, 0  ;;  %5121 = sst [smem:[#allocation63_spill]] %s4462_s9  ;;  %s4477_s16 = sld [smem:[#allocation6 + $0x200]] }
  0x91   : > { %3413 = vmatprep.subr.bf16.mxu1 %v5037_v1  ;;  %5088 = sst [smem:[#allocation30_spill]] %s4392_s19  ;;  %s4479_s9 = sld [smem:[#allocation6 + $0x201]] }
  0x92   : > { %5122 = sst [smem:[#allocation64_spill]] %s4464_s23 }
  0x93   : > { %3402 = vmatpush3.bf16.msra.mxu0 %v3713_v22  ;;  %5123 = sst [smem:[#allocation65_spill]] %s4466_s8 }
  0x94   : > { %3414 = vmatpush3.bf16.msra.mxu1 %v3714_v23  ;;  %3403 = vmatprep.subr.bf16.mxu0 %v5037_v1  ;;  %5124 = sst [smem:[#allocation66_spill]] %s4468_s12  ;;  %s4485_s12 = sld [smem:[#allocation6 + $0x203]] }
  0x95   : > { %3415 = vmatprep.subr.bf16.mxu1 %v5037_v1  ;;  %5125 = sst [smem:[#allocation67_spill]] %s4470_s13  ;;  %s4483_s13 = sld [smem:[#allocation6 + $0x202]] }
  0x96   : > { %5127 = sst [smem:[#allocation69_spill]] %s4475_s30  ;;  %s4487_s30 = sld [smem:[#allocation6 + $0x204]] }
  0x97   : > { %3404 = vmatpush3.bf16.msra.mxu0 %v3715_v24  ;;  %5128 = sst [smem:[#allocation70_spill]] %s4477_s16  ;;  %s4489_s16 = sld [smem:[#allocation6 + $0x205]] }
  0x98   : > { %3416 = vmatpush3.bf16.msra.mxu1 %v3716_v25  ;;  %3421 = vmatprep.subr.bf16.mxu0 %v5037_v1  ;;  %5129 = sst [smem:[#allocation71_spill]] %s4479_s9  ;;  %s4495_s9 = sld [smem:[#allocation6 + $0x206]] }
  0x99   : > { %3433 = vmatprep.subr.bf16.mxu1 %v5037_v1 }
  0x9a   : > { %3406 = vmatmul.mubr.msk.bf16.vlgmr.msra.gmra.mrb[8].mxu0 %vm469_vm1, %v4152_v10  ;;  %5130 = sst [smem:[#allocation72_spill]] %s4485_s12  ;;  %s4497_s12 = sld [smem:[#allocation6 + $0x207]] }
  0x9b   : > { %3418 = vmatmul.mubr.msk.bf16.vlgmr.msra.gmra.mrb[8].mxu1 %vm469_vm1, %v4152_v10  ;;  %3422 = vmatpush3.bf16.msra.mxu0 %v3717_v26 }
  0x9c   : > { %3434 = vmatpush3.bf16.msra.mxu1 %v3718_v27  ;;  %3423 = vmatprep.subr.bf16.mxu0 %v5037_v1 }
  0x9d   : > { %3435 = vmatprep.subr.bf16.mxu1 %v5037_v1  ;;  %3429 = vmatprep.mubr.msk.bf16.mxu0 %vm3928_vm0, %v5037_v1 }
  0x9e   : > { %3441 = vmatprep.mubr.msk.bf16.mxu1 %vm3928_vm0, %v5037_v1 }
  0x9f   : > { %3424 = vmatpush3.bf16.msra.mxu0 %v3719_v28 }
  0xa0   : > { %3436 = vmatpush3.bf16.msra.mxu1 %v3720_v29  ;;  %3425 = vmatprep.subr.bf16.mxu0 %v5037_v1 }
  0xa1   : > { %3437 = vmatprep.subr.bf16.mxu1 %v5037_v1 }
  0xa3   : > { %3426 = vmatpush3.bf16.msra.mxu0 %v3721_v30 }
  0xa4   : > { %3438 = vmatpush3.bf16.msra.mxu1 %v3722_v31  ;;  %3427 = vmatprep.subr.bf16.mxu0 %v5037_v1 }
  0xa5   : > { %3439 = vmatprep.subr.bf16.mxu1 %v5037_v1 }
  0xa7   : > { %3428 = vmatpush3.bf16.msra.mxu0 %v3723_v32 }
  0xa8   : > { %3440 = vmatpush3.bf16.msra.mxu1 %v3724_v33  ;;  %3445 = vmatprep.subr.bf16.mxu0 %v5037_v1 }
  0xa9   : > { %3451 = vmatprep.subr.bf16.mxu1 %v5037_v1 }
  0xaa   : > { %3430 = vmatmul.mubr.msk.bf16.vlgmr.msra.gmra.mrb[12].mxu0 %vm469_vm1, %v4152_v10 }
  0xab   : > { %3442 = vmatmul.mubr.msk.bf16.vlgmr.msra.gmra.mrb[12].mxu1 %vm469_vm1, %v4152_v10  ;;  %3447 = vmatprep.mubr.msk.bf16.mxu0 %vm3928_vm0, %v5037_v1 }
  0xac   : > { %3453 = vmatprep.mubr.msk.bf16.mxu1 %vm3928_vm0, %v5037_v1 }
  0xb0   : > { %3446 = vmatpush3.bf16.xpose.msra.mxu0 %v1082_v36 }
  0xb1   : > { %3452 = vmatpush3.bf16.xpose.msra.mxu1 %v1133_v37  ;;  %3457 = vmatprep.subr.bf16.mxu0 %v5037_v1 }
  0xb2   : > { %3463 = vmatprep.subr.bf16.mxu1 %v5037_v1 }
 0x14d   : > { %v507_v38 = vpop.f32.mrb[0].mxu0 }
 0x14e   : > { %v513_v39 = vpack.c.bf16 %v507_v38, %v507_v38  ;;  %v583_v40 = vpop.f32.mrb[0].mxu1  ;;  %v3359_v41 = vpop.f32.mrb[1].mxu0 }
 0x14f   : > { %v589_v42 = vpack.c.bf16 %v583_v40, %v583_v40  ;;  %v3371_v43 = vpop.f32.mrb[1].mxu1  ;;  %v510_v44 = vpop.f32.mrb[2].mxu0 }
 0x150   : > { %515 = vst.msk [vmem:[#allocation2] sm:$0xf] %vm514_vm3, %v513_v39  ;;  %v586_v45 = vpop.f32.mrb[2].mxu1  ;;  %v3360_v46 = vpop.f32.mrb[3].mxu0 }
 0x151   : > { %591 = vst.msk [vmem:[#allocation2 + $0x4] sm:$0xf] %vm514_vm3, %v589_v42  ;;  %v3372_v47 = vpop.f32.mrb[3].mxu1 }
 0x157   : > { %v1064_v51 = vld [vmem:[#allocation2] sm:$0xf] }
 0x158   : > { %3448 = vmatmul.mubr.msk.bf16.vlgmr.msra.gmra.mrb[16].mxu0 %vm1077_vm2, %v1064_v51  ;;  %v1065_v53 = vld [vmem:[#allocation2 + $0x4] sm:$0xf] }
 0x159   : > { %3454 = vmatmul.mubr.msk.bf16.vlgmr.msra.gmra.mrb[16].mxu1 %vm1077_vm2, %v1065_v53  ;;  %3458 = vmatpush3.bf16.xpose.msra.mxu0 %v1184_v50 }
 0x15a   : > { %3464 = vmatpush3.bf16.xpose.msra.mxu1 %v1235_v52  ;;  %3459 = vmatprep.mubr.msk.bf16.mxu0 %vm3928_vm0, %v5037_v1 }
 0x15b   : > { %3465 = vmatprep.mubr.msk.bf16.mxu1 %vm3928_vm0, %v5037_v1  ;;  %3469 = vmatprep.subr.bf16.mxu0 %v5037_v1 }
 0x15c   : > { %3475 = vmatprep.subr.bf16.mxu1 %v5037_v1 }
 0x15d   : > { %v659_v54 = vpop.f32.mrb[4].mxu0 }
 0x15e   : > { %v665_v55 = vpack.c.bf16 %v659_v54, %v659_v54  ;;  %v735_v56 = vpop.f32.mrb[4].mxu1  ;;  %v3383_v57 = vpop.f32.mrb[5].mxu0 }
 0x15f   : > { %v741_v58 = vpack.c.bf16 %v735_v56, %v735_v56  ;;  %v3395_v59 = vpop.f32.mrb[5].mxu1  ;;  %v662_v60 = vpop.f32.mrb[6].mxu0 }
 0x160   : > { %667 = vst.msk [vmem:[#allocation2 + $0x8] sm:$0xf] %vm514_vm3, %v665_v55  ;;  %v738_v61 = vpop.f32.mrb[6].mxu1  ;;  %v3384_v62 = vpop.f32.mrb[7].mxu0 }
 0x161   : > { %743 = vst.msk [vmem:[#allocation2 + $0xc] sm:$0xf] %vm514_vm3, %v741_v58  ;;  %v3396_v63 = vpop.f32.mrb[7].mxu1 }
 0x167   : > { %v1066_v4 = vld [vmem:[#allocation2 + $0x8] sm:$0xf] }
 0x168   : > { %3460 = vmatmul.mubr.msk.bf16.vlgmr.msra.gmra.mrb[20].mxu0 %vm1077_vm2, %v1066_v4  ;;  %v1067_v6 = vld [vmem:[#allocation2 + $0xc] sm:$0xf] }
 0x169   : > { %3466 = vmatmul.mubr.msk.bf16.vlgmr.msra.gmra.mrb[20].mxu1 %vm1077_vm2, %v1067_v6  ;;  %3470 = vmatpush3.bf16.xpose.msra.mxu0 %v1286_v3 }
 0x16a   : > { %3476 = vmatpush3.bf16.xpose.msra.mxu1 %v1337_v5  ;;  %3471 = vmatprep.mubr.msk.bf16.mxu0 %vm3928_vm0, %v5037_v1 }
 0x16b   : > { %3477 = vmatprep.mubr.msk.bf16.mxu1 %vm3928_vm0, %v5037_v1  ;;  %3481 = vmatprep.subr.bf16.mxu0 %v5037_v1 }
 0x16c   : > { %3487 = vmatprep.subr.bf16.mxu1 %v5037_v1 }
 0x16d   : > { %v811_v7 = vpop.f32.mrb[8].mxu0 }
 0x16e   : > { %v817_v8 = vpack.c.bf16 %v811_v7, %v811_v7  ;;  %v887_v9 = vpop.f32.mrb[8].mxu1  ;;  %v3407_v10 = vpop.f32.mrb[9].mxu0 }
 0x16f   : > { %v893_v11 = vpack.c.bf16 %v887_v9, %v887_v9  ;;  %v3419_v12 = vpop.f32.mrb[9].mxu1  ;;  %v814_v13 = vpop.f32.mrb[10].mxu0 }
 0x170   : > { %819 = vst.msk [vmem:[#allocation2 + $0x10] sm:$0xf] %vm514_vm3, %v817_v8  ;;  %v890_v14 = vpop.f32.mrb[10].mxu1  ;;  %v3408_v15 = vpop.f32.mrb[11].mxu0 }
 0x171   : > { %895 = vst.msk [vmem:[#allocation2 + $0x14] sm:$0xf] %vm514_vm3, %v893_v11  ;;  %v3420_v16 = vpop.f32.mrb[11].mxu1 }
 0x177   : > { %v1068_v20 = vld [vmem:[#allocation2 + $0x10] sm:$0xf] }
 0x178   : > { %3472 = vmatmul.mubr.msk.bf16.vlgmr.msra.gmra.mrb[24].mxu0 %vm1077_vm2, %v1068_v20  ;;  %v1069_v22 = vld [vmem:[#allocation2 + $0x14] sm:$0xf] }
 0x179   : > { %3478 = vmatmul.mubr.msk.bf16.vlgmr.msra.gmra.mrb[24].mxu1 %vm1077_vm2, %v1069_v22  ;;  %3482 = vmatpush3.bf16.xpose.msra.mxu0 %v1388_v19 }
 0x17a   : > { %3488 = vmatpush3.bf16.xpose.msra.mxu1 %v1439_v21  ;;  %3483 = vmatprep.mubr.msk.bf16.mxu0 %vm3928_vm0, %v5037_v1 }
 0x17b   : > { %3489 = vmatprep.mubr.msk.bf16.mxu1 %vm3928_vm0, %v5037_v1  ;;  %3493 = vmatprep.subr.bf16.mxu0 %v5037_v1 }
 0x17c   : > { %3499 = vmatprep.subr.bf16.mxu1 %v5037_v1 }
 0x17d   : > { %v963_v23 = vpop.f32.mrb[12].mxu0 }
 0x17e   : > { %v969_v24 = vpack.c.bf16 %v963_v23, %v963_v23  ;;  %v1039_v25 = vpop.f32.mrb[12].mxu1  ;;  %v3431_v26 = vpop.f32.mrb[13].mxu0 }
 0x17f   : > { %v1045_v27 = vpack.c.bf16 %v1039_v25, %v1039_v25  ;;  %v3443_v28 = vpop.f32.mrb[13].mxu1  ;;  %v966_v29 = vpop.f32.mrb[14].mxu0 }
 0x180   : > { %971 = vst.msk [vmem:[#allocation2 + $0x18] sm:$0xf] %vm514_vm3, %v969_v24  ;;  %v1042_v30 = vpop.f32.mrb[14].mxu1  ;;  %v3432_v31 = vpop.f32.mrb[15].mxu0 }
 0x181   : > { %1047 = vst.msk [vmem:[#allocation2 + $0x1c] sm:$0xf] %vm514_vm3, %v1045_v27  ;;  %v3444_v32 = vpop.f32.mrb[15].mxu1 }
 0x187   : > { %v1070_v33 = vld [vmem:[#allocation2 + $0x18] sm:$0xf] }
 0x188   : > { %3484 = vmatmul.mubr.msk.bf16.vlgmr.msra.gmra.mrb[28].mxu0 %vm1077_vm2, %v1070_v33  ;;  %v1071_v34 = vld [vmem:[#allocation2 + $0x1c] sm:$0xf] }
 0x189   : > { %3490 = vmatmul.mubr.msk.bf16.vlgmr.msra.gmra.mrb[28].mxu1 %vm1077_vm2, %v1071_v34  ;;  %3495 = vmatprep.mubr.msk.bf16.mxu0 %vm3928_vm0, %v5037_v1 }
 0x18a   : > { %3501 = vmatprep.mubr.msk.bf16.mxu1 %vm3928_vm0, %v5037_v1 }
 0x22b   : > { %v1118_v35 = vpop.f32.mrb[16].mxu0 }
 0x22c   : > { %v1169_v36 = vpop.f32.mrb[16].mxu1  ;;  %v3449_v37 = vpop.f32.mrb[17].mxu0  ;;  %v1482_v38 = vsel %vm1481_vm4, %v1118_v35, -inf }
 0x22d   : > { %v3455_v39 = vpop.f32.mrb[17].mxu1  ;;  %1483 = vmax.xlane.f32.xlu0 %v1482_v38  ;;  %v1121_v40 = vpop.f32.mrb[18].mxu0  ;;  %v1485_v43 = vsel %vm1481_vm4, %v1169_v36, -inf }
 0x22e   : > { %v1172_v41 = vpop.f32.mrb[18].mxu1  ;;  %v3450_v42 = vpop.f32.mrb[19].mxu0 }
 0x22f   : > { %v3456_v44 = vpop.f32.mrb[19].mxu1 }
 0x231   : > { %1486 = vmax.xlane.f32.xlu0 %v1485_v43 }
 0x23b   : > { %v1220_v45 = vpop.f32.mrb[20].mxu0 }
 0x23c   : > { %v1271_v46 = vpop.f32.mrb[20].mxu1  ;;  %v3461_v47 = vpop.f32.mrb[21].mxu0  ;;  %v1488_v48 = vsel %vm1481_vm4, %v1220_v45, -inf }
 0x23d   : > { %v3467_v49 = vpop.f32.mrb[21].mxu1  ;;  %1489 = vmax.xlane.f32.xlu1 %v1488_v48  ;;  %v1223_v50 = vpop.f32.mrb[22].mxu0  ;;  %v1491_v53 = vsel %vm1481_vm4, %v1271_v46, -inf }
 0x23e   : > { %v1274_v51 = vpop.f32.mrb[22].mxu1  ;;  %v3462_v52 = vpop.f32.mrb[23].mxu0 }
 0x23f   : > { %v3468_v54 = vpop.f32.mrb[23].mxu1  ;;  %v3733_v52 = vld [vmem:[%s4225_s26] sm:$0xff]  }
 0x240   : > { %3494 = vmatpush3.bf16.msra.mxu0 %v3733_v52 }
 0x241   : > { %1492 = vmax.xlane.f32.xlu1 %v1491_v53  ;;  %v3734_v53 = vld [vmem:[%s4225_s26 + $0x8] sm:$0xff]   ;;  %3505 = vmatprep.subr.bf16.mxu0 %v5037_v1  ;;  %s4456_s26 = sld [smem:[#allocation6 + $0x186]] }
 0x242   : > { %3500 = vmatpush3.bf16.msra.mxu1 %v3734_v53  ;;  %v1691_v53 = vstv %s4483_s13  ;;  %s5205_s13 = sld [smem:[#allocation69_spill]] }
 0x243   : > { %3511 = vmatprep.subr.bf16.mxu1 %v5037_v1 }
 0x247   : > { %5118 = sst [smem:[#allocation60_spill]] %s4456_s26  ;;  %s4473_s26 = sld [smem:[#allocation6 + $0x286]] }
 0x24b   : > { %v1322_v55 = vpop.f32.mrb[24].mxu0 }
 0x24c   : > { %v1373_v56 = vpop.f32.mrb[24].mxu1  ;;  %v3473_v57 = vpop.f32.mrb[25].mxu0  ;;  %v1494_v58 = vsel %vm1481_vm4, %v1322_v55, -inf }
 0x24d   : > { %v3479_v59 = vpop.f32.mrb[25].mxu1  ;;  %v1497_v60 = vsel %vm1481_vm4, %v1373_v56, -inf  ;;  %1495 = vmax.xlane.f32.xlu0 %v1494_v58  ;;  %v1325_v61 = vpop.f32.mrb[26].mxu0  ;;  %5126 = sst [smem:[#allocation68_spill]] %s4473_s26 }
 0x24e   : > { %v1376_v62 = vpop.f32.mrb[26].mxu1  ;;  %1498 = vmax.xlane.f32.xlu1 %v1497_v60  ;;  %v3474_v63 = vpop.f32.mrb[27].mxu0 }
 0x24f   : > { %v3480_v0 = vpop.f32.mrb[27].mxu1 }
 0x25b   : > { %v1424_v2 = vpop.f32.mrb[28].mxu0 }
 0x25c   : > { %v1475_v3 = vpop.f32.mrb[28].mxu1  ;;  %v3485_v4 = vpop.f32.mrb[29].mxu0  ;;  %v1500_v5 = vsel %vm1481_vm4, %v1424_v2, -inf }
 0x25d   : > { %v3491_v6 = vpop.f32.mrb[29].mxu1  ;;  %v1503_v7 = vsel %vm1481_vm4, %v1475_v3, -inf  ;;  %1501 = vmax.xlane.f32.xlu0 %v1500_v5  ;;  %v1427_v8 = vpop.f32.mrb[30].mxu0  ;;  %v1580_v5 = vstv %s4392_s19  ;;  %s4502_s19 = sld [smem:[#allocation6 + $0x380]] }
 0x25e   : > { %v1478_v9 = vpop.f32.mrb[30].mxu1  ;;  %1504 = vmax.xlane.f32.xlu1 %v1503_v7  ;;  %v3486_v10 = vpop.f32.mrb[31].mxu0  ;;  %v1628_v6 = vstv %s4394_s17  ;;  %v1672_v7 = vstv %s4396_s15  ;;  %v1716_v8 = vstv %s4398_s29  ;;  %s4504_s15 = sld [smem:[#allocation6 + $0x381]]  ;;  %s4510_s17 = sld [smem:[#allocation6 + $0x382]] }
 0x25f   : > { %v3492_v11 = vpop.f32.mrb[31].mxu1  ;;  %v1760_v9 = vstv %s4401_s18  ;;  %v1804_v10 = vstv %s4403_s27  ;;  %s4512_s18 = sld [smem:[#allocation6 + $0x383]]  ;;  %s5136_s29 = sld [smem:[#allocation52_spill]] }
 0x260   : > { %v1848_v11 = vstv %s4405_s1  ;;  %s5135_s27 = sld [smem:[#allocation51_spill]]  ;;  %s5139_s1 = sld [smem:[#allocation54_spill]] }
 0x263   : > { %5131 = sst [smem:[#allocation73_spill]] %s4502_s19  ;;  %s5137_s19 = sld [smem:[#allocation53_spill]] }
 0x264   : > { %5132 = sst [smem:[#allocation74_spill]] %s4504_s15  ;;  %s4518_s15 = sld [smem:[#allocation6 + $0x384]] }
 0x265   : > { %5133 = sst [smem:[#allocation75_spill]] %s4510_s17  ;;  %s5143_s17 = sld [smem:[#allocation57_spill]] }
 0x266   : > { %5134 = sst [smem:[#allocation76_spill]] %s4512_s18  ;;  %s4526_s18 = sld [smem:[#allocation6 + $0x386]] }
 0x26a   : > { %5138 = sst [smem:[#allocation77_spill]] %s4518_s15  ;;  %s1946_s15 = sld [smem:[#allocation11]] }
 0x26c   : > { %5144 = sst [smem:[#allocation79_spill]] %s4526_s18 }
 0x2ba   : > { %v1484_v12 = vpop.xlane.xlu0 %1483 }
 0x2bb   : > { %v1506_v13 = vsub.f32 %v1118_v35, %v1484_v12  ;;  %v1892_v12 = vstv %s4407_s21  ;;  %s4520_s21 = sld [smem:[#allocation6 + $0x385]] }
 0x2bd   : > { %v1514_v14 = vmul.f32 1.442695, %v1506_v13  ;;  %v1585_v13 = vstv %s4410_s20  ;;  %s5141_s20 = sld [smem:[#allocation55_spill]] }
 0x2be   : > { %v1487_v15 = vpop.xlane.xlu0 %1486 }
 0x2bf   : > { %3741 = vpow2.f32 %v1514_v14  ;;  %v1507_v16 = vsub.f32 %v1169_v36, %v1487_v15  ;;  %v1632_v14 = vstv %s4412_s28  ;;  %v1676_v15 = vstv %s4414_s22  ;;  %s5142_s28 = sld [smem:[#allocation56_spill]] }
 0x2c0   : > { %s4534_s22 = sld [smem:[#allocation6 + $0x300]] }
 0x2c1   : > { %v1516_v17 = vmul.f32 1.442695, %v1507_v16  ;;  %v1720_v16 = vstv %s4416_s25  ;;  %5140 = sst [smem:[#allocation78_spill]] %s4520_s21  ;;  %s4528_s25 = sld [smem:[#allocation6 + $0x387]] }
 0x2c3   : > { %3743 = vpow2.f32 %v1516_v17  ;;  %v1764_v17 = vstv %s4419_s0  ;;  %s5147_s0 = sld [smem:[#allocation61_spill]] }
 0x2c6   : > { %5148 = sst [smem:[#allocation61_spill]] %s4534_s22  ;;  %s4550_s22 = sld [smem:[#allocation6 + $0x304]] }
 0x2c7   : > { %5145 = sst [smem:[#allocation80_spill]] %s4528_s25  ;;  %s5215_s21 = sld [smem:[#allocation61_spill]] }
 0x2c9   : > { %v4356_v18 = vpop.eup %3741 }
 0x2ca   : > { %v1490_v19 = vpop.xlane.xlu1 %1489  ;;  %v1530_v20 = vsel %vm1481_vm4, %v4356_v18, 0.0 }
 0x2cb   : > { %v1508_v21 = vsub.f32 %v1220_v45, %v1490_v19  ;;  %1531 = vadd.xlane.f32.xlu0 %v1530_v20  ;;  %v1852_v19 = vstv %s4423_s3  ;;  %v1896_v20 = vstv %s4425_s4  ;;  %s5149_s3 = sld [smem:[#allocation62_spill]]  ;;  %s4536_s4 = sld [smem:[#allocation6 + $0x301]] }
 0x2cd   : > { %v4360_v22 = vpop.eup %3743  ;;  %v1518_v23 = vmul.f32 1.442695, %v1508_v21  ;;  %v1591_v21 = vstv %s4428_s5  ;;  %s5151_s5 = sld [smem:[#allocation63_spill]] }
 0x2ce   : > { %v1493_v24 = vpop.xlane.xlu1 %1492  ;;  %v1533_v25 = vsel %vm1481_vm4, %v4360_v22, 0.0 }
 0x2cf   : > { %3745 = vpow2.f32 %v1518_v23  ;;  %v1509_v26 = vsub.f32 %v1271_v46, %v1493_v24  ;;  %1534 = vadd.xlane.f32.xlu1 %v1533_v25  ;;  %v1681_v23 = vstv %s4432_s14  ;;  %v1725_v24 = vstv %s4434_s11  ;;  %s5153_s14 = sld [smem:[#allocation66_spill]]  ;;  %s4544_s11 = sld [smem:[#allocation6 + $0x303]] }
 0x2d0   : > { %v1769_v25 = vstv %s4436_s24  ;;  %s5155_s24 = sld [smem:[#allocation67_spill]] }
 0x2d1   : > { %v1520_v27 = vmul.f32 1.442695, %v1509_v26  ;;  %v1813_v26 = vstv %s5135_s27  ;;  %5150 = sst [smem:[#allocation62_spill]] %s4536_s4 }
 0x2d2   : > { %s5157_s4 = sld [smem:[#allocation70_spill]] }
 0x2d3   : > { %3747 = vpow2.f32 %v1520_v27  ;;  %v1857_v27 = vstv %s5136_s29  ;;  %s5209_s29 = sld [smem:[#allocation76_spill]] }
 0x2d5   : > { %5154 = sst [smem:[#allocation81_spill]] %s4544_s11  ;;  %s4750_s11 = sld [smem:[#allocation11 + $0x3]] }
 0x2d9   : > { %v4364_v28 = vpop.eup %3745 }
 0x2da   : > { %v1496_v29 = vpop.xlane.xlu0 %1495  ;;  %v1536_v30 = vsel %vm1481_vm4, %v4364_v28, 0.0 }
 0x2db   : > { %v1499_v31 = vpop.xlane.xlu1 %1498  ;;  %v1510_v32 = vsub.f32 %v1322_v55, %v1496_v29  ;;  %1537 = vadd.xlane.f32.xlu0 %v1536_v30  ;;  %v1597_v29 = vstv %s5139_s1  ;;  %v1642_v30 = vstv %s5141_s20  ;;  %s4552_s1 = sld [smem:[#allocation6 + $0x305]]  ;;  %s5160_s20 = sld [smem:[#allocation72_spill]] }
 0x2dc   : > { %v1511_v33 = vsub.f32 %v1373_v56, %v1499_v31  ;;  %v1686_v31 = vstv %s5142_s28  ;;  %s4558_s28 = sld [smem:[#allocation6 + $0x306]] }
 0x2dd   : > { %v4368_v34 = vpop.eup %3747  ;;  %v1522_v35 = vmul.f32 1.442695, %v1510_v32  ;;  %v1730_v32 = vstv %s5143_s17  ;;  %s5208_s17 = sld [smem:[#allocation75_spill]] }
 0x2de   : > { %v1524_v36 = vmul.f32 1.442695, %v1511_v33  ;;  %v1539_v37 = vsel %vm1481_vm4, %v4368_v34, 0.0  ;;  %v1774_v33 = vstv %s4452_s10  ;;  %s4560_s10 = sld [smem:[#allocation6 + $0x307]] }
 0x2df   : > { %3749 = vpow2.f32 %v1522_v35  ;;  %1540 = vadd.xlane.f32.xlu1 %v1539_v37  ;;  %v1609_v37 = vstv %s5149_s3  ;;  %s5212_s3 = sld [smem:[#allocation78_spill]] }
 0x2e0   : > { %3751 = vpow2.f32 %v1524_v36  ;;  %v1906_v36 = vstv %s5147_s0  ;;  %s4762_s0 = sld [smem:[#allocation9 + $0x5]] }
 0x2e1   : > { %5159 = sst [smem:[#allocation70_spill]] %s4552_s1 }
 0x2e2   : > { %s5219_s27 = sld [smem:[#allocation70_spill]] }
 0x2e4   : > { %5162 = sst [smem:[#allocation72_spill]] %s4560_s10  ;;  %s4748_s10 = sld [smem:[#allocation11 + $0x2]] }
 0x2e9   : > { %v4372_v38 = vpop.eup %3749 }
 0x2ea   : > { %v4374_v39 = vpop.eup %3751  ;;  %v1502_v40 = vpop.xlane.xlu0 %1501  ;;  %v1542_v41 = vsel %vm1481_vm4, %v4372_v38, 0.0 }
 0x2eb   : > { %v1505_v42 = vpop.xlane.xlu1 %1504  ;;  %v1512_v43 = vsub.f32 %v1424_v2, %v1502_v40  ;;  %v1545_v44 = vsel %vm1481_vm4, %v4374_v39, 0.0  ;;  %1543 = vadd.xlane.f32.xlu0 %v1542_v41  ;;  %v1652_v40 = vstv %s5151_s5  ;;  %v1696_v41 = vstv %s4464_s23  ;;  %s3204_s23 = sld [smem:[#allocation11 + $0x1]] }
 0x2ec   : > { %v1513_v45 = vsub.f32 %v1475_v3, %v1505_v42  ;;  %1546 = vadd.xlane.f32.xlu1 %v1545_v44  ;;  %v1740_v42 = vstv %s4466_s8  ;;  %v1828_v44 = vstv %s5155_s24  ;;  %s4742_s8 = sld [smem:[#allocation9 + $0x3]]  ;;  %s4760_s24 = sld [smem:[#allocation9 + $0x4]] }
 0x2ed   : > { %v1526_v46 = vmul.f32 1.442695, %v1512_v43  ;;  %v1784_v43 = vstv %s5153_s14  ;;  %s5236_s14 = sld [smem:[#allocation29_spill]] }
 0x2ee   : > { %v1528_v47 = vmul.f32 1.442695, %v1513_v45 }
 0x2ef   : > { %3753 = vpow2.f32 %v1526_v46  ;;  %v1872_v46 = vstv %s4473_s26 }
 0x2f0   : > { %3755 = vpow2.f32 %v1528_v47  ;;  %v1882_v47 = vstv %s4526_s18  ;;  %s5210_s18 = sld [smem:[#allocation77_spill]] }
 0x2f9   : > { %v4380_v48 = vpop.eup %3753 }
 0x2fa   : > { %v4382_v49 = vpop.eup %3755  ;;  %v1548_v50 = vsel %vm1481_vm4, %v4380_v48, 0.0 }
 0x2fb   : > { %v1551_v51 = vsel %vm1481_vm4, %v4382_v49, 0.0  ;;  %1549 = vadd.xlane.f32.xlu0 %v1548_v50  ;;  %v1603_v50 = vstv %s5157_s4  ;;  %s4769_s4 = sld [smem:[#allocation11 + $0x4]] }
 0x2fc   : > { %1552 = vadd.xlane.f32.xlu1 %v1551_v51 }
 0x358   : > { %v1532_v54 = vpop.xlane.xlu0 %1531 }
 0x359   : > { %3757 = vrcp.f32 %v1532_v54  ;;  %v1735_v54 = vstv %s5160_s20  ;;  %s5216_s20 = sld [smem:[#allocation62_spill]] }
 0x35c   : > { %v1535_v55 = vpop.xlane.xlu1 %1534 }
 0x35d   : > { %3759 = vrcp.f32 %v1535_v55  ;;  %v1779_v55 = vstv %s4487_s30  ;;  %s4771_s30 = sld [smem:[#allocation11 + $0x5]] }
 0x363   : > { %v3758_v56 = vpop.eup %3757 }
 0x364   : > { %v1562_v57 = vmul.f32 %v3758_v56, %v4356_v18  ;;  %v1808_v18 = vstv %s4421_s2  ;;  %s5146_s2 = sld [smem:[#allocation60_spill]]  ;;  %v1823_v56 = vstv %s4489_s16  ;;  %s5206_s16 = sld [smem:[#allocation73_spill]] }
 0x366   : > { %1570 = vst.msk [vmem:[#allocation3] sm:$0xff] %vm1481_vm4, %v1562_v57  ;;  %v1867_v57 = vstv %s4495_s9  ;;  %s4786_s9 = sld [smem:[#allocation9 + $0x6]] }
 0x367   : > { %v3760_v58 = vpop.eup %3759 }
 0x368   : > { %v1563_v59 = vmul.f32 %v3760_v58, %v4360_v22  ;;  %v1538_v60 = vpop.xlane.xlu0 %1537  ;;  %v1637_v22 = vstv %s4430_s6  ;;  %s4542_s6 = sld [smem:[#allocation6 + $0x302]]  ;;  %v1911_v58 = vstv %s4497_s12  ;;  %s4788_s12 = sld [smem:[#allocation9 + $0x7]] }
 0x369   : > { %3761 = vrcp.f32 %v1538_v60 }
 0x36a   : > { %1571 = vst.msk [vmem:[#allocation3 + $0x8] sm:$0xff] %vm1481_vm4, %v1563_v59  ;;  %v1862_v35 = vstv %s5146_s2  ;;  %v1926_v59 = vstv %s4528_s25  ;;  %s5218_s25 = sld [smem:[#allocation81_spill]] }
 0x36b   : > { %s3203_s2 = sld [smem:[#allocation9 + $0x1]] }
 0x36c   : > { %v1541_v61 = vpop.xlane.xlu1 %1540 }
 0x36d   : > { %3763 = vrcp.f32 %v1541_v61 }
 0x36e   : > { %5152 = sst [smem:[#allocation63_spill]] %s4542_s6  ;;  %s4740_s6 = sld [smem:[#allocation9 + $0x2]] }
 0x373   : > { %v3762_v62 = vpop.eup %3761 }
 0x374   : > { %v1564_v63 = vmul.f32 %v3762_v62, %v4364_v28  ;;  %v1901_v28 = vstv %s5137_s19  ;;  %s5158_s19 = sld [smem:[#allocation71_spill]] }
 0x375   : > { %5161 = sst [smem:[#allocation71_spill]] %s4558_s28 }
 0x376   : > { %1572 = vst.msk [vmem:[#allocation3 + $0x10] sm:$0xff] %vm1481_vm4, %v1564_v63  ;;  %s5217_s28 = sld [smem:[#allocation63_spill]] }
 0x377   : > { %v3764_v0 = vpop.eup %3763  ;;  %s5221_s26 = sld [smem:[#allocation71_spill]] }
 0x378   : > { %v1565_v2 = vmul.f32 %v3764_v0, %v4368_v34  ;;  %v1544_v3 = vpop.xlane.xlu0 %1543  ;;  %v1818_v34 = vstv %s4454_s7  ;;  %s5223_s7 = sld [smem:[#allocation72_spill]] }
 0x379   : > { %v1547_v4 = vpop.xlane.xlu1 %1546  ;;  %3765 = vrcp.f32 %v1544_v3  ;;  %v1583_v3 = vld [vmem:[#allocation3 + $0x8] sm:$0xff] }
 0x37a   : > { %1573 = vst.msk [vmem:[#allocation3 + $0x18] sm:$0xff] %vm1481_vm4, %v1565_v2  ;;  %3767 = vrcp.f32 %v1547_v4  ;;  %v1647_v51 = vstv %s5158_s19  ;;  %v1578_v2 = vld [vmem:[#allocation3] sm:$0xff]  ;;  %v1853_v0 = vmul.f32 %v1852_v19, %v1583_v3  ;;  %s5207_s19 = sld [smem:[#allocation74_spill]] }
 0x37b   : > { %v1581_v63 = vmul.f32 %v1580_v5, %v1578_v2  ;;  %v1629_v61 = vmul.f32 %v1628_v6, %v1578_v2  ;;  %v1849_v6 = vmul.f32 %v1848_v11, %v1578_v2  ;;  %v1897_v11 = vmul.f32 %v1896_v20, %v1583_v3 }
 0x37d   : > { %v1589_v5 = vld [vmem:[#allocation3 + $0x10] sm:$0xff] }
 0x37e   : > { %v1902_v19 = vmul.f32 %v1901_v28, %v1589_v5 }
 0x383   : > { %v3766_v45 = vpop.eup %3765 }
 0x384   : > { %v3768_v52 = vpop.eup %3767  ;;  %v1566_v1 = vmul.f32 %v3766_v45, %v4372_v38  ;;  %v1717_v45 = vmul.f32 %v1716_v8, %v1578_v2  ;;  %v1721_v8 = vmul.f32 %v1720_v16, %v1583_v3  ;;  %v1770_v16 = vmul.f32 %v1769_v25, %v1589_v5 }
 0x385   : > { %v1567_v4 = vmul.f32 %v3768_v52, %v4374_v39  ;;  %v1761_v52 = vmul.f32 %v1760_v9, %v1578_v2  ;;  %v1805_v39 = vmul.f32 %v1804_v10, %v1578_v2  ;;  %v1765_v9 = vmul.f32 %v1764_v17, %v1583_v3 }
 0x386   : > { %1574 = vst.msk [vmem:[#allocation3 + $0x20] sm:$0xff] %vm1481_vm4, %v1566_v1  ;;  %v1673_v1 = vmul.f32 %v1672_v7, %v1578_v2  ;;  %v1677_v7 = vmul.f32 %v1676_v15, %v1583_v3  ;;  %v1809_v10 = vmul.f32 %v1808_v18, %v1583_v3  ;;  %v1726_v15 = vmul.f32 %v1725_v24, %v1589_v5 }
 0x387   : > { %1575 = vst.msk [vmem:[#allocation3 + $0x28] sm:$0xff] %vm1481_vm4, %v1567_v4  ;;  %v1586_v4 = vmul.f32 %v1585_v13, %v1583_v3  ;;  %v1893_v13 = vmul.f32 %v1892_v12, %v1578_v2  ;;  %v1592_v12 = vmul.f32 %v1591_v21, %v1589_v5  ;;  %v1595_v2 = vld [vmem:[#allocation3 + $0x18] sm:$0xff]  ;;  %v1814_v18 = vmul.f32 %v1813_v26, %v1589_v5 }
 0x388   : > { %v1550_v62 = vpop.xlane.xlu0 %1549  ;;  %v1678_v20 = vadd.f32 %v1677_v7, %v1673_v1  ;;  %v1766_v21 = vadd.f32 %v1765_v9, %v1761_v52  ;;  %v1907_v9 = vmul.f32 %v1906_v36, %v1595_v2 }
 0x389   : > { %v1553_v60 = vpop.xlane.xlu1 %1552  ;;  %v1587_v38 = vadd.f32 %v1586_v4, %v1581_v63  ;;  %v1858_v63 = vmul.f32 %v1857_v27, %v1589_v5  ;;  %v1898_v24 = vadd.f32 %v1897_v11, %v1893_v13  ;;  %v1819_v13 = vmul.f32 %v1818_v34, %v1595_v2 }
 0x38a   : > { %3769 = vrcp.f32 %v1553_v60  ;;  %v1633_v60 = vmul.f32 %v1632_v14, %v1583_v3  ;;  %v1638_v14 = vmul.f32 %v1637_v22, %v1589_v5  ;;  %v1722_v3 = vadd.f32 %v1721_v8, %v1717_v45 }
 0x38b   : > { %3771 = vrcp.f32 %v1550_v62  ;;  %v1682_v62 = vmul.f32 %v1681_v23, %v1589_v5  ;;  %v1810_v22 = vadd.f32 %v1809_v10, %v1805_v39  ;;  %v1854_v23 = vadd.f32 %v1853_v0, %v1849_v6 }
 0x38c   : > { %v1634_v17 = vadd.f32 %v1633_v60, %v1629_v61  ;;  %v1593_v25 = vadd.f32 %v1592_v12, %v1587_v38  ;;  %v1598_v61 = vmul.f32 %v1597_v29, %v1595_v2  ;;  %v1727_v27 = vadd.f32 %v1726_v15, %v1722_v3 }
 0x38d   : > { %v1683_v26 = vadd.f32 %v1682_v62, %v1678_v20  ;;  %v1771_v28 = vadd.f32 %v1770_v16, %v1766_v21  ;;  %v1601_v45 = vld [vmem:[#allocation3 + $0x20] sm:$0xff]  ;;  %v1815_v39 = vadd.f32 %v1814_v18, %v1810_v22  ;;  %v1859_v0 = vadd.f32 %v1858_v63, %v1854_v23 }
 0x38e   : > { %v1639_v4 = vadd.f32 %v1638_v14, %v1634_v17  ;;  %v1903_v1 = vadd.f32 %v1902_v19, %v1898_v24  ;;  %v1643_v38 = vmul.f32 %v1642_v30, %v1595_v2  ;;  %v1687_v29 = vmul.f32 %v1686_v31, %v1595_v2 }
 0x38f   : > { %v1731_v5 = vmul.f32 %v1730_v32, %v1595_v2  ;;  %v1775_v6 = vmul.f32 %v1774_v33, %v1595_v2  ;;  %v1599_v7 = vadd.f32 %v1598_v61, %v1593_v25  ;;  %v1863_v8 = vmul.f32 %v1862_v35, %v1595_v2 }
 0x390   : > { %v1604_v10 = vmul.f32 %v1603_v50, %v1601_v45  ;;  %v1648_v30 = vmul.f32 %v1647_v51, %v1601_v45  ;;  %v1692_v11 = vmul.f32 %v1691_v53, %v1601_v45  ;;  %v1736_v31 = vmul.f32 %v1735_v54, %v1601_v45 }
 0x391   : > { %v1780_v33 = vmul.f32 %v1779_v55, %v1601_v45  ;;  %v1824_v34 = vmul.f32 %v1823_v56, %v1601_v45  ;;  %v1868_v12 = vmul.f32 %v1867_v57, %v1601_v45  ;;  %v1912_v35 = vmul.f32 %v1911_v58, %v1601_v45  ;;  %v1607_v55 = vld [vmem:[#allocation3 + $0x28] sm:$0xff] }
 0x392   : > { %v1644_v14 = vadd.f32 %v1643_v38, %v1639_v4  ;;  %v1688_v36 = vadd.f32 %v1687_v29, %v1683_v26  ;;  %v1732_v62 = vadd.f32 %v1731_v5, %v1727_v27  ;;  %v1776_v51 = vadd.f32 %v1775_v6, %v1771_v28 }
 0x393   : > { %v1864_v53 = vadd.f32 %v1863_v8, %v1859_v0  ;;  %v1908_v54 = vadd.f32 %v1907_v9, %v1903_v1  ;;  %v1605_v56 = vadd.f32 %v1604_v10, %v1599_v7  ;;  %v1610_v18 = vmul.f32 %v1609_v37, %v1607_v55 }
 0x394   : > { %v3770_v52 = vpop.eup %3769  ;;  %v1649_v57 = vadd.f32 %v1648_v30, %v1644_v14  ;;  %v1693_v58 = vadd.f32 %v1692_v11, %v1688_v36  ;;  %v1737_v15 = vadd.f32 %v1736_v31, %v1732_v62  ;;  %v1781_v16 = vadd.f32 %v1780_v33, %v1776_v51 }
 0x395   : > { %v3772_v60 = vpop.eup %3771  ;;  %v1569_v32 = vmul.f32 %v3770_v52, %v4382_v49  ;;  %v1820_v49 = vadd.f32 %v1819_v13, %v1815_v39  ;;  %v1869_v2 = vadd.f32 %v1868_v12, %v1864_v53  ;;  %v1913_v17 = vadd.f32 %v1912_v35, %v1908_v54 }
 0x396   : > { %v1568_v50 = vmul.f32 %v3772_v60, %v4380_v48  ;;  %v1653_v63 = vmul.f32 %v1652_v40, %v1607_v55  ;;  %v1697_v19 = vmul.f32 %v1696_v41, %v1607_v55  ;;  %v1741_v20 = vmul.f32 %v1740_v42, %v1607_v55 }
 0x397   : > { %1577 = vst.msk [vmem:[#allocation3 + $0x38] sm:$0xff] %vm1481_vm4, %v1569_v32  ;;  %v1825_v48 = vadd.f32 %v1824_v34, %v1820_v49  ;;  %v1785_v3 = vmul.f32 %v1784_v43, %v1607_v55  ;;  %v1829_v21 = vmul.f32 %v1828_v44, %v1607_v55  ;;  %v1873_v22 = vmul.f32 %v1872_v46, %v1607_v55 }
 0x398   : > { %1576 = vst.msk [vmem:[#allocation3 + $0x30] sm:$0xff] %vm1481_vm4, %v1568_v50  ;;  %v5211_v23 = vstv %s5205_s13  ;;  %v1611_v40 = vadd.f32 %v1610_v18, %v1605_v56  ;;  %v1654_v24 = vadd.f32 %v1653_v63, %v1649_v57  ;;  %v1698_v41 = vadd.f32 %v1697_v19, %v1693_v58  ;;  %s4795_s13 = sld [smem:[#allocation11 + $0x6]] }
 0x399   : > { %v1917_v37 = vmul.f32 %v5211_v23, %v1607_v55  ;;  %v1742_v25 = vadd.f32 %v1741_v20, %v1737_v15  ;;  %v1786_v43 = vadd.f32 %v1785_v3, %v1781_v16  ;;  %v1830_v61 = vadd.f32 %v1829_v21, %v1825_v48 }
 0x39a   : > { %v1874_v44 = vadd.f32 %v1873_v22, %v1869_v2  ;;  %v5220_v4 = vstv %s5206_s16  ;;  %v5222_v27 = vstv %s5207_s19  ;;  %v5224_v45 = vstv %s5208_s17  ;;  %s4797_s16 = sld [smem:[#allocation11 + $0x7]] }
 0x39b   : > { %v1918_v46 = vadd.f32 %v1917_v37, %v1913_v17  ;;  %v5225_v39 = vstv %s5209_s29  ;;  %v5226_v1 = vstv %s5210_s18  ;;  %v5227_v29 = vstv %s5212_s3  ;;  %s5238_s29 = sld [smem:[#allocation89_spill]]  ;;  %s5244_s18 = sld [smem:[#allocation91_spill]] }
 0x39c   : > { %v5228_v7 = vstv %s5215_s21  ;;  %v5229_v9 = vstv %s5216_s20  ;;  %v5230_v30 = vstv %s5217_s28  ;;  %v5231_v31 = vstv %s5218_s25  ;;  %s3929_s21 = smov [#allocation12]  }
 0x39d   : > { %v5232_v33 = vstv %s4550_s22  ;;  %v5233_v12 = vstv %s5219_s27  ;;  %v5234_v14 = vstv %s5221_s26  ;;  %v5235_v62 = vstv %s5223_s7  ;;  %s1943_s22 = sld [smem:[#allocation9]]  ;;  %s3824_s20 = sshll.u32 %s3929_s21, 4  ;;  %s3825_s20 = int_to_ptr.vmem [resolvable:$false] %s3824_s20 }
 0x39e   : > { %v1619_v42 = vld [vmem:[#allocation3 + $0x38] sm:$0xff]  ;;  %s3826_s28 = scalar_lea.vmem %s3825_s20, 256 }
 0x39f   : > { %v1622_v26 = vmul.f32 %v5220_v4, %v1619_v42  ;;  %v1663_v28 = vmul.f32 %v5222_v27, %v1619_v42  ;;  %v1707_v52 = vmul.f32 %v5224_v45, %v1619_v42  ;;  %v1751_v0 = vmul.f32 %v5225_v39, %v1619_v42  ;;  %v1613_v60 = vld [vmem:[#allocation3 + $0x30] sm:$0xff] }
 0x3a0   : > { %v1795_v38 = vmul.f32 %v5226_v1, %v1619_v42  ;;  %v1839_v5 = vmul.f32 %v5227_v29, %v1619_v42  ;;  %v1883_v6 = vmul.f32 %v1882_v47, %v1619_v42  ;;  %v1927_v13 = vmul.f32 %v1926_v59, %v1619_v42 }
 0x3a1   : > { %v1616_v8 = vmul.f32 %v5228_v7, %v1613_v60  ;;  %v1658_v10 = vmul.f32 %v5229_v9, %v1613_v60  ;;  %v1702_v11 = vmul.f32 %v5230_v30, %v1613_v60  ;;  %v1746_v32 = vmul.f32 %v5231_v31, %v1613_v60 }
 0x3a2   : > { %v1790_v34 = vmul.f32 %v5232_v33, %v1613_v60  ;;  %v1834_v35 = vmul.f32 %v5233_v12, %v1613_v60  ;;  %v1878_v36 = vmul.f32 %v5234_v14, %v1613_v60  ;;  %v1922_v50 = vmul.f32 %v5235_v62, %v1613_v60 }
 0x3a3   : > { %v1617_v47 = vadd.f32 %v1616_v8, %v1611_v40  ;;  %v1659_v51 = vadd.f32 %v1658_v10, %v1654_v24  ;;  %v1703_v59 = vadd.f32 %v1702_v11, %v1698_v41  ;;  %v1747_v49 = vadd.f32 %v1746_v32, %v1742_v25 }
 0x3a4   : > { %v1791_v53 = vadd.f32 %v1790_v34, %v1786_v43  ;;  %v1835_v54 = vadd.f32 %v1834_v35, %v1830_v61  ;;  %v1879_v55 = vadd.f32 %v1878_v36, %v1874_v44  ;;  %v1923_v56 = vadd.f32 %v1922_v50, %v1918_v46 }
 0x3a5   : > { %v1623_v57 = vadd.f32 %v1622_v26, %v1617_v47  ;;  %v1664_v58 = vadd.f32 %v1663_v28, %v1659_v51  ;;  %v1708_v15 = vadd.f32 %v1707_v52, %v1703_v59  ;;  %v1752_v16 = vadd.f32 %v1751_v0, %v1747_v49  ;;  %v3735_v59 = vld [vmem:[%s5236_s14 + $0x10] sm:$0xff]   ;;  %v3736_v49 = vld [vmem:[%s5236_s14 + $0x18] sm:$0xff]  }
 0x3a6   : > { %v1796_v48 = vadd.f32 %v1795_v38, %v1791_v53  ;;  %v1840_v2 = vadd.f32 %v1839_v5, %v1835_v54  ;;  %v1884_v17 = vadd.f32 %v1883_v6, %v1879_v55  ;;  %v1928_v18 = vadd.f32 %v1927_v13, %v1923_v56 }
 0x3a7   : > { %v1625_v63 = vmul.f32 %v1623_v57, %v1623_v57  ;;  %v1667_v19 = vadd.f32 %v1664_v58, %v1623_v57  ;;  %v1668_v20 = vmul.f32 %v1664_v58, %v1664_v58  ;;  %1624 = vst.msk [vmem:[#allocation4] sm:$0xff] %vm1481_vm4, %v1623_v57  ;;  %1666 = vst.msk [vmem:[#allocation4 + $0x8] sm:$0xff] %vm1481_vm4, %v1664_v58  ;;  %v1944_v7 = vstv %s1943_s22 }
 0x3a8   : > { %1710 = vst.msk [vmem:[#allocation4 + $0x10] sm:$0xff] %vm1481_vm4, %v1708_v15  ;;  %1754 = vst.msk [vmem:[#allocation4 + $0x18] sm:$0xff] %vm1481_vm4, %v1752_v16  ;;  %v1712_v22 = vmul.f32 %v1708_v15, %v1708_v15  ;;  %v1756_v40 = vmul.f32 %v1752_v16, %v1752_v16  ;;  %v1800_v25 = vmul.f32 %v1796_v48, %v1796_v48  ;;  %v2007_v8 = vstv %s3203_s2 }
 0x3a9   : > { %1798 = vst.msk [vmem:[#allocation4 + $0x20] sm:$0xff] %vm1481_vm4, %v1796_v48  ;;  %1842 = vst.msk [vmem:[#allocation4 + $0x28] sm:$0xff] %vm1481_vm4, %v1840_v2  ;;  %v1669_v3 = vadd.f32 %v1668_v20, %v1625_v63  ;;  %v1711_v21 = vadd.f32 %v1708_v15, %v1667_v19  ;;  %v1844_v61 = vmul.f32 %v1840_v2, %v1840_v2  ;;  %v1947_v33 = vstv %s1946_s15 }
 0x3aa   : > { %1886 = vst.msk [vmem:[#allocation4 + $0x30] sm:$0xff] %vm1481_vm4, %v1884_v17  ;;  %1930 = vst.msk [vmem:[#allocation4 + $0x38] sm:$0xff] %vm1481_vm4, %v1928_v18  ;;  %v1888_v4 = vmul.f32 %v1884_v17, %v1884_v17  ;;  %v1932_v28 = vmul.f32 %v1928_v18, %v1928_v18  ;;  %v2010_v34 = vstv %s3204_s23  ;;  %v2072_v62 = vstv %s4740_s6  ;;  %s5239_s23 = sld [smem:[#allocation17_spill]]  ;;  %s5240_s6 = sld [smem:[#allocation20_spill]] }
 0x3ab   : > { %v1713_v23 = vadd.f32 %v1712_v22, %v1669_v3  ;;  %v1755_v37 = vadd.f32 %v1752_v16, %v1711_v21  ;;  %v2137_v50 = vstv %s4742_s8  ;;  %v2075_v58 = vstv %s4748_s10  ;;  %v3737_v22 = vld [vmem:[%s5236_s14 + $0x20] sm:$0xff]   ;;  %s5241_s8 = sld [smem:[#allocation19_spill]] }
 0x3ac   : > { %v2140_v15 = vstv %s4750_s11  ;;  %v2202_v3 = vstv %s4760_s24  ;;  %v2267_v21 = vstv %s4762_s0 }
 0x3ad   : > { %v1757_v24 = vadd.f32 %v1756_v40, %v1713_v23  ;;  %v1799_v41 = vadd.f32 %v1796_v48, %v1755_v37  ;;  %v3738_v23 = vld [vmem:[%s5236_s14 + $0x28] sm:$0xff]  }
 0x3ae   : > { %v1940_v29 = vld [vmem:[#allocation4] sm:$0xff]  ;;  %v2003_v5 = vld [vmem:[#allocation4 + $0x8] sm:$0xff] }
 0x3af   : > { %v1801_v42 = vadd.f32 %v1800_v25, %v1757_v24  ;;  %v1843_v43 = vadd.f32 %v1840_v2, %v1799_v41  ;;  %v2068_v9 = vld [vmem:[#allocation4 + $0x10] sm:$0xff]  ;;  %v2133_v10 = vld [vmem:[#allocation4 + $0x18] sm:$0xff] }
 0x3b0   : > { %v2198_v57 = vld [vmem:[#allocation4 + $0x20] sm:$0xff]  ;;  %v2263_v48 = vld [vmem:[#allocation4 + $0x28] sm:$0xff]  ;;  %s414_s10 = sand.u32 1, %s5239_s23  }
 0x3b1   : > { %v1845_v44 = vadd.f32 %v1844_v61, %v1801_v42  ;;  %v1887_v46 = vadd.f32 %v1884_v17, %v1843_v43  ;;  %v2328_v25 = vld [vmem:[#allocation4 + $0x30] sm:$0xff]  ;;  %v2205_v42 = vstv %s4769_s4  ;;  %v2270_v43 = vstv %s4771_s30  ;;  %s3019_s11 = sshll.u32 %s414_s10, 3  ;;  %s5242_s30 = sld [smem:[#allocation90_spill]] }
 0x3b2   : > { %s2860_s5 = scalar_lea.sflag [#allocation7], %s414_s10 }
 0x3b3   : > { %v1889_v26 = vadd.f32 %v1888_v4, %v1845_v44  ;;  %v1931_v27 = vadd.f32 %v1928_v18, %v1887_v46  ;;  %v5237_v18 = vmov 0.0   ;;  %v2393_v44 = vld [vmem:[#allocation4 + $0x38] sm:$0xff] }
 0x3b5   : > { %v1933_v45 = vadd.f32 %v1932_v28, %v1889_v26  ;;  %v4736_v52 = vmul.f32 0.125, %v1931_v27 }
 0x3b7   : > { %v1935_v39 = vmul.f32 0.125, %v1933_v45  ;;  %v1936_v0 = vmul.f32 %v4736_v52, %v4736_v52  ;;  %v1941_v6 = vsub.f32 %v1940_v29, %v4736_v52  ;;  %v2004_v13 = vsub.f32 %v2003_v5, %v4736_v52 }
 0x3b8   : > { %v2069_v31 = vsub.f32 %v2068_v9, %v4736_v52  ;;  %v2134_v32 = vsub.f32 %v2133_v10, %v4736_v52  ;;  %v2199_v16 = vsub.f32 %v2198_v57, %v4736_v52  ;;  %v2264_v2 = vsub.f32 %v2263_v48, %v4736_v52  ;;  %v2466_v10 = vld [vmem:[%s5238_s29] sm:$0xf] }
 0x3b9   : > { %v1937_v1 = vsub.f32 %v1935_v39, %v1936_v0  ;;  %v2329_v61 = vsub.f32 %v2328_v25, %v4736_v52  ;;  %v2394_v46 = vsub.f32 %v2393_v44, %v4736_v52  ;;  %v2332_v45 = vstv %s4786_s9  ;;  %v3739_v39 = vld [vmem:[%s5236_s14 + $0x30] sm:$0xff]   ;;  %v3740_v0 = vld [vmem:[%s5236_s14 + $0x38] sm:$0xff]   ;;  %s3255_s14 = sshll.u32 %s5240_s6, 1  ;;  %s5243_s9 = sld [smem:[#allocation25_spill]] }
 0x3ba   : > { %v2397_v52 = vstv %s4788_s12  ;;  %s2871_s24 = sadd.s32 %s5241_s8, %s3255_s14 }
 0x3bb   : > { %v1938_v38 = vadd.f32 1e-05, %v1937_v1  ;;  %s3256_s12 = sshll.u32 %s2871_s24, 7 }
 0x3bc   : > { %s4905_s3 = scalar_lea.hbm %s5244_s18, %s3256_s12 }
 0x3bd   : > { %3773 = vrsqrt.f32 %v1938_v38 }
 0x3bf   : > { %p5245_p12 = scmp.ne.s32.totalorder %s5243_s9, 0 }
 0x3c7   : > { %v4746_v60 = vpop.eup %3773 }
 0x3c8   : > { %v1942_v30 = vmul.f32 %v4746_v60, %v1941_v6  ;;  %v2005_v11 = vmul.f32 %v4746_v60, %v2004_v13  ;;  %v2070_v14 = vmul.f32 %v4746_v60, %v2069_v31  ;;  %v2135_v36 = vmul.f32 %v4746_v60, %v2134_v32 }
 0x3c9   : > { %v2200_v17 = vmul.f32 %v4746_v60, %v2199_v16  ;;  %v2265_v20 = vmul.f32 %v4746_v60, %v2264_v2  ;;  %v2330_v4 = vmul.f32 %v4746_v60, %v2329_v61  ;;  %v2395_v28 = vmul.f32 %v4746_v60, %v2394_v46 }
 0x3ca   : > { %v1945_v12 = vmul.f32 %v1944_v7, %v1942_v30  ;;  %v2008_v35 = vmul.f32 %v2007_v8, %v2005_v11  ;;  %v2073_v55 = vmul.f32 %v2072_v62, %v2070_v14  ;;  %v2138_v56 = vmul.f32 %v2137_v50, %v2135_v36  ;;  %v2467_v30 = vld [vmem:[%s5238_s29 + $0x4] sm:$0xf] }
 0x3cb   : > { %v2203_v24 = vmul.f32 %v2202_v3, %v2200_v17  ;;  %v2268_v41 = vmul.f32 %v2267_v21, %v2265_v20  ;;  %v2333_v29 = vmul.f32 %v2332_v45, %v2330_v4  ;;  %v2398_v5 = vmul.f32 %v2397_v52, %v2395_v28  ;;  %v2470_v20 = vld [vmem:[%s5238_s29 + $0x10] sm:$0xf]  ;;  %v2471_v3 = vld [vmem:[%s5238_s29 + $0x14] sm:$0xf] }
 0x3cc   : > { %v1948_v47 = vadd.f32 %v1947_v33, %v1945_v12  ;;  %v2011_v51 = vadd.f32 %v2010_v34, %v2008_v35  ;;  %v2076_v63 = vadd.f32 %v2075_v58, %v2073_v55  ;;  %v2141_v19 = vadd.f32 %v2140_v15, %v2138_v56 }
 0x3cd   : > { %v2206_v26 = vadd.f32 %v2205_v42, %v2203_v24  ;;  %v2271_v27 = vadd.f32 %v2270_v43, %v2268_v41  ;;  %v2335_v6 = vstv %s4795_s13  ;;  %v2400_v13 = vstv %s4797_s16  ;;  %s416_s13 = scalar_lea.vmem [#allocation12], %s3019_s11 }
 0x3ce   : > { %v1949_v53 = vpack.c.bf16 %v1948_v47, %v1948_v47  ;;  %v2012_v54 = vpack.c.bf16 %v2011_v51, %v2011_v51  ;;  %v2077_v37 = vpack.c.bf16 %v2076_v63, %v2076_v63  ;;  %v2142_v40 = vpack.c.bf16 %v2141_v19, %v2141_v19  ;;  %v2468_v51 = vld [vmem:[%s5238_s29 + $0x8] sm:$0xf]  ;;  %s2875_s16 = sshll.u32 %s416_s13, 4  ;;  %s4907_s16 = int_to_ptr.vmem [resolvable:$true] %s2875_s16 }
 0x3cf   : > { %v2207_v1 = vpack.c.bf16 %v2206_v26, %v2206_v26  ;;  %v2272_v38 = vpack.c.bf16 %v2271_v27, %v2271_v27  ;;  %v2336_v60 = vadd.f32 %v2335_v6, %v2333_v29  ;;  %v2401_v7 = vadd.f32 %v2400_v13, %v2398_v5  ;;  %v2472_v26 = vld [vmem:[%s5238_s29 + $0x18] sm:$0xf]  ;;  %v2473_v27 = vld [vmem:[%s5238_s29 + $0x1c] sm:$0xf]  ;;  %s3820_s1 = scalar_lea.vmem %s4907_s16, 128  ;;  %p3827_p6 = scmp.lt.s32.totalorder %s4907_s16, %s3825_s20 }
 0x3d0   : > { %3496 = vmatmul.mubr.msk.bf16.vlgmr.msra.gmra.mrb[32].mxu0 %vm1481_vm4, %v1949_v53  ;;  %3502 = vmatmul.mubr.msk.bf16.vlgmr.msra.gmra.mrb[32].mxu1 %vm1481_vm4, %v2012_v54  ;;  %v2479_v11 = vsel %vm2477_vm5, %v2466_v10, 0  ;;  %v2525_v31 = vsel %vm2477_vm5, %v2467_v30, 0  ;;  %v2571_v58 = vsel %vm2477_vm5, %v2468_v51, 0  ;;  %v2663_v41 = vsel %vm2477_vm5, %v2470_v20, 0  ;;  %p3821_p10 = scmp.ne.s32.totalorder %s4907_s16, %s3820_s1  ;;  %p3828_p7 = scmp.lt.s32.totalorder %s3826_s28, %s3820_s1 }
 0x3d1   : > { %3506 = vmatpush3.bf16.msra.mxu0 %v3735_v59  ;;  %3512 = vmatpush3.bf16.msra.mxu1 %v3736_v49  ;;  %v2337_v8 = vpack.c.bf16 %v2336_v60, %v2336_v60  ;;  %v2402_v9 = vpack.c.bf16 %v2401_v7, %v2401_v7  ;;  %v2469_v59 = vld [vmem:[%s5238_s29 + $0xc] sm:$0xf]  ;;  %v2709_v25 = vsel %vm2477_vm5, %v2471_v3, 0  ;;  %v2801_v29 = vsel %vm2477_vm5, %v2473_v27, 0 }
 0x3d2   : > { %3507 = vmatprep.mubr.msk.bf16.mxu0 %vm3928_vm0, %v5237_v18  ;;  %3513 = vmatprep.mubr.msk.bf16.mxu1 %vm3928_vm0, %v5237_v18  ;;  %v2617_v15 = vsel %vm2477_vm5, %v2469_v59, 0  ;;  %p3822_p0 = pnand %p3821_p10, %p5245_p12  ;;  %p3829_p9 = por %p3828_p7, %p3827_p6 }
 0x3d3   : > { %3517 = vmatprep.subr.bf16.mxu0 %v5237_v18  ;;  %3523 = vmatprep.subr.bf16.mxu1 %v5237_v18 }
 0x3d4   : > { %p3823_p2 = pneg %p3822_p0 }
 0x3d6   : > { %p3830_p11 = pnand %p3829_p9, %p3823_p2 }
 0x3d8   : > { %3508 = vmatmul.mubr.msk.bf16.vlgmr.msra.gmra.mrb[36].mxu0 %vm1481_vm4, %v2077_v37  ;;  %3514 = vmatmul.mubr.msk.bf16.vlgmr.msra.gmra.mrb[36].mxu1 %vm1481_vm4, %v2142_v40 }
 0x3d9   : > { %3518 = vmatpush3.bf16.msra.mxu0 %v3737_v22  ;;  %3524 = vmatpush3.bf16.msra.mxu1 %v3738_v23 }
 0x3da   : > { %3519 = vmatprep.mubr.msk.bf16.mxu0 %vm3928_vm0, %v5237_v18  ;;  %3525 = vmatprep.mubr.msk.bf16.mxu1 %vm3928_vm0, %v5237_v18 }
 0x3db   : > { %3529 = vmatprep.subr.bf16.mxu0 %v5237_v18  ;;  %3535 = vmatprep.subr.bf16.mxu1 %v5237_v18 }
 0x3e0   : > { %3520 = vmatmul.mubr.msk.bf16.vlgmr.msra.gmra.mrb[40].mxu0 %vm1481_vm4, %v2207_v1  ;;  %3526 = vmatmul.mubr.msk.bf16.vlgmr.msra.gmra.mrb[40].mxu1 %vm1481_vm4, %v2272_v38  ;;  %v2755_v38 = vsel %vm2477_vm5, %v2472_v26, 0 }
 0x3e1   : > { %3530 = vmatpush3.bf16.msra.mxu0 %v3739_v39  ;;  %3536 = vmatpush3.bf16.msra.mxu1 %v3740_v0 }
 0x3e2   : > { %3531 = vmatprep.mubr.msk.bf16.mxu0 %vm3928_vm0, %v5237_v18  ;;  %3537 = vmatprep.mubr.msk.bf16.mxu1 %vm3928_vm0, %v5237_v18 }
 0x3e3   : > { %3541 = vmatprep.subr.bf16.mxu0 %v5237_v18  ;;  %3547 = vmatprep.subr.bf16.mxu1 %v5237_v18 }
 0x3e8   : > { %3532 = vmatmul.mubr.msk.bf16.vlgmr.msra.gmra.mrb[44].mxu0 %vm1481_vm4, %v2337_v8  ;;  %3538 = vmatmul.mubr.msk.bf16.vlgmr.msra.gmra.mrb[44].mxu1 %vm1481_vm4, %v2402_v9 }
 0x3e9   : > { %3543 = vmatprep.mubr.msk.bf16.mxu0 %vm3928_vm0, %v5237_v18  ;;  %3549 = vmatprep.mubr.msk.bf16.mxu1 %vm3928_vm0, %v5237_v18 }
 0x3ea   : > { %3542 = vmatpush3.bf16.msra.mxu0 %v2479_v11  ;;  %3548 = vmatpush3.bf16.msra.mxu1 %v2525_v31 }
 0x3eb   : > { %3553 = vmatprep.subr.bf16.mxu0 %v5237_v18  ;;  %3559 = vmatprep.subr.bf16.mxu1 %v5237_v18 }
 0x4a3   : > { %v1995_v32 = vpop.f32.mrb[32].mxu0  ;;  %v2059_v33 = vpop.f32.mrb[32].mxu1 }
 0x4a4   : > { %v2001_v34 = vpack.c.bf16 %v1995_v32, %v1995_v32  ;;  %v2065_v12 = vpack.c.bf16 %v2059_v33, %v2059_v33  ;;  %v3497_v35 = vpop.f32.mrb[33].mxu0  ;;  %v3503_v14 = vpop.f32.mrb[33].mxu1 }
 0x4a5   : > { %v1998_v36 = vpop.f32.mrb[34].mxu0  ;;  %v2062_v62 = vpop.f32.mrb[34].mxu1 }
 0x4a6   : > { %2002 = vst.msk [vmem:[#allocation5] sm:$0xf] %vm514_vm3, %v2001_v34  ;;  %2067 = vst.msk [vmem:[#allocation5 + $0x4] sm:$0xf] %vm514_vm3, %v2065_v12  ;;  %v3498_v50 = vpop.f32.mrb[35].mxu0  ;;  %v3504_v47 = vpop.f32.mrb[35].mxu1 }
 0x4ab   : > { %v2124_v49 = vpop.f32.mrb[36].mxu0  ;;  %v2189_v53 = vpop.f32.mrb[36].mxu1 }
 0x4ac   : > { %v2130_v54 = vpack.c.bf16 %v2124_v49, %v2124_v49  ;;  %v2195_v55 = vpack.c.bf16 %v2189_v53, %v2189_v53  ;;  %v3509_v56 = vpop.f32.mrb[37].mxu0  ;;  %v3515_v57 = vpop.f32.mrb[37].mxu1 }
 0x4ad   : > { %v2127_v16 = vpop.f32.mrb[38].mxu0  ;;  %v2192_v48 = vpop.f32.mrb[38].mxu1  ;;  %v2458_v2 = vld [vmem:[#allocation5] sm:$0xf]  ;;  %v2459_v17 = vld [vmem:[#allocation5 + $0x4] sm:$0xf] }
 0x4ae   : > { %2132 = vst.msk [vmem:[#allocation5 + $0x8] sm:$0xf] %vm514_vm3, %v2130_v54  ;;  %2197 = vst.msk [vmem:[#allocation5 + $0xc] sm:$0xf] %vm514_vm3, %v2195_v55  ;;  %v3510_v63 = vpop.f32.mrb[39].mxu0  ;;  %v3516_v19 = vpop.f32.mrb[39].mxu1  ;;  %3544 = vmatmul.mubr.msk.bf16.vlgmr.msra.gmra.mrb[48].mxu0 %vm1077_vm2, %v2458_v2  ;;  %3550 = vmatmul.mubr.msk.bf16.vlgmr.msra.gmra.mrb[48].mxu1 %vm1077_vm2, %v2459_v17 }
 0x4af   : > { %3554 = vmatpush3.bf16.msra.mxu0 %v2571_v58  ;;  %3560 = vmatpush3.bf16.msra.mxu1 %v2617_v15 }
 0x4b0   : > { %3555 = vmatprep.mubr.msk.bf16.mxu0 %vm3928_vm0, %v5237_v18  ;;  %3561 = vmatprep.mubr.msk.bf16.mxu1 %vm3928_vm0, %v5237_v18 }
 0x4b1   : > { %3565 = vmatprep.subr.bf16.mxu0 %v5237_v18  ;;  %3571 = vmatprep.subr.bf16.mxu1 %v5237_v18 }
 0x4b3   : > { %v2254_v21 = vpop.f32.mrb[40].mxu0  ;;  %v2319_v22 = vpop.f32.mrb[40].mxu1 }
 0x4b4   : > { %v2260_v23 = vpack.c.bf16 %v2254_v21, %v2254_v21  ;;  %v2325_v37 = vpack.c.bf16 %v2319_v22, %v2319_v22  ;;  %v3521_v40 = vpop.f32.mrb[41].mxu0  ;;  %v3527_v24 = vpop.f32.mrb[41].mxu1 }
 0x4b5   : > { %v2257_v42 = vpop.f32.mrb[42].mxu0  ;;  %v2322_v43 = vpop.f32.mrb[42].mxu1  ;;  %v2460_v61 = vld [vmem:[#allocation5 + $0x8] sm:$0xf]  ;;  %v2461_v44 = vld [vmem:[#allocation5 + $0xc] sm:$0xf] }
 0x4b6   : > { %2262 = vst.msk [vmem:[#allocation5 + $0x10] sm:$0xf] %vm514_vm3, %v2260_v23  ;;  %2327 = vst.msk [vmem:[#allocation5 + $0x14] sm:$0xf] %vm514_vm3, %v2325_v37  ;;  %v3522_v46 = vpop.f32.mrb[43].mxu0  ;;  %v3528_v4 = vpop.f32.mrb[43].mxu1  ;;  %3556 = vmatmul.mubr.msk.bf16.vlgmr.msra.gmra.mrb[52].mxu0 %vm1077_vm2, %v2460_v61  ;;  %3562 = vmatmul.mubr.msk.bf16.vlgmr.msra.gmra.mrb[52].mxu1 %vm1077_vm2, %v2461_v44 }
 0x4b7   : > { %3566 = vmatpush3.bf16.msra.mxu0 %v2663_v41  ;;  %3572 = vmatpush3.bf16.msra.mxu1 %v2709_v25  ;;  %v3253_v23 = vld [vmem:[%s5242_s30] ss:$0 sm:$0xff] }
 0x4b8   : > { %3567 = vmatprep.mubr.msk.bf16.mxu0 %vm3928_vm0, %v5237_v18  ;;  %3573 = vmatprep.mubr.msk.bf16.mxu1 %vm3928_vm0, %v5237_v18 }
 0x4b9   : > { %3577 = vmatprep.subr.bf16.mxu0 %v5237_v18  ;;  %3583 = vmatprep.subr.bf16.mxu1 %v5237_v18 }
 0x4bb   : > { %v2384_v28 = vpop.f32.mrb[44].mxu0  ;;  %v2449_v45 = vpop.f32.mrb[44].mxu1 }
 0x4bc   : > { %v2390_v52 = vpack.c.bf16 %v2384_v28, %v2384_v28  ;;  %v2455_v39 = vpack.c.bf16 %v2449_v45, %v2449_v45  ;;  %v3533_v0 = vpop.f32.mrb[45].mxu0  ;;  %v3539_v1 = vpop.f32.mrb[45].mxu1 }
 0x4bd   : > { %v2387_v5 = vpop.f32.mrb[46].mxu0  ;;  %v2452_v6 = vpop.f32.mrb[46].mxu1  ;;  %v2462_v13 = vld [vmem:[#allocation5 + $0x10] sm:$0xf]  ;;  %v2463_v60 = vld [vmem:[#allocation5 + $0x14] sm:$0xf] }
 0x4be   : > { %2392 = vst.msk [vmem:[#allocation5 + $0x18] sm:$0xf] %vm514_vm3, %v2390_v52  ;;  %2457 = vst.msk [vmem:[#allocation5 + $0x1c] sm:$0xf] %vm514_vm3, %v2455_v39  ;;  %v3534_v7 = vpop.f32.mrb[47].mxu0  ;;  %v3540_v8 = vpop.f32.mrb[47].mxu1  ;;  %3568 = vmatmul.mubr.msk.bf16.vlgmr.msra.gmra.mrb[56].mxu0 %vm1077_vm2, %v2462_v13  ;;  %3574 = vmatmul.mubr.msk.bf16.vlgmr.msra.gmra.mrb[56].mxu1 %vm1077_vm2, %v2463_v60 }
 0x4bf   : > { %3578 = vmatpush3.bf16.msra.mxu0 %v2755_v38  ;;  %3584 = vmatpush3.bf16.msra.mxu1 %v2801_v29 }
 0x4c0   : > { %3579 = vmatprep.mubr.msk.bf16.mxu0 %vm3928_vm0, %v5237_v18  ;;  %3585 = vmatprep.mubr.msk.bf16.mxu1 %vm3928_vm0, %v5237_v18 }
 0x4c5   : > { %v2464_v9 = vld [vmem:[#allocation5 + $0x18] sm:$0xf]  ;;  %v2465_v10 = vld [vmem:[#allocation5 + $0x1c] sm:$0xf] }
 0x4c6   : > { %3580 = vmatmul.mubr.msk.bf16.vlgmr.msra.gmra.mrb[60].mxu0 %vm1077_vm2, %v2464_v9  ;;  %3586 = vmatmul.mubr.msk.bf16.vlgmr.msra.gmra.mrb[60].mxu1 %vm1077_vm2, %v2465_v10 }
 0x581   : > { %v2515_v30 = vpop.f32.mrb[48].mxu0  ;;  %v2561_v11 = vpop.f32.mrb[48].mxu1 }
 0x582   : > { %v2843_v31 = vadd.f32 %v2561_v11, %v2515_v30  ;;  %v3545_v32 = vpop.f32.mrb[49].mxu0  ;;  %v3551_v33 = vpop.f32.mrb[49].mxu1 }
 0x583   : > { %v2518_v34 = vpop.f32.mrb[50].mxu0  ;;  %v2564_v12 = vpop.f32.mrb[50].mxu1 }
 0x584   : > { %v3546_v35 = vpop.f32.mrb[51].mxu0  ;;  %v3552_v14 = vpop.f32.mrb[51].mxu1 }
 0x589   : > { %v2607_v36 = vpop.f32.mrb[52].mxu0  ;;  %v2653_v62 = vpop.f32.mrb[52].mxu1 }
 0x58a   : > { %v2844_v50 = vadd.f32 %v2843_v31, %v2607_v36  ;;  %v3557_v18 = vpop.f32.mrb[53].mxu0  ;;  %v3563_v47 = vpop.f32.mrb[53].mxu1 }
 0x58b   : > { %v2610_v51 = vpop.f32.mrb[54].mxu0  ;;  %v2656_v59 = vpop.f32.mrb[54].mxu1 }
 0x58c   : > { %v2845_v49 = vadd.f32 %v2844_v50, %v2653_v62  ;;  %v3558_v53 = vpop.f32.mrb[55].mxu0  ;;  %v3564_v54 = vpop.f32.mrb[55].mxu1 }
 0x591   : > { %v2699_v55 = vpop.f32.mrb[56].mxu0  ;;  %v2745_v56 = vpop.f32.mrb[56].mxu1 }
 0x592   : > { %v2846_v57 = vadd.f32 %v2845_v49, %v2699_v55  ;;  %v3569_v58 = vpop.f32.mrb[57].mxu0  ;;  %v3575_v15 = vpop.f32.mrb[57].mxu1 }
 0x593   : > { %v2702_v16 = vpop.f32.mrb[58].mxu0  ;;  %v2748_v48 = vpop.f32.mrb[58].mxu1 }
 0x594   : > { %v2847_v2 = vadd.f32 %v2846_v57, %v2745_v56  ;;  %v3570_v17 = vpop.f32.mrb[59].mxu0  ;;  %v3576_v63 = vpop.f32.mrb[59].mxu1 }
 0x599   : > { %v2791_v19 = vpop.f32.mrb[60].mxu0  ;;  %v2837_v20 = vpop.f32.mrb[60].mxu1 }
 0x59a   : > { %v2848_v3 = vadd.f32 %v2847_v2, %v2791_v19  ;;  %v3581_v21 = vpop.f32.mrb[61].mxu0  ;;  %v3587_v22 = vpop.f32.mrb[61].mxu1 }
 0x59b   : > { %v2794_v37 = vpop.f32.mrb[62].mxu0  ;;  %v2840_v40 = vpop.f32.mrb[62].mxu1 }
 0x59c   : > { %v2849_v24 = vadd.f32 %v2848_v3, %v2837_v20  ;;  %v3582_v41 = vpop.f32.mrb[63].mxu0  ;;  %v3588_v25 = vpop.f32.mrb[63].mxu1 }
 0x59e   : > { %v2857_v42 = vadd.f32 %v3253_v23, %v2849_v24 }
 0x5a0   : > { %2858 = vst [vmem:[%s416_s13] sm:$0xff] %v2857_v42 }
 0x5a1   : > { %3833 = shalt.err (!%p3830_p11)
}
 0x5a2   : > { %s3834_s25 = scalar_lea.hbm %s4905_s3, 128  ;;  %s3838_s7 = scalar_lea.hbm %s5244_s18, 512 }
 0x5a3   : > { %p3835_p13 = scmp.ne.s32.totalorder %s4905_s3, %s3834_s25  ;;  %p3839_p5 = scmp.lt.u32.totalorder %s4905_s3, %s5244_s18 }
 0x5a4   : > { %p3840_p3 = scmp.lt.u32.totalorder %s3838_s7, %s3834_s25  ;;  %p3842_p10 = scmp.lt.u32.totalorder %s3834_s25, %s4905_s3 }
 0x5a5   : > { %p3836_p1 = pnand %p3835_p13, %p5245_p12 }
 0x5a6   : > { %p3841_p8 = por %p3840_p3, %p3839_p5 }
 0x5a7   : > { %p3837_p4 = pneg %p3836_p1 }
 0x5a8   : > { %p3843_p0 = por %p3842_p10, %p3841_p8 }
 0x5aa   : > { %p3844_p2 = pnand %p3843_p0, %p3837_p4 }
 0x5ac   : > { %3847 = shalt.err (!%p3844_p2)
}
 0x5ad   : > { %3601 = dma.vmem_to_hbm [thread:$0]  (%p5245_p12), %s4907_s16, 128, %s4905_s3, %s2860_s5  }
 0x5ae PF: > { %s5246_s15 = sld [smem:[#allocation23_spill]]  ;;  %s5247_s23 = sld [smem:[#allocation16_spill]] }
 0x5af   : > { %s5248_s6 = sld [smem:[#allocation27_spill]] }
 0x5b4   : > { %p3623_p6 = scmp.ge.s32.totalorder %s5246_s15, 2  ;;  %s2887_s8 = sand.u32 1, %s5247_s23  }
 0x5b5   : > { %p5249_p7 = scmp.ne.s32.totalorder %s5248_s6, 0  ;;  %s2888_s10 = scalar_lea.sflag [#allocation7], %s2887_s8 }
 0x5b7   : > { %p3614_p9 = pnand %p3623_p6, %p5249_p7 }
 0x5b9   : > { %3889 = dma.done.wait (!%p3614_p9), %s2888_s10, 128  }
 0x5ba   : > { %3891 = vsyncadd (!%p3614_p9), %s2888_s10, 4294967168  ;;  %s24_s16 = sadd.s32 1, %s5246_s15   ;;  %s5250_s30 = sld [smem:[#allocation17_spill]] }
 0x5bb   : > { %p21_p11 = scmp.ge.s32.totalorder %s24_s16, 6   ;;  %s5251_s10 = sld [smem:[#allocation18_spill]] }
 0x5bc   : > { %s5252_s11 = sld [smem:[#allocation28_spill]]  ;;  %s5253_s12 = sld [smem:[#allocation21_spill]] }
 0x5bd   : > { %s5254_s13 = sld [smem:[#allocation22_spill]]  ;;  %s5255_s14 = sld [smem:[#allocation24_spill]] }
 0x5be   : > { %s5256_s15 = sld [smem:[#allocation26_spill]]  ;;  %23 = sbr.rel (!%p21_p11) target bundleno = 18 (0x12), region = 152 }
 0x5c5   :  { %2893 = vsyncpa [#allocation7], 1 }
 0x5c6   :  { %2895 = vsyncpa [#allocation7 + $0x1], 1 }
 0x5c7   :  { %2896 = vsyncpa [#allocation8], 1 }
 0x5c8   :  { %2898 = vsyncpa [#allocation8 + $0x1], 1 }
 0x5c9   :  { %2899 = vsyncpa [#allocation10], 1 }

</bundles_post_ra>
